<compile_context>
chip_gen: v7x
topology: tpu7x:2x2x1
jax: 0.10.0
libtpu: 0.0.40
codegen_flags: <defaults>
</compile_context>

<pallas_src>
import functools
import math

import jax
import jax.numpy as jnp
from jax.experimental import pallas as pl
from jax.experimental.pallas import tpu as pltpu

BN_EPS = 1e-5          # nn.BatchNorm1d default eps
LEAKY_SLOPE = 0.01     # F.leaky_relu default negative_slope


def gated_attention_kernel(
    self_ref,    # (TN, 2A)     f32       self projection + fc_full bias
    nbrp_ref,    # (TN, M, 2A)  f32       gathered neighbour projection
    edge_ref,    # (TN*M, B)    f32/bf16  bond features
    we_ref,      # (B, 2A)      f32/bf16  edge-weight chunk of fc_full
    wa_ref,      # (1, 2A)      f32       attn_fc weight (row vector)
    out_ref,     # (TN, 2A)     f32       pre-BN2 weighted neighbour sum
    s1_ref, s2_ref,        # (1, 2A)  f32  BN1 column sum / sum of squares
    gram_ref,              # (2A, 2A) f32  Gram matrix of raw gated features
    mu1_ref, inv1_ref,     # (1, 2A)  f32  BN1 mean / inv std
    mu3_ref, inv3_ref,     # (1, 1)   f32  BN3 mean / inv std
    *, TN, M, A, n_rows):
    F2 = 2 * A
    phase = pl.program_id(0)
    tile = pl.program_id(1)
    last_tile = pl.num_programs(1) - 1

    def gated_raw():
        # Split-weight form: only the bond/edge term goes through the MXU.
        edge_proj = jnp.dot(edge_ref[...], we_ref[...],
                            preferred_element_type=jnp.float32)   # (TN*M, 2A)
        return (edge_proj.reshape(TN, M, F2)
                + nbrp_ref[...]                      # gathered neighbour proj
                + self_ref[...][:, None, :])         # self proj + bias

    # ---- phase 0: BN1 column stats + Gram matrix (-> analytic BN3 stats) ---
    @pl.when(phase == 0)
    def _():
        @pl.when(tile == 0)
        def _():
            s1_ref[...] = jnp.zeros_like(s1_ref)
            s2_ref[...] = jnp.zeros_like(s2_ref)
            gram_ref[...] = jnp.zeros_like(gram_ref)

        g = gated_raw().reshape(TN * M, F2)
        s1_ref[...] += jnp.sum(g, axis=0, keepdims=True)
        s2_ref[...] += jnp.sum(g * g, axis=0, keepdims=True)
        # Gram matrix g^T g: since the attention logit is affine in g,
        # BN3's batch stats follow from (s1, gram) once BN1's inv-std exists.
        gram_ref[...] += jnp.dot(g.T, g, preferred_element_type=jnp.float32)

        @pl.when(tile == last_tile)
        def _():
            mu1 = s1_ref[...] / n_rows
            var1 = jnp.maximum(s2_ref[...] / n_rows - mu1 * mu1, 0.0)
            inv1 = jax.lax.rsqrt(var1 + BN_EPS)
            mu1_ref[...] = mu1
            inv1_ref[...] = inv1
            # a = ((g - mu1) * inv1) . wa = g . w' - c0   with  w' = wa * inv1
            w_p = wa_ref[...] * inv1                                  # (1, 2A)
            lin = jnp.sum(s1_ref[...] * w_p, keepdims=True)           # (1, 1)
            gw = jnp.dot(w_p, gram_ref[...],
                         preferred_element_type=jnp.float32)          # (1, 2A)
            quad = jnp.sum(gw * w_p, keepdims=True)                   # (1, 1)
            c0 = jnp.sum(mu1 * w_p, keepdims=True)                    # (1, 1)
            sum_a = lin - n_rows * c0
            sum_a2 = quad - 2.0 * c0 * lin + n_rows * c0 * c0
            mu3 = sum_a / n_rows
            var3 = jnp.maximum(sum_a2 / n_rows - mu3 * mu3, 0.0)
            # TODO(synk): one-pass E[x^2]-E[x]^2 stats (and the Gram quadratic
            # form) can lose precision on very large, badly centred graphs;
            # switch to centred / Welford-style accumulation before scaling up.
            mu3_ref[...] = mu3
            inv3_ref[...] = jax.lax.rsqrt(var3 + BN_EPS)

    # ---- phase 1: bn1 + attn + bn3 + leaky_relu + softmax + weighted sum ---
    @pl.when(phase == 1)
    def _():
        gn = (gated_raw() - mu1_ref[...]) * inv1_ref[...]         # (TN, M, 2A)
        # attn_fc as a VPU multiply + lane reduce (no width-1 MXU matmul).
        a = jnp.sum(gn * wa_ref[...], axis=-1)                    # (TN, M)
        a = (a - mu3_ref[...]) * inv3_ref[...]                    # bn3
        e = jnp.where(a > 0, a, LEAKY_SLOPE * a)                  # leaky_relu
        e = e - jnp.max(e, axis=1, keepdims=True)                 # softmax(M)
        p = jnp.exp(e)
        alpha = p * pl.reciprocal(jnp.sum(p, axis=1, keepdims=True),
                                  approx=True)
        # TODO(synk): PyTorch also does np.save('a.npy', alpha) -- host-side
        # file I/O side effect with no Pallas equivalent; omitted.
        # Lane-dense (TN, 2A) store; wrapper slices the first A columns.
        out_ref[...] = jnp.sum(alpha[:, :, None] * gn, axis=1)


def _pick_tile_atoms(N, M, A, B, edge_itemsize, vmem_budget_bytes):
    """Largest divisor of N (multiple of 8, or N itself) whose double-buffered
    per-tile working set fits the VMEM budget."""
    F2 = 2 * A

    def tile_bytes(tn):
        per_buf = (tn * F2 * 4                      # self projection (+bias)
                   + tn * M * F2 * 4                # gathered neighbour proj
                   + tn * M * B * edge_itemsize     # bond features
                   + tn * F2 * 4)                   # output block
        fixed = F2 * F2 * 4 + 8 * F2 * 4 + B * F2 * edge_itemsize + 4096
        return 2 * per_buf + fixed                  # double-buffered + scratch

    cands = [d for d in range(1, N + 1)
             if N % d == 0 and (d % 8 == 0 or d == N)]
    fitting = [d for d in cands if tile_bytes(d) <= vmem_budget_bytes]
    return max(fitting) if fitting else min(cands)


def conv_layer_forward(atom_in_fea, nbr_fea, nbr_fea_idx, params, *,
                       tile_atoms=None, mxu_dtype=jnp.bfloat16,
                       vmem_budget_bytes=22 * 1024 * 1024):
    N, A = atom_in_fea.shape
    M = nbr_fea_idx.shape[1]
    B = nbr_fea.shape[-1]
    F2 = 2 * A

    # Split fc_full's weight: gated = self@W_self + nbr@W_nbr + edge@W_edge + b
    wf = params["fc_full_w"].astype(jnp.float32)          # (2A, 2A+B)
    w_self = wf[:, :A].T                                  # (A, 2A)
    w_nbr = wf[:, A:2 * A].T                              # (A, 2A)
    w_edge = wf[:, 2 * A:].T.astype(mxu_dtype)            # (B, 2A)
    bias = params["fc_full_b"].reshape(1, F2).astype(jnp.float32)
    wa = params["attn_fc_w"].reshape(1, F2).astype(jnp.float32)

    # Pure-JAX glue: project atom features BEFORE the gather (bias folded in),
    # so the (N, M, 2A+B) concat is never materialised.
    x = atom_in_fea.astype(jnp.float32)
    self_proj = x @ w_self + bias                         # (N, 2A)
    nbr_proj = (x @ w_nbr)[nbr_fea_idx]                   # (N, M, 2A) gather
    # TODO(synk): for large graphs, keep only the (N, 2A) projection table and
    # gather per tile inside the kernel (scalar-prefetched nbr_fea_idx + row
    # DMA) instead of materialising the (N, M, 2A) array in HBM.
    edge = nbr_fea.reshape(N * M, B).astype(mxu_dtype)    # (N*M, B)

    if tile_atoms is None:
        TN = _pick_tile_atoms(N, M, A, B, edge.dtype.itemsize,
                              vmem_budget_bytes)
    else:
        TN = min(tile_atoms, N)
    assert N % TN == 0 and (TN % 8 == 0 or TN == N), "bad tile_atoms"
    T = N // TN
    n_rows = N * M

    in_bytes = (self_proj.size * 4 + nbr_proj.size * 4
                + edge.size * edge.dtype.itemsize
                + w_edge.size * w_edge.dtype.itemsize + wa.size * 4)
    cost = pl.CostEstimate(
        flops=int(2 * 2 * n_rows * B * F2       # edge matmul, 2 passes
                  + 2 * n_rows * F2 * F2        # Gram accumulation
                  + 2 * 12 * n_rows * F2),      # elementwise / reductions
        transcendentals=int(2 * n_rows),
        bytes_accessed=int(2 * in_bytes + N * F2 * 4))

    kernel = functools.partial(gated_attention_kernel,
                               TN=TN, M=M, A=A, n_rows=float(n_rows))
    out_full = pl.pallas_call(
        kernel,
        out_shape=jax.ShapeDtypeStruct((N, F2), jnp.float32),
        grid_spec=pltpu.PrefetchScalarGridSpec(
            num_scalar_prefetch=0,
            grid=(2, T),                                  # (phase, atom tile)
            in_specs=[
                pl.BlockSpec((TN, F2), lambda p, i: (i, 0)),        # self+bias
                pl.BlockSpec((TN, M, F2), lambda p, i: (i, 0, 0)),  # nbr proj
                pl.BlockSpec((TN * M, B), lambda p, i: (i, 0)),     # edge fea
                pl.BlockSpec((B, F2), lambda p, i: (0, 0)),         # W_edge
                pl.BlockSpec((1, F2), lambda p, i: (0, 0)),         # attn w
            ],
            # Phase 0 (stats) produces no rows: collapse to block (0, 0) so
            # the output block stays resident and nothing is written back
            # until its phase-1 result is final (p is 0 or 1 -> i * p).
            out_specs=pl.BlockSpec((TN, F2), lambda p, i: (i * p, 0)),
            scratch_shapes=[
                pltpu.VMEM((1, F2), jnp.float32),    # BN1 column sum
                pltpu.VMEM((1, F2), jnp.float32),    # BN1 column sum sq
                pltpu.VMEM((F2, F2), jnp.float32),   # Gram matrix
                pltpu.VMEM((1, F2), jnp.float32),    # BN1 mean
                pltpu.VMEM((1, F2), jnp.float32),    # BN1 inv std
                pltpu.VMEM((1, 1), jnp.float32),     # BN3 mean
                pltpu.VMEM((1, 1), jnp.float32),     # BN3 inv std
            ]),
        compiler_params=pltpu.CompilerParams(
            # TODO(synk): both axes carry cross-step accumulators so they stay
            # "arbitrary"; per-core partial stats (+ a combine step) would be
            # needed to use v7x's second TensorCore.
            dimension_semantics=("arbitrary", "arbitrary"),
            vmem_limit_bytes=32 * 1024 * 1024),
        cost_estimate=cost,
    )(self_proj, nbr_proj, edge, w_edge, wa)

    # bn2 (training-mode batch stats, gamma=1 / beta=0) + sigmoid on the tiny
    # (N, A) result in plain JAX: cheaper than a second pallas_call round-trip.
    out = out_full[:, :A]
    mu2 = jnp.mean(out, axis=0, keepdims=True)
    var2 = jnp.mean(jnp.square(out - mu2), axis=0, keepdims=True)
    return jax.nn.sigmoid((out - mu2) * jax.lax.rsqrt(var2 + BN_EPS))


def conv_layer_reference(atom_in_fea, nbr_fea, nbr_fea_idx, params):
    """Pure-JAX reference mirroring the PyTorch forward (for sanity check)."""
    N, A = atom_in_fea.shape
    M = nbr_fea_idx.shape[1]
    atom_nbr_fea = atom_in_fea[nbr_fea_idx]
    atom_self = jnp.broadcast_to(atom_in_fea[:, None, :], (N, M, A))
    total = jnp.concatenate([atom_self, atom_nbr_fea, nbr_fea], axis=2)
    gated = total @ params["fc_full_w"].T + params["fc_full_b"]
    flat = gated.reshape(-1, 2 * A)
    mu = flat.mean(0)
    var = ((flat - mu) ** 2).mean(0)
    gated = ((flat - mu) / jnp.sqrt(var + BN_EPS)).reshape(N, M, 2 * A)
    g1 = gated[:, :, :A]
    a = gated @ params["attn_fc_w"].T                                 # (N,M,1)
    af = a.reshape(-1, 1)
    a = ((af - af.mean()) / jnp.sqrt(((af - af.mean()) ** 2).mean() + BN_EPS)
         ).reshape(N, M, 1)
    e = jnp.where(a > 0, a, LEAKY_SLOPE * a)
    alpha = jax.nn.softmax(e, axis=1)
    out = jnp.sum(alpha * g1, axis=1)
    mu2 = out.mean(0)
    var2 = ((out - mu2) ** 2).mean(0)
    out = (out - mu2) / jnp.sqrt(var2 + BN_EPS)
    return jax.nn.sigmoid(out)


def init_params(key, atom_fea_len, nbr_fea_len):
    gain = math.sqrt(2.0)  # nn.init.calculate_gain('relu')
    in_f = 2 * atom_fea_len + nbr_fea_len
    out_f = 2 * atom_fea_len
    k1, k2, k3 = jax.random.split(key, 3)
    std_full = gain * math.sqrt(2.0 / (in_f + out_f))      # xavier_normal_
    fc_full_w = std_full * jax.random.normal(k1, (out_f, in_f), jnp.float32)
    bound = 1.0 / math.sqrt(in_f)                           # Linear bias init
    fc_full_b = jax.random.uniform(k2, (out_f,), jnp.float32, -bound, bound)
    std_attn = gain * math.sqrt(2.0 / (out_f + 1))          # xavier_normal_
    attn_fc_w = std_attn * jax.random.normal(k3, (1, out_f), jnp.float32)
    return {"fc_full_w": fc_full_w, "fc_full_b": fc_full_b,
            "attn_fc_w": attn_fc_w}


if __name__ == "__main__":
    # Keep the plain-JAX glue / reference matmuls in true f32.
    jax.config.update("jax_default_matmul_precision", "highest")

    atom_fea_len = 64   # A  -> 2A = 128 lanes (lane-dense gated features)
    nbr_fea_len = 32    # B
    N, M = 32, 8        # atoms, max neighbors

    key = jax.random.PRNGKey(0)
    kp, ka, kn, ki = jax.random.split(key, 4)

    params = init_params(kp, atom_fea_len, nbr_fea_len)
    atom_in_fea = jax.random.normal(ka, (N, atom_fea_len), jnp.float32)
    nbr_fea = jax.random.normal(kn, (N, M, nbr_fea_len), jnp.float32)
    nbr_fea_idx = jax.random.randint(ki, (N, M), 0, N, jnp.int32)

    ref = conv_layer_reference(atom_in_fea, nbr_fea, nbr_fea_idx, params)

    # f32 MXU path, forced small tiles -> grid (2 phases, 4 tiles): exercises
    # cross-tile stats accumulation and the phase-collapsed output spec.
    out_f32 = conv_layer_forward(atom_in_fea, nbr_fea, nbr_fea_idx, params,
                                 tile_atoms=8, mxu_dtype=jnp.float32)
    out_f32 = jax.block_until_ready(out_f32)
    assert out_f32.shape == (N, atom_fea_len)
    # Tolerance covers the EUP approx-reciprocal softmax denominator.
    assert jnp.allclose(out_f32, ref, atol=5e-3, rtol=5e-3), "f32 mismatch"

    # bf16 MXU-input fast path, auto tile size (single resident tile here).
    out_bf16 = conv_layer_forward(atom_in_fea, nbr_fea, nbr_fea_idx, params,
                                  mxu_dtype=jnp.bfloat16)
    out_bf16 = jax.block_until_ready(out_bf16)
    assert out_bf16.shape == (N, atom_fea_len)
    assert jnp.allclose(out_bf16, ref, atol=5e-2, rtol=5e-2), "bf16 mismatch"

    print("KERNEL_OK")
</pallas_src>

<mosaic_0001>
module attributes {stable_mosaic.version = 11 : i64} {
  func.func @gated_attention_kernel(%arg0: i32, %arg1: i32, %arg2: memref<8x128xf32, #tpu.memory_space<vmem>>, %arg3: memref<8x8x128xf32, #tpu.memory_space<vmem>>, %arg4: memref<64x32xf32, #tpu.memory_space<vmem>>, %arg5: memref<32x128xf32, #tpu.memory_space<vmem>>, %arg6: memref<1x128xf32, #tpu.memory_space<vmem>>, %arg7: memref<8x128xf32, #tpu.memory_space<vmem>>, %arg8: memref<1x128xf32, #tpu.memory_space<vmem>>, %arg9: memref<1x128xf32, #tpu.memory_space<vmem>>, %arg10: memref<128x128xf32, #tpu.memory_space<vmem>>, %arg11: memref<1x128xf32, #tpu.memory_space<vmem>>, %arg12: memref<1x128xf32, #tpu.memory_space<vmem>>, %arg13: memref<1x1xf32, #tpu.memory_space<vmem>>, %arg14: memref<1x1xf32, #tpu.memory_space<vmem>>) attributes {dimension_semantics = [#tpu.dimension_semantics<arbitrary>, #tpu.dimension_semantics<arbitrary>], iteration_bounds = array<i64: 2, 4>, scalar_prefetch = 0 : i64, scratch_operands = 7 : i64, tpu.core_type = #tpu.core_type<tc>, window_params = [{transform_indices = @transform_0, window_bounds = array<i64: 8, 128>}, {transform_indices = @transform_1, window_bounds = array<i64: 8, 8, 128>}, {transform_indices = @transform_2, window_bounds = array<i64: 64, 32>}, {pipeline_mode = #tpu.pipeline_mode<synchronous>, transform_indices = @transform_3, window_bounds = array<i64: 32, 128>}, {pipeline_mode = #tpu.pipeline_mode<synchronous>, transform_indices = @transform_4, window_bounds = array<i64: 1, 128>}, {transform_indices = @transform_5, window_bounds = array<i64: 8, 128>}]} {
    %c0_i32 = arith.constant 0 : i32
    %0 = arith.cmpi eq, %arg0, %c0_i32 : i32
    %1 = arith.extui %0 : i1 to i32
    %c0_i32_0 = arith.constant 0 : i32
    %2 = arith.cmpi ne, %1, %c0_i32_0 : i32
    scf.if %2 {
      %c0_i32_2 = arith.constant 0 : i32
      %6 = arith.cmpi eq, %arg1, %c0_i32_2 : i32
      %7 = arith.extui %6 : i1 to i32
      %c0_i32_3 = arith.constant 0 : i32
      %8 = arith.cmpi ne, %7, %c0_i32_3 : i32
      scf.if %8 {
        %cst_28 = arith.constant 0.000000e+00 : f32
        %39 = vector.broadcast %cst_28 : f32 to vector<1x128xf32>
        %c0_29 = arith.constant 0 : index
        %c0_30 = arith.constant 0 : index
        %40 = vector.load %arg8[%c0_29, %c0_30] : memref<1x128xf32, #tpu.memory_space<vmem>>, vector<1x128xf32>
        tpu.vector_store %arg8[%c0_29, %c0_30], %39 {strides = array<i32>} : memref<1x128xf32, #tpu.memory_space<vmem>>, vector<1x128xf32>,
        %cst_31 = arith.constant 0.000000e+00 : f32
        %41 = vector.broadcast %cst_31 : f32 to vector<1x128xf32>
        %c0_32 = arith.constant 0 : index
        %c0_33 = arith.constant 0 : index
        %42 = vector.load %arg9[%c0_32, %c0_33] : memref<1x128xf32, #tpu.memory_space<vmem>>, vector<1x128xf32>
        tpu.vector_store %arg9[%c0_32, %c0_33], %41 {strides = array<i32>} : memref<1x128xf32, #tpu.memory_space<vmem>>, vector<1x128xf32>,
        %cst_34 = arith.constant 0.000000e+00 : f32
        %43 = vector.broadcast %cst_34 : f32 to vector<128x128xf32>
        %c0_35 = arith.constant 0 : index
        %c0_36 = arith.constant 0 : index
        %44 = vector.load %arg10[%c0_35, %c0_36] : memref<128x128xf32, #tpu.memory_space<vmem>>, vector<128x128xf32>
        tpu.vector_store %arg10[%c0_35, %c0_36], %43 {strides = array<i32>} : memref<128x128xf32, #tpu.memory_space<vmem>>, vector<128x128xf32>,
      } else {
      }
      %c0 = arith.constant 0 : index
      %c0_4 = arith.constant 0 : index
      %9 = vector.load %arg4[%c0, %c0_4] : memref<64x32xf32, #tpu.memory_space<vmem>>, vector<64x32xf32>
      %c0_5 = arith.constant 0 : index
      %c0_6 = arith.constant 0 : index
      %10 = vector.load %arg5[%c0_5, %c0_6] : memref<32x128xf32, #tpu.memory_space<vmem>>, vector<32x128xf32>
      %cst = arith.constant dense<0.000000e+00> : vector<64x128xf32>
      %11 = tpu.matmul %9, %10, %cst {dimension_numbers = #tpu.dot_dimension_numbers<[1], [0], [0], [1], [0, 0, 1, 1], [], []>, precision = #tpu.contract_precision<fp32>} : vector<64x32xf32>, vector<32x128xf32>, vector<64x128xf32> -> vector<64x128xf32>
      %12 = vector.shape_cast %11 : vector<64x128xf32> to vector<8x8x128xf32>
      %c0_7 = arith.constant 0 : index
      %c0_8 = arith.constant 0 : index
      %c0_9 = arith.constant 0 : index
      %13 = vector.load %arg3[%c0_7, %c0_8, %c0_9] : memref<8x8x128xf32, #tpu.memory_space<vmem>>, vector<8x8x128xf32>
      %14 = arith.addf %12, %13 : vector<8x8x128xf32>
      %c0_10 = arith.constant 0 : index
      %c0_11 = arith.constant 0 : index
      %15 = vector.load %arg2[%c0_10, %c0_11] : memref<8x128xf32, #tpu.memory_space<vmem>>, vector<8x128xf32>
      %16 = vector.shape_cast %15 : vector<8x128xf32> to vector<8x1x128xf32>
      %17 = vector.broadcast %16 : vector<8x1x128xf32> to vector<8x8x128xf32>
      %18 = arith.addf %14, %17 : vector<8x8x128xf32>
      %19 = vector.shape_cast %18 : vector<8x8x128xf32> to vector<64x128xf32>
      %c0_12 = arith.constant 0 : index
      %c0_13 = arith.constant 0 : index
      %20 = vector.load %arg8[%c0_12, %c0_13] : memref<1x128xf32, #tpu.memory_space<vmem>>, vector<1x128xf32>
      %cst_14 = arith.constant dense<0.000000e+00> : vector<128xf32>
      %21 = vector.multi_reduction <add>, %19, %cst_14 [0] : vector<64x128xf32> to vector<128xf32>
      %22 = vector.shape_cast %21 : vector<128xf32> to vector<1x128xf32>
      %23 = arith.addf %20, %22 : vector<1x128xf32>
      %c0_15 = arith.constant 0 : index
      %c0_16 = arith.constant 0 : index
      %24 = vector.load %arg8[%c0_15, %c0_16] : memref<1x128xf32, #tpu.memory_space<vmem>>, vector<1x128xf32>
      tpu.vector_store %arg8[%c0_15, %c0_16], %23 {strides = array<i32>} : memref<1x128xf32, #tpu.memory_space<vmem>>, vector<1x128xf32>,
      %c0_17 = arith.constant 0 : index
      %c0_18 = arith.constant 0 : index
      %25 = vector.load %arg9[%c0_17, %c0_18] : memref<1x128xf32, #tpu.memory_space<vmem>>, vector<1x128xf32>
      %26 = arith.mulf %19, %19 : vector<64x128xf32>
      %cst_19 = arith.constant dense<0.000000e+00> : vector<128xf32>
      %27 = vector.multi_reduction <add>, %26, %cst_19 [0] : vector<64x128xf32> to vector<128xf32>
      %28 = vector.shape_cast %27 : vector<128xf32> to vector<1x128xf32>
      %29 = arith.addf %25, %28 : vector<1x128xf32>
      %c0_20 = arith.constant 0 : index
      %c0_21 = arith.constant 0 : index
      %30 = vector.load %arg9[%c0_20, %c0_21] : memref<1x128xf32, #tpu.memory_space<vmem>>, vector<1x128xf32>
      tpu.vector_store %arg9[%c0_20, %c0_21], %29 {strides = array<i32>} : memref<1x128xf32, #tpu.memory_space<vmem>>, vector<1x128xf32>,
      %c0_22 = arith.constant 0 : index
      %c0_23 = arith.constant 0 : index
      %31 = vector.load %arg10[%c0_22, %c0_23] : memref<128x128xf32, #tpu.memory_space<vmem>>, vector<128x128xf32>
      %32 = tpu.transpose %19, [1, 0] : vector<64x128xf32> -> vector<128x64xf32>
      %cst_24 = arith.constant dense<0.000000e+00> : vector<128x128xf32>
      %33 = tpu.matmul %32, %19, %cst_24 {dimension_numbers = #tpu.dot_dimension_numbers<[1], [0], [0], [1], [0, 0, 1, 1], [], []>, precision = #tpu.contract_precision<fp32>} : vector<128x64xf32>, vector<64x128xf32>, vector<128x128xf32> -> vector<128x128xf32>
      %34 = arith.addf %31, %33 : vector<128x128xf32>
      %c0_25 = arith.constant 0 : index
      %c0_26 = arith.constant 0 : index
      %35 = vector.load %arg10[%c0_25, %c0_26] : memref<128x128xf32, #tpu.memory_space<vmem>>, vector<128x128xf32>
      tpu.vector_store %arg10[%c0_25, %c0_26], %34 {strides = array<i32>} : memref<128x128xf32, #tpu.memory_space<vmem>>, vector<128x128xf32>,
      %c3_i32 = arith.constant 3 : i32
      %36 = arith.cmpi eq, %arg1, %c3_i32 : i32
      %37 = arith.extui %36 : i1 to i32
      %c0_i32_27 = arith.constant 0 : i32
      %38 = arith.cmpi ne, %37, %c0_i32_27 : i32
      scf.if %38 {
        %c0_28 = arith.constant 0 : index
        %c0_29 = arith.constant 0 : index
        %39 = vector.load %arg8[%c0_28, %c0_29] : memref<1x128xf32, #tpu.memory_space<vmem>>, vector<1x128xf32>
        %cst_30 = arith.constant 2.560000e+02 : f32
        %40 = vector.broadcast %cst_30 : f32 to vector<1x128xf32>
        %41 = arith.divf %39, %40 : vector<1x128xf32>
        %c0_31 = arith.constant 0 : index
        %c0_32 = arith.constant 0 : index
        %42 = vector.load %arg9[%c0_31, %c0_32] : memref<1x128xf32, #tpu.memory_space<vmem>>, vector<1x128xf32>
        %cst_33 = arith.constant 2.560000e+02 : f32
        %43 = vector.broadcast %cst_33 : f32 to vector<1x128xf32>
        %44 = arith.divf %42, %43 : vector<1x128xf32>
        %45 = arith.mulf %41, %41 : vector<1x128xf32>
        %46 = arith.subf %44, %45 : vector<1x128xf32>
        %cst_34 = arith.constant 0.000000e+00 : f32
        %47 = vector.broadcast %cst_34 : f32 to vector<1x128xf32>
        %48 = arith.maximumf %46, %47 : vector<1x128xf32>
        %cst_35 = arith.constant 9.99999974E-6 : f32
        %49 = vector.broadcast %cst_35 : f32 to vector<1x128xf32>
        %50 = arith.addf %48, %49 : vector<1x128xf32>
        %51 = math.rsqrt %50 : vector<1x128xf32>
        %c0_36 = arith.constant 0 : index
        %c0_37 = arith.constant 0 : index
        %52 = vector.load %arg11[%c0_36, %c0_37] : memref<1x128xf32, #tpu.memory_space<vmem>>, vector<1x128xf32>
        tpu.vector_store %arg11[%c0_36, %c0_37], %41 {strides = array<i32>} : memref<1x128xf32, #tpu.memory_space<vmem>>, vector<1x128xf32>,
        %c0_38 = arith.constant 0 : index
        %c0_39 = arith.constant 0 : index
        %53 = vector.load %arg12[%c0_38, %c0_39] : memref<1x128xf32, #tpu.memory_space<vmem>>, vector<1x128xf32>
        tpu.vector_store %arg12[%c0_38, %c0_39], %51 {strides = array<i32>} : memref<1x128xf32, #tpu.memory_space<vmem>>, vector<1x128xf32>,
        %c0_40 = arith.constant 0 : index
        %c0_41 = arith.constant 0 : index
        %54 = vector.load %arg6[%c0_40, %c0_41] : memref<1x128xf32, #tpu.memory_space<vmem>>, vector<1x128xf32>
        %55 = arith.mulf %54, %51 : vector<1x128xf32>
        %c0_42 = arith.constant 0 : index
        %c0_43 = arith.constant 0 : index
        %56 = vector.load %arg8[%c0_42, %c0_43] : memref<1x128xf32, #tpu.memory_space<vmem>>, vector<1x128xf32>
        %57 = arith.mulf %56, %55 : vector<1x128xf32>
        %58 = vector.shape_cast %57 : vector<1x128xf32> to vector<1x1x128xf32>
        %cst_44 = arith.constant dense<0.000000e+00> : vector<1xf32>
        %59 = vector.multi_reduction <add>, %58, %cst_44 [1, 2] : vector<1x1x128xf32> to vector<1xf32>
        %60 = vector.shape_cast %59 : vector<1xf32> to vector<1x1x1xf32>
        %61 = vector.extract %60[0, 0, 0] : f32 from vector<1x1x1xf32>
        %62 = vector.broadcast %61 : f32 to vector<1x1xf32>
        %c0_45 = arith.constant 0 : index
        %c0_46 = arith.constant 0 : index
        %63 = vector.load %arg10[%c0_45, %c0_46] : memref<128x128xf32, #tpu.memory_space<vmem>>, vector<128x128xf32>
        %cst_47 = arith.constant dense<0.000000e+00> : vector<1x128xf32>
        %64 = tpu.matmul %55, %63, %cst_47 {dimension_numbers = #tpu.dot_dimension_numbers<[1], [0], [0], [1], [0, 0, 1, 1], [], []>, precision = #tpu.contract_precision<fp32>} : vector<1x128xf32>, vector<128x128xf32>, vector<1x128xf32> -> vector<1x128xf32>
        %65 = arith.mulf %64, %55 : vector<1x128xf32>
        %66 = vector.shape_cast %65 : vector<1x128xf32> to vector<1x1x128xf32>
        %cst_48 = arith.constant dense<0.000000e+00> : vector<1xf32>
        %67 = vector.multi_reduction <add>, %66, %cst_48 [1, 2] : vector<1x1x128xf32> to vector<1xf32>
        %68 = vector.shape_cast %67 : vector<1xf32> to vector<1x1x1xf32>
        %69 = vector.extract %68[0, 0, 0] : f32 from vector<1x1x1xf32>
        %70 = vector.broadcast %69 : f32 to vector<1x1xf32>
        %71 = arith.mulf %41, %55 : vector<1x128xf32>
        %72 = vector.shape_cast %71 : vector<1x128xf32> to vector<1x1x128xf32>
        %cst_49 = arith.constant dense<0.000000e+00> : vector<1xf32>
        %73 = vector.multi_reduction <add>, %72, %cst_49 [1, 2] : vector<1x1x128xf32> to vector<1xf32>
        %74 = vector.shape_cast %73 : vector<1xf32> to vector<1x1x1xf32>
        %75 = vector.extract %74[0, 0, 0] : f32 from vector<1x1x1xf32>
        %76 = vector.broadcast %75 : f32 to vector<1x1xf32>
        %cst_50 = arith.constant 2.560000e+02 : f32
        %77 = vector.broadcast %cst_50 : f32 to vector<1x1xf32>
        %78 = arith.mulf %77, %76 : vector<1x1xf32>
        %79 = arith.subf %62, %78 : vector<1x1xf32>
        %cst_51 = arith.constant 2.000000e+00 : f32
        %80 = vector.broadcast %cst_51 : f32 to vector<1x1xf32>
        %81 = arith.mulf %80, %76 : vector<1x1xf32>
        %82 = arith.mulf %81, %62 : vector<1x1xf32>
        %83 = arith.subf %70, %82 : vector<1x1xf32>
        %cst_52 = arith.constant 2.560000e+02 : f32
        %84 = vector.broadcast %cst_52 : f32 to vector<1x1xf32>
        %85 = arith.mulf %84, %76 : vector<1x1xf32>
        %86 = arith.mulf %85, %76 : vector<1x1xf32>
        %87 = arith.addf %83, %86 : vector<1x1xf32>
        %cst_53 = arith.constant 2.560000e+02 : f32
        %88 = vector.broadcast %cst_53 : f32 to vector<1x1xf32>
        %89 = arith.divf %79, %88 : vector<1x1xf32>
        %cst_54 = arith.constant 2.560000e+02 : f32
        %90 = vector.broadcast %cst_54 : f32 to vector<1x1xf32>
        %91 = arith.divf %87, %90 : vector<1x1xf32>
        %92 = arith.mulf %89, %89 : vector<1x1xf32>
        %93 = arith.subf %91, %92 : vector<1x1xf32>
        %cst_55 = arith.constant 0.000000e+00 : f32
        %94 = vector.broadcast %cst_55 : f32 to vector<1x1xf32>
        %95 = arith.maximumf %93, %94 : vector<1x1xf32>
        %c0_56 = arith.constant 0 : index
        %c0_57 = arith.constant 0 : index
        %96 = vector.load %arg13[%c0_56, %c0_57] : memref<1x1xf32, #tpu.memory_space<vmem>>, vector<1x1xf32>
        tpu.vector_store %arg13[%c0_56, %c0_57], %89 {strides = array<i32>} : memref<1x1xf32, #tpu.memory_space<vmem>>, vector<1x1xf32>,
        %cst_58 = arith.constant 9.99999974E-6 : f32
        %97 = vector.broadcast %cst_58 : f32 to vector<1x1xf32>
        %98 = arith.addf %95, %97 : vector<1x1xf32>
        %99 = math.rsqrt %98 : vector<1x1xf32>
        %c0_59 = arith.constant 0 : index
        %c0_60 = arith.constant 0 : index
        %100 = vector.load %arg14[%c0_59, %c0_60] : memref<1x1xf32, #tpu.memory_space<vmem>>, vector<1x1xf32>
        tpu.vector_store %arg14[%c0_59, %c0_60], %99 {strides = array<i32>} : memref<1x1xf32, #tpu.memory_space<vmem>>, vector<1x1xf32>,
      } else {
      }
    } else {
    }
    %c1_i32 = arith.constant 1 : i32
    %3 = arith.cmpi eq, %arg0, %c1_i32 : i32
    %4 = arith.extui %3 : i1 to i32
    %c0_i32_1 = arith.constant 0 : i32
    %5 = arith.cmpi ne, %4, %c0_i32_1 : i32
    scf.if %5 {
      %c0 = arith.constant 0 : index
      %c0_2 = arith.constant 0 : index
      %6 = vector.load %arg4[%c0, %c0_2] : memref<64x32xf32, #tpu.memory_space<vmem>>, vector<64x32xf32>
      %c0_3 = arith.constant 0 : index
      %c0_4 = arith.constant 0 : index
      %7 = vector.load %arg5[%c0_3, %c0_4] : memref<32x128xf32, #tpu.memory_space<vmem>>, vector<32x128xf32>
      %cst = arith.constant dense<0.000000e+00> : vector<64x128xf32>
      %8 = tpu.matmul %6, %7, %cst {dimension_numbers = #tpu.dot_dimension_numbers<[1], [0], [0], [1], [0, 0, 1, 1], [], []>, precision = #tpu.contract_precision<fp32>} : vector<64x32xf32>, vector<32x128xf32>, vector<64x128xf32> -> vector<64x128xf32>
      %9 = vector.shape_cast %8 : vector<64x128xf32> to vector<8x8x128xf32>
      %c0_5 = arith.constant 0 : index
      %c0_6 = arith.constant 0 : index
      %c0_7 = arith.constant 0 : index
      %10 = vector.load %arg3[%c0_5, %c0_6, %c0_7] : memref<8x8x128xf32, #tpu.memory_space<vmem>>, vector<8x8x128xf32>
      %11 = arith.addf %9, %10 : vector<8x8x128xf32>
      %c0_8 = arith.constant 0 : index
      %c0_9 = arith.constant 0 : index
      %12 = vector.load %arg2[%c0_8, %c0_9] : memref<8x128xf32, #tpu.memory_space<vmem>>, vector<8x128xf32>
      %13 = vector.shape_cast %12 : vector<8x128xf32> to vector<8x1x128xf32>
      %14 = vector.broadcast %13 : vector<8x1x128xf32> to vector<8x8x128xf32>
      %15 = arith.addf %11, %14 : vector<8x8x128xf32>
      %c0_10 = arith.constant 0 : index
      %c0_11 = arith.constant 0 : index
      %16 = vector.load %arg11[%c0_10, %c0_11] : memref<1x128xf32, #tpu.memory_space<vmem>>, vector<1x128xf32>
      %17 = vector.shape_cast %16 : vector<1x128xf32> to vector<1x1x128xf32>
      %18 = vector.broadcast %17 : vector<1x1x128xf32> to vector<8x8x128xf32>
      %19 = arith.subf %15, %18 : vector<8x8x128xf32>
      %c0_12 = arith.constant 0 : index
      %c0_13 = arith.constant 0 : index
      %20 = vector.load %arg12[%c0_12, %c0_13] : memref<1x128xf32, #tpu.memory_space<vmem>>, vector<1x128xf32>
      %21 = vector.shape_cast %20 : vector<1x128xf32> to vector<1x1x128xf32>
      %22 = vector.broadcast %21 : vector<1x1x128xf32> to vector<8x8x128xf32>
      %23 = arith.mulf %19, %22 : vector<8x8x128xf32>
      %c0_14 = arith.constant 0 : index
      %c0_15 = arith.constant 0 : index
      %24 = vector.load %arg6[%c0_14, %c0_15] : memref<1x128xf32, #tpu.memory_space<vmem>>, vector<1x128xf32>
      %25 = vector.shape_cast %24 : vector<1x128xf32> to vector<1x1x128xf32>
      %26 = vector.broadcast %25 : vector<1x1x128xf32> to vector<8x8x128xf32>
      %27 = arith.mulf %23, %26 : vector<8x8x128xf32>
      %cst_16 = arith.constant dense<0.000000e+00> : vector<8x8xf32>
      %28 = vector.multi_reduction <add>, %27, %cst_16 [2] : vector<8x8x128xf32> to vector<8x8xf32>
      %c0_17 = arith.constant 0 : index
      %c0_18 = arith.constant 0 : index
      %29 = vector.load %arg13[%c0_17, %c0_18] : memref<1x1xf32, #tpu.memory_space<vmem>>, vector<1x1xf32>
      %30 = vector.broadcast %29 : vector<1x1xf32> to vector<8x8xf32>
      %31 = arith.subf %28, %30 : vector<8x8xf32>
      %c0_19 = arith.constant 0 : index
      %c0_20 = arith.constant 0 : index
      %32 = vector.load %arg14[%c0_19, %c0_20] : memref<1x1xf32, #tpu.memory_space<vmem>>, vector<1x1xf32>
      %33 = vector.broadcast %32 : vector<1x1xf32> to vector<8x8xf32>
      %34 = arith.mulf %31, %33 : vector<8x8xf32>
      %cst_21 = arith.constant 0.000000e+00 : f32
      %35 = vector.broadcast %cst_21 : f32 to vector<8x8xf32>
      %36 = arith.cmpf ogt, %34, %35 : vector<8x8xf32>
      %cst_22 = arith.constant 0.00999999977 : f32
      %37 = vector.broadcast %cst_22 : f32 to vector<8x8xf32>
      %38 = arith.mulf %37, %34 : vector<8x8xf32>
      %39 = arith.select %36, %34, %38 : vector<8x8xi1>, vector<8x8xf32>
      %cst_23 = arith.constant dense<0xFF800000> : vector<8xf32>
      %40 = vector.multi_reduction <maximumf>, %39, %cst_23 [1] : vector<8x8xf32> to vector<8xf32>
      %41 = vector.shape_cast %40 : vector<8xf32> to vector<8x1xf32>
      %42 = vector.broadcast %41 : vector<8x1xf32> to vector<8x8xf32>
      %43 = arith.subf %39, %42 : vector<8x8xf32>
      %44 = math.exp %43 : vector<8x8xf32>
      %cst_24 = arith.constant dense<0.000000e+00> : vector<8xf32>
      %45 = vector.multi_reduction <add>, %44, %cst_24 [1] : vector<8x8xf32> to vector<8xf32>
      %46 = vector.shape_cast %45 : vector<8xf32> to vector<8x1xf32>
      %47 = tpu.reciprocal %46 {approx = true} : vector<8x1xf32> -> vector<8x1xf32>
      %48 = vector.broadcast %47 : vector<8x1xf32> to vector<8x8xf32>
      %49 = arith.mulf %44, %48 : vector<8x8xf32>
      %50 = vector.shape_cast %49 : vector<8x8xf32> to vector<8x8x1xf32>
      %51 = vector.broadcast %50 : vector<8x8x1xf32> to vector<8x8x128xf32>
      %52 = arith.mulf %51, %23 : vector<8x8x128xf32>
      %cst_25 = arith.constant dense<0.000000e+00> : vector<8x128xf32>
      %53 = vector.multi_reduction <add>, %52, %cst_25 [1] : vector<8x8x128xf32> to vector<8x128xf32>
      %c0_26 = arith.constant 0 : index
      %c0_27 = arith.constant 0 : index
      %54 = vector.load %arg7[%c0_26, %c0_27] : memref<8x128xf32, #tpu.memory_space<vmem>>, vector<8x128xf32>
      tpu.vector_store %arg7[%c0_26, %c0_27], %53 {strides = array<i32>} : memref<8x128xf32, #tpu.memory_space<vmem>>, vector<8x128xf32>,
    } else {
    }
    return
  }
  func.func @transform_0(%arg0: i32, %arg1: i32) -> (i32, i32) {
    %c0_i32 = arith.constant 0 : i32
    %c0_i32_0 = arith.constant 0 : i32
    return %arg1, %c0_i32 : i32, i32
  }
  func.func @transform_1(%arg0: i32, %arg1: i32) -> (i32, i32, i32) {
    %c0_i32 = arith.constant 0 : i32
    %c0_i32_0 = arith.constant 0 : i32
    %c0_i32_1 = arith.constant 0 : i32
    return %arg1, %c0_i32, %c0_i32_0 : i32, i32, i32
  }
  func.func @transform_2(%arg0: i32, %arg1: i32) -> (i32, i32) {
    %c0_i32 = arith.constant 0 : i32
    %c0_i32_0 = arith.constant 0 : i32
    return %arg1, %c0_i32 : i32, i32
  }
  func.func @transform_3(%arg0: i32, %arg1: i32) -> (i32, i32) {
    %c0_i32 = arith.constant 0 : i32
    %c0_i32_0 = arith.constant 0 : i32
    %c0_i32_1 = arith.constant 0 : i32
    return %c0_i32, %c0_i32_0 : i32, i32
  }
  func.func @transform_4(%arg0: i32, %arg1: i32) -> (i32, i32) {
    %c0_i32 = arith.constant 0 : i32
    %c0_i32_0 = arith.constant 0 : i32
    %c0_i32_1 = arith.constant 0 : i32
    return %c0_i32, %c0_i32_0 : i32, i32
  }
  func.func @transform_5(%arg0: i32, %arg1: i32) -> (i32, i32) {
    %0 = arith.muli %arg1, %arg0 : i32
    %c0_i32 = arith.constant 0 : i32
    %c0_i32_0 = arith.constant 0 : i32
    return %0, %c0_i32 : i32, i32
  }
}

</mosaic_0001>

<bundles_post_ra>
// kernel: tpu_custom_call.1
= control target key start
LH: loop header
LB: loop body
LE: loop exit
PB: predicated region body
PF: predicated region fallthrough
CT: control target
= control target key end

     0   :  { %10 = vsyncpa [#allocation10], 0  ;;  %s8094_s0 = inlined_call_operand.vmem [shape: f32[32,128], index: 0, kind: input, shape index: {}]   ;;  %s8095_s1 = inlined_call_operand.vmem [shape: f32[32,8,128], index: 1, kind: input, shape index: {}]   ;;  %s8096_s2 = inlined_call_operand.vmem [shape: f32[256,32], index: 2, kind: input, shape index: {}]   ;;  %s8097_s3 = inlined_call_operand.vmem [shape: f32[32,128], index: 3, kind: input, shape index: {}]   ;;  %s8098_s4 = inlined_call_operand.vmem [shape: f32[1,128], index: 4, kind: input, shape index: {}]   ;;  %s8099_s5 = inlined_call_operand.hbm [shape: f32[32,128], index: 5, kind: output, shape index: {}]  }
   0x1   :  { %12 = vsyncpa [#allocation10 + $0x1], 0  ;;  %s6722_s18 = smov 0   ;;  %s6724_s19 = smov 0  }
   0x2   :  { %s6726_s20 = smov 0   ;;  %s6728_s21 = smov 0  }
   0x3   :  { %s6730_s22 = smov 0   ;;  %s6732_s23 = smov 0  }
   0x4   :  { %s6734_s24 = smov 0   ;;  %s6736_s25 = smov 0  }
   0x5 LB: > { %8104 = sst [smem:[#allocation12_spill]] %s6678_s24  ;;  %s4860_s26 = sadd.s32 4294967295, %s6682_s25   ;;  %s6682_s25 = sphi %s6736_s25, %s18_s25   ;;  %s6678_s24 = sphi %s6734_s24, %s8112_s24   ;;  %s6674_s23 = sphi %s6732_s23, %s8117_s23   ;;  %s6670_s22 = sphi %s6730_s22, %s8110_s22   ;;  %s6666_s21 = sphi %s6728_s21, %s8116_s21   ;;  %s6662_s20 = sphi %s6726_s20, %s8115_s20   ;;  %s6658_s19 = sphi %s6724_s19, %s8114_s19   ;;  %s6654_s18 = sphi %s6722_s18, %s8113_s18  }
   0x6   : > { %s4861_s27 = sadd.s32 4294967294, %s6682_s25   ;;  %s27_s28 = sadd.s32 1, %s6674_s23 }
   0x7   : > { %p28_p0 = scmp.ge.s32.totalorder %s27_s28, 4  ;;  %s30_s29 = sadd.s32 1, %s6678_s24 }
   0x8   : > { %s154_s30 = smul.u32 %s6674_s23, %s6678_s24  ;;  %p169_p1 = scmp.ne.s32.totalorder %s6662_s20, %s6658_s19 }
   0x9   : > { %s8119_s28 = smov (%p28_p0, %s27_s28), 0  ;;  %s8121_s29 = smov (!%p28_p0, %s30_s29), %s6678_s24 }
   0xa   : > { %8105 = sst [smem:[#allocation13_spill]] %s8119_s28  ;;  %p170_p2 = scmp.eq.s32.totalorder %s4860_s26, 7 }
   0xb   : > { %p175_p3 = scmp.ne.s32.totalorder %s6658_s19, %s6654_s18  ;;  %p32_p4 = scmp.ge.s32.totalorder %s8121_s29, 2 }
   0xc   : > { %p176_p5 = scmp.eq.s32.totalorder %s4861_s27, 7  ;;  %p6775_p6 = por %p170_p2, %p169_p1 }
   0xd   : > { %p4864_p7 = scmp.ge.s32.totalorder %s6682_s25, 1  ;;  %s8123_s29 = smov (%p32_p4, %s8121_s29), 0 }
   0xe   : > { %8107 = sst [smem:[#allocation14_spill]] %s8123_s29  ;;  %p6782_p8 = por %p176_p5, %p175_p3 }
   0xf   : > { %p225_p9 = scmp.lt.s32.totalorder %s6682_s25, 9  ;;  %s155_s8 = smul.u32 %s8123_s29, %s8119_s28 }
  0x10   : > { %s159_s10 = sadd.s32 1, %s6662_s20 }
  0x11   : > { %p226_p10 = pnand %p4864_p7, %p225_p9  ;;  %s156_s9 = ssub.s32 %s154_s30, %s155_s8 }
  0x12   : > { %p157_p11 = scmp.eq.s32.totalorder %s156_s9, 0  ;;  %s8101_s12 = sand.u32 (!%p226_p10), 1, %s6658_s19  }
  0x13   : > { %229 = sbr.rel (%p226_p10) target bundleno = 2544 (0x9f0), region = 40  ;;  %p262_p12 = scmp.lt.s32.totalorder (!%p226_p10), %s6666_s21, 3 }
  0x14   : > { %s6791_s11 = scalar_select %p157_p11, %s6662_s20, %s159_s10  }
  0x15   : > { %s6797_s13 = sshll.u32 (!%p226_p10), %s8101_s12, 3  ;;  %s4867_s14 = sshll.u32 (!%p226_p10), %s6666_s21, 3 }
  0x16   : > { %p267_p13 = scmp.lt.s32.totalorder (!%p226_p10), %s4867_s14, 31  ;;  %s261_s24 = scalar_lea.vmem (!%p226_p10), [#allocation9], %s6797_s13 }
  0x17   : > { %p4871_p0 = scmp.ne.s32.totalorder (!%p226_p10), %s6670_s22, 0 }
  0x1a   : > { %s263_s15 = scalar_select %p262_p12, %s6666_s21, 3 }
  0x1b   : > { %s8125_s14 = smov (!%p267_p13, %s4867_s14), 31  ;;  %282 = sbr.rel (%p4871_p0) target bundleno = 1420 (0x58c), region = 44 }
  0x1c   : > { %s4866_s16 = sshll.u32 %s263_s15, 3  ;;  %s4868_s30 = sshll.u32 %s8125_s14, 3 }
  0x1d   : > { %s6804_s27 = scalar_lea.vmem %s8094_s0, %s4866_s16  ;;  %s6809_s10 = scalar_lea.vmem %s8095_s1, %s4868_s30 }
  0x1e   : > { %s6814_s28 = scalar_lea.vmem %s8096_s2, %s4868_s30  ;;  %p4872_p1 = scmp.ne.s32.totalorder (!%p4871_p0), %s6666_s21, 0 }
  0x22   : > { %286 = sbr.rel (%p4872_p1) target bundleno = 44 (0x2c), region = 48  ;;  %v6684_v0 = vmov (!%p4872_p1), 0.0  }
  0x23   : > { %287 = vst [vmem:[#allocation2] sm:$0x1] (!%p4872_p1), %v6684_v0  ;;  %288 = vst [vmem:[#allocation3] sm:$0x1] (!%p4872_p1), %v6684_v0 }
  0x24   : > { %289 = vst [vmem:[#allocation4] sm:$0xff] (!%p4872_p1), %v6684_v0  ;;  %290 = vst [vmem:[#allocation4 + $0x8] sm:$0xff] (!%p4872_p1), %v6684_v0 }
  0x25   : > { %291 = vst [vmem:[#allocation4 + $0x10] sm:$0xff] (!%p4872_p1), %v6684_v0  ;;  %292 = vst [vmem:[#allocation4 + $0x18] sm:$0xff] (!%p4872_p1), %v6684_v0 }
  0x26   : > { %293 = vst [vmem:[#allocation4 + $0x20] sm:$0xff] (!%p4872_p1), %v6684_v0  ;;  %294 = vst [vmem:[#allocation4 + $0x28] sm:$0xff] (!%p4872_p1), %v6684_v0 }
  0x27   : > { %295 = vst [vmem:[#allocation4 + $0x30] sm:$0xff] (!%p4872_p1), %v6684_v0  ;;  %296 = vst [vmem:[#allocation4 + $0x38] sm:$0xff] (!%p4872_p1), %v6684_v0 }
  0x28   : > { %297 = vst [vmem:[#allocation4 + $0x40] sm:$0xff] (!%p4872_p1), %v6684_v0  ;;  %298 = vst [vmem:[#allocation4 + $0x48] sm:$0xff] (!%p4872_p1), %v6684_v0 }
  0x29   : > { %299 = vst [vmem:[#allocation4 + $0x50] sm:$0xff] %v6684_v0  ;;  %300 = vst [vmem:[#allocation4 + $0x58] sm:$0xff] %v6684_v0 }
  0x2a   : > { %301 = vst [vmem:[#allocation4 + $0x60] sm:$0xff] %v6684_v0  ;;  %302 = vst [vmem:[#allocation4 + $0x68] sm:$0xff] %v6684_v0 }
  0x2b   : > { %303 = vst [vmem:[#allocation4 + $0x70] sm:$0xff] %v6684_v0  ;;  %304 = vst [vmem:[#allocation4 + $0x78] sm:$0xff] %v6684_v0 }
  0x2c PF: > { %v313_v1 = vld [vmem:[%s8097_s3] sm:$0xff]  ;;  %v314_v2 = vld [vmem:[%s8097_s3 + $0x8] sm:$0xff]  ;;  %v315_v3 = vld [vmem:[%s8097_s3 + $0x10] sm:$0xff]  ;;  %vm317_vm0 = vcmask 261120   ;;  %vm1331_vm1 = vcmask 523264   ;;  %p4873_p2 = scmp.ne.s32.totalorder %s6666_s21, 3 }
  0x2d   : > { %v343_v4 = vand.u32 4294901760, %v313_v1  ;;  %v346_v5 = vand.u32 4294901760, %v314_v2  ;;  %v316_v6 = vld [vmem:[%s8097_s3 + $0x18] sm:$0xff]  ;;  %v349_v7 = vand.u32 4294901760, %v315_v3  ;;  %v305_v8 = vld [vmem:[%s6814_s28] sm:$0xff]  ;;  %v306_v9 = vld [vmem:[%s6814_s28 + $0x8] sm:$0xff] }
  0x2e   : > { %v352_v10 = vand.u32 4294901760, %v316_v6  ;;  %v319_v11 = vsel %vm317_vm0, %v305_v8, 0  ;;  %v322_v12 = vsel %vm317_vm0, %v306_v9, 0  ;;  %v307_v13 = vld [vmem:[%s6814_s28 + $0x10] sm:$0xff]  ;;  %v308_v14 = vld [vmem:[%s6814_s28 + $0x18] sm:$0xff]  ;;  %v309_v19 = vld [vmem:[%s6814_s28 + $0x20] sm:$0xff] }
  0x2f   : > { %v6837_v15 = vpack.c.bf16 %v346_v5, %v343_v4  ;;  %v6839_v16 = vand.u32 4294901760, %v319_v11  ;;  %v6841_v17 = vand.u32 4294901760, %v322_v12  ;;  %v6843_v18 = vsub.f32 %v313_v1, %v343_v4  ;;  %v310_v20 = vld [vmem:[%s6814_s28 + $0x28] sm:$0xff]  ;;  %v311_v49 = vld [vmem:[%s6814_s28 + $0x30] sm:$0xff]  ;;  %v312_v58 = vld [vmem:[%s6814_s28 + $0x38] sm:$0xff] }
  0x30   : > { %v6847_v21 = vpack.c.bf16 %v352_v10, %v349_v7  ;;  %v6849_v22 = vsub.f32 %v314_v2, %v346_v5  ;;  %v325_v23 = vsel %vm317_vm0, %v307_v13, 0  ;;  %v328_v24 = vsel %vm317_vm0, %v308_v14, 0 }
  0x31   : > { %5965 = vmatprep.subr.bf16.mxu0 %v6837_v15  ;;  %v6855_v25 = vsub.f32 %v319_v11, %v6839_v16  ;;  %v6858_v26 = vsub.f32 %v322_v12, %v6841_v17  ;;  %v494_v27 = vand.u32 4294901760, %v6843_v18  ;;  %v6861_v28 = vand.u32 4294901760, %v325_v23 }
  0x32   : > { %5967 = vmatpush3.bf16.msra.mxu0 %v6837_v15  ;;  %v501_v29 = vand.u32 4294901760, %v6849_v22  ;;  %v6865_v30 = vand.u32 4294901760, %v328_v24  ;;  %v331_v31 = vsel %vm317_vm0, %v309_v19, 0  ;;  %v334_v32 = vsel %vm317_vm0, %v310_v20, 0 }
  0x33   : > { %5969 = vmatprep.subr.bf16.mxu0 %v6847_v21  ;;  %v413_v33 = vand.u32 4294901760, %v6855_v25  ;;  %v423_v34 = vand.u32 4294901760, %v6858_v26  ;;  %v495_v35 = vsub.f32 %v6843_v18, %v494_v27  ;;  %v6876_v36 = vsub.f32 %v325_v23, %v6861_v28 }
  0x34   : > { %v502_v37 = vsub.f32 %v6849_v22, %v501_v29  ;;  %v6882_v38 = vsub.f32 %v328_v24, %v6865_v30  ;;  %v6884_v39 = vand.u32 4294901760, %v331_v31  ;;  %v6886_v40 = vand.u32 4294901760, %v334_v32 }
  0x35   : > { %v414_v41 = vsub.f32 %v6855_v25, %v413_v33  ;;  %v424_v42 = vsub.f32 %v6858_v26, %v423_v34  ;;  %v496_v43 = vand.u32 4294901760, %v495_v35  ;;  %v433_v44 = vand.u32 4294901760, %v6876_v36 }
  0x36   : > { %5971 = vmatpush3.bf16.msra.mxu0 %v6847_v21  ;;  %v503_v45 = vand.u32 4294901760, %v502_v37  ;;  %v443_v46 = vand.u32 4294901760, %v6882_v38  ;;  %v6898_v47 = vsub.f32 %v331_v31, %v6884_v39  ;;  %v6901_v48 = vsub.f32 %v334_v32, %v6886_v40 }
  0x37   : > { %v415_v50 = vand.u32 4294901760, %v414_v41  ;;  %v425_v51 = vand.u32 4294901760, %v424_v42  ;;  %v434_v52 = vsub.f32 %v6876_v36, %v433_v44  ;;  %v6907_v53 = vsub.f32 %v315_v3, %v349_v7  ;;  %v1128_v42 = vld [vmem:[%s6809_s10] sm:$0xff] }
  0x38   : > { %v5972_v54 = vpack.c.bf16 %v503_v45, %v496_v43  ;;  %v444_v55 = vsub.f32 %v6882_v38, %v443_v46  ;;  %v453_v56 = vand.u32 4294901760, %v6898_v47  ;;  %v463_v57 = vand.u32 4294901760, %v6901_v48 }
  0x39   : > { %5282 = vmatprep.mubr.f32.mxu0 %v415_v50  ;;  %v435_v59 = vand.u32 4294901760, %v434_v52  ;;  %v508_v60 = vand.u32 4294901760, %v6907_v53  ;;  %v6916_v61 = vsub.f32 %v316_v6, %v352_v10  ;;  %v337_v62 = vsel %vm317_vm0, %v311_v49, 0  ;;  %v1131_v52 = vld [vmem:[%s6809_s10 + $0x18] sm:$0xff] }
  0x3a   : > { %5283 = vmatmul.mubr.f32.vlgmr.msra.gmra.mrb[0].mxu0 %v425_v51  ;;  %5973 = vmatprep.subr.bf16.mxu0 %v5972_v54  ;;  %v445_v63 = vand.u32 4294901760, %v444_v55  ;;  %v454_v0 = vsub.f32 %v6898_v47, %v453_v56  ;;  %v464_v1 = vsub.f32 %v6901_v48, %v463_v57  ;;  %v6925_v2 = vand.u32 4294901760, %v337_v62  ;;  %v1130_v55 = vld [vmem:[%s6809_s10 + $0x10] sm:$0xff] }
  0x3b   : > { %5975 = vmatpush3.bf16.msra.mxu0 %v5972_v54  ;;  %5285 = vmatprep.mubr.f32.mxu0 %v435_v59  ;;  %v509_v3 = vsub.f32 %v6907_v53, %v508_v60  ;;  %v515_v4 = vand.u32 4294901760, %v6916_v61  ;;  %v340_v5 = vsel %vm317_vm0, %v312_v58, 0  ;;  %v5980_v24 = vpack.c.bf16 %v6849_v22, %v6843_v18 }
  0x3c   : > { %v455_v6 = vand.u32 4294901760, %v454_v0  ;;  %v472_v7 = vsub.f32 %v337_v62, %v6925_v2  ;;  %v6933_v8 = vand.u32 4294901760, %v340_v5  ;;  %v465_v11 = vand.u32 4294901760, %v464_v1 }
  0x3d   : > { %v510_v9 = vand.u32 4294901760, %v509_v3  ;;  %v516_v10 = vsub.f32 %v6916_v61, %v515_v4  ;;  %v5984_v37 = vpack.c.bf16 %v6916_v61, %v6907_v53  ;;  %v5996_v41 = vpack.c.bf16 %v501_v29, %v494_v27 }
  0x3e   : > { %5286 = vmatmul.mubr.f32.gmra.mrb[2].mxu0 %v445_v63  ;;  %v473_v12 = vand.u32 4294901760, %v472_v7  ;;  %v482_v13 = vsub.f32 %v340_v5, %v6933_v8  ;;  %v6000_v18 = vpack.c.bf16 %v515_v4, %v508_v60  ;;  %v1150_v22 = vlaneseq }
  0x3f   : > { %5288 = vmatprep.mubr.f32.mxu0 %v455_v6  ;;  %v517_v14 = vand.u32 4294901760, %v516_v10  ;;  %vm6687_vm2 = vmmov (!%p4873_p2), 0   ;;  %vm2614_vm3 = vcmask (!%p4873_p2), 1040384   ;;  %vm3319_vm4 = vcmask (!%p4873_p2), 0  }
  0x40   : > { %v474_v19 = vsub.f32 %v472_v7, %v473_v12  ;;  %v483_v20 = vand.u32 4294901760, %v482_v13 }
  0x41   : > { %v5976_v23 = vpack.c.bf16 %v517_v14, %v510_v9  ;;  %v1132_v9 = vld [vmem:[%s6809_s10 + $0x20] sm:$0xff] }
  0x42   : > { %5289 = vmatmul.mubr.f32.gmra.mrb[4].mxu0 %v465_v11  ;;  %v475_v31 = vand.u32 4294901760, %v474_v19  ;;  %v484_v32 = vsub.f32 %v482_v13, %v483_v20 }
  0x43   : > { %5977 = vmatprep.subr.bf16.mxu0 %v5976_v23 }
  0x44   : > { %5979 = vmatpush3.bf16.msra.mxu0 %v5976_v23  ;;  %5291 = vmatprep.mubr.f32.mxu0 %v475_v31  ;;  %v485_v35 = vand.u32 4294901760, %v484_v32 }
  0x45   : > { %5981 = vmatprep.subr.bf16.mxu0 %v5980_v24 }
  0x46   : > { %5292 = vmatmul.mubr.f32.gmra.mrb[6].mxu0 %v485_v35 }
  0x47   : > { %5302 = vmatprep.mubr.f32.mxu0 %v6839_v16 }
  0x4a   : > { %5303 = vmatmul.mubr.f32.vlgmr.msra.gmra.mrb[0].mxu0 %v6841_v17 }
  0x4b   : > { %5983 = vmatpush3.bf16.msra.mxu0 %v5980_v24  ;;  %5305 = vmatprep.mubr.f32.mxu0 %v6861_v28 }
  0x4c   : > { %5985 = vmatprep.subr.bf16.mxu0 %v5984_v37 }
  0x4e   : > { %5306 = vmatmul.mubr.f32.gmra.mrb[2].mxu0 %v6865_v30 }
  0x4f   : > { %5308 = vmatprep.mubr.f32.mxu0 %v6884_v39  ;;  %5987 = vmatpush3.bf16.msra.mxu0 %v5984_v37 }
  0x50   : > { %5989 = vmatprep.subr.bf16.mxu0 %v6837_v15 }
  0x52   : > { %5309 = vmatmul.mubr.f32.gmra.mrb[4].mxu0 %v6886_v40 }
  0x53   : > { %5311 = vmatprep.mubr.f32.mxu0 %v6925_v2 }
  0x56   : > { %5312 = vmatmul.mubr.f32.gmra.mrb[6].mxu0 %v6933_v8 }
  0x57   : > { %5322 = vmatprep.mubr.f32.mxu0 %v6855_v25  ;;  %v1151_v25 = vshrl.u32 %v1150_v22, 7  ;;  %v1135_v22 = vld [vmem:[%s6809_s10 + $0x38] sm:$0xff] }
  0x5a   : > { %5323 = vmatmul.mubr.f32.vlgmr.msra.gmra.mrb[0].mxu0 %v6858_v26  ;;  %v1144_v26 = vld [vmem:[%s6804_s27] sm:$0xff] }
  0x5b   : > { %5991 = vmatpush3.bf16.msra.mxu0 %v6837_v15  ;;  %5325 = vmatprep.mubr.f32.mxu0 %v6876_v36 }
  0x5c   : > { %5993 = vmatprep.subr.bf16.mxu0 %v6847_v21 }
  0x5e   : > { %5326 = vmatmul.mubr.f32.gmra.mrb[2].mxu0 %v6882_v38 }
  0x5f   : > { %5328 = vmatprep.mubr.f32.mxu0 %v6898_v47  ;;  %5995 = vmatpush3.bf16.msra.mxu0 %v6847_v21 }
  0x60   : > { %5997 = vmatprep.subr.bf16.mxu0 %v5996_v41 }
  0x62   : > { %5329 = vmatmul.mubr.f32.gmra.mrb[4].mxu0 %v6901_v48 }
  0x63   : > { %5331 = vmatprep.mubr.f32.mxu0 %v472_v7  ;;  %v1133_v7 = vld [vmem:[%s6809_s10 + $0x28] sm:$0xff] }
  0x66   : > { %5332 = vmatmul.mubr.f32.gmra.mrb[6].mxu0 %v482_v13 }
  0x67   : > { %5342 = vmatprep.mubr.f32.mxu0 %v413_v33 }
  0x6a   : > { %5343 = vmatmul.mubr.f32.vlgmr.msra.gmra.mrb[0].mxu0 %v423_v34  ;;  %v6998_v34 = vsub.s32 0, %v1151_v25 }
  0x6b   : > { %5999 = vmatpush3.bf16.msra.mxu0 %v5996_v41  ;;  %5345 = vmatprep.mubr.f32.mxu0 %v433_v44 }
  0x6c   : > { %6001 = vmatprep.subr.bf16.mxu0 %v6000_v18 }
  0x6e   : > { %5346 = vmatmul.mubr.f32.gmra.mrb[2].mxu0 %v443_v46 }
  0x6f   : > { %5348 = vmatprep.mubr.f32.mxu0 %v453_v56  ;;  %6003 = vmatpush3.bf16.msra.mxu0 %v6000_v18 }
  0x70   : > { %6005 = vmatprep.subr.bf16.mxu0 %v6837_v15 }
  0x72   : > { %5349 = vmatmul.mubr.f32.gmra.mrb[4].mxu0 %v463_v57 }
  0x73   : > { %5351 = vmatprep.mubr.f32.mxu0 %v473_v12 }
  0x76   : > { %5352 = vmatmul.mubr.f32.gmra.mrb[6].mxu0 %v483_v20 }
  0x77   : > { %5362 = vmatprep.mubr.f32.mxu0 %v6839_v16 }
  0x7a   : > { %5363 = vmatmul.mubr.f32.vlgmr.msra.gmra.mrb[0].mxu0 %v6841_v17 }
  0x7b   : > { %6007 = vmatpush3.bf16.msra.mxu0 %v6837_v15  ;;  %5365 = vmatprep.mubr.f32.mxu0 %v6861_v28  ;;  %v6685_v15 = vmov 1966171168  }
  0x7c   : > { %6009 = vmatprep.subr.bf16.mxu0 %v6847_v21 }
  0x7e   : > { %5366 = vmatmul.mubr.f32.gmra.mrb[2].mxu0 %v6865_v30 }
  0x7f   : > { %5368 = vmatprep.mubr.f32.mxu0 %v6884_v39  ;;  %6011 = vmatpush3.bf16.msra.mxu0 %v6847_v21  ;;  %v1148_v21 = vunpack.c.l.s4 %v6685_v15 }
  0x82   : > { %5369 = vmatmul.mubr.f32.gmra.mrb[4].mxu0 %v6886_v40 }
  0x83   : > { %5371 = vmatprep.mubr.f32.mxu0 %v6925_v2 }
  0x86   : > { %5372 = vmatmul.mubr.f32.gmra.mrb[6].mxu0 %v6933_v8 }
  0x87   : > { %5382 = vmatprep.mubr.f32.mxu0 %v6839_v16  ;;  %v1149_v16 = vunpack.c.0.s8 %v1148_v21 }
  0x8a   : > { %5383 = vmatmul.mubr.f32.vlgmr.msra.gmra.mrb[0].mxu0 %v6841_v17  ;;  %v1152_v17 = vsub.s32 %v1149_v16, %v1151_v25 }
  0x8b   : > { %5385 = vmatprep.mubr.f32.mxu0 %v6861_v28  ;;  %v1146_v28 = vcombine.high %v1144_v26, %v1144_v26 }
  0x8c   : > { %v1153_v27 = vrot.slane %v1144_v26, %v1152_v17 }
  0x8e   : > { %5386 = vmatmul.mubr.f32.gmra.mrb[2].mxu0 %v6865_v30  ;;  %v1161_v29 = vcombine.high %v1153_v27, %v1153_v27  ;;  %v1160_v30 = vrot.slane %v1146_v28, %v1152_v17  ;;  %v1169_v36 = vrot.slane %v1153_v27, %v1152_v17 }
  0x8f   : > { %5388 = vmatprep.mubr.f32.mxu0 %v6884_v39  ;;  %v1129_v39 = vld [vmem:[%s6809_s10 + $0x8] sm:$0xff] }
  0x90   : > { %v1183_v33 = vrot.slane %v1161_v29, %v1152_v17  ;;  %v1162_v38 = vcombine.high %v1160_v30, %v1160_v30  ;;  %v1198_v45 = vrot.slane %v1169_v36, %v6998_v34  ;;  %v1191_v46 = vcombine.high %v1169_v36, %v1169_v36 }
  0x91   : > { %v1176_v50 = vrot.slane %v1160_v30, %v1152_v17 }
  0x92   : > { %5389 = vmatmul.mubr.f32.gmra.mrb[4].mxu0 %v6886_v40  ;;  %v1202_v40 = vrot.slane %v1183_v33, %v6998_v34  ;;  %v1193_v43 = vcombine.high %v1183_v33, %v1183_v33  ;;  %v1190_v47 = vrot.slane %v1162_v38, %v1152_v17  ;;  %v1206_v60 = vrot.slane %v1191_v46, %v6998_v34 }
  0x93   : > { %5391 = vmatprep.mubr.f32.mxu0 %v6925_v2  ;;  %v1192_v57 = vcombine.high %v1176_v50, %v1176_v50  ;;  %v1214_v2 = vrot.slane %v1176_v50, %v6998_v34 }
  0x94   : > { %v1210_v54 = vrot.slane %v1193_v43, %v6998_v34  ;;  %v1194_v56 = vcombine.high %v1190_v47, %v1190_v47  ;;  %v1218_v61 = vrot.slane %v1190_v47, %v6998_v34 }
  0x95   : > { %v1222_v11 = vrot.slane %v1192_v57, %v6998_v34 }
  0x96   : > { %5392 = vmatmul.mubr.f32.gmra.mrb[6].mxu0 %v6933_v8  ;;  %v1226_v10 = vrot.slane %v1194_v56, %v6998_v34  ;;  %v1134_v34 = vld [vmem:[%s6809_s10 + $0x30] sm:$0xff] }
 0x15d   : > { %v5384_v44 = vpop.f32.mrb[0].mxu0 }
 0x15e   : > { %v1137_v48 = vadd.f32 %v5384_v44, %v1129_v39  ;;  %v1082_v49 = vpop.f32.mrb[1].mxu0 }
 0x15f   : > { %v1136_v51 = vadd.f32 %v1128_v42, %v1082_v49 }
 0x160   : > { %v1236_v53 = vadd.f32 %v1202_v40, %v1137_v48 }
 0x161   : > { %v1235_v58 = vadd.f32 %v1198_v45, %v1136_v51  ;;  %v5387_v59 = vpop.f32.mrb[2].mxu0 }
 0x162   : > { %v1261_v62 = vmul.f32 %v1236_v53, %v1236_v53  ;;  %v1384_v63 = vand.u32 4294901760, %v1236_v53  ;;  %v1139_v0 = vadd.f32 %v5387_v59, %v1131_v52  ;;  %v1094_v1 = vpop.f32.mrb[3].mxu0 }
 0x163   : > { %v1244_v3 = vadd.f32 %v1236_v53, %v1235_v58  ;;  %v1260_v4 = vmul.f32 %v1235_v58, %v1235_v58  ;;  %v1381_v5 = vand.u32 4294901760, %v1235_v58  ;;  %v1138_v6 = vadd.f32 %v1130_v55, %v1094_v1  ;;  %1299 = vxpose.xlu0.b32.start [1/8] (short) %v1235_v58, 128 }
 0x164   : > { %v1238_v8 = vadd.f32 %v1210_v54, %v1139_v0  ;;  %v7014_v12 = vsub.f32 %v1236_v53, %v1384_v63 }
 0x165   : > { %v1268_v13 = vadd.f32 %v1261_v62, %v1260_v4  ;;  %v7016_v14 = vpack.c.bf16 %v1384_v63, %v1381_v5  ;;  %v1237_v19 = vadd.f32 %v1206_v60, %v1138_v6  ;;  %v5390_v20 = vpop.f32.mrb[4].mxu0  ;;  %v7018_v23 = vsub.f32 %v1235_v58, %v1381_v5 }
 0x166   : > { %v1263_v24 = vmul.f32 %v1238_v8, %v1238_v8  ;;  %v1390_v31 = vand.u32 4294901760, %v1238_v8  ;;  %v1141_v32 = vadd.f32 %v5390_v20, %v1133_v7  ;;  %v1106_v35 = vpop.f32.mrb[5].mxu0  ;;  %v1623_v37 = vand.u32 4294901760, %v7014_v12 }
 0x167   : > { %v1245_v41 = vadd.f32 %v1244_v3, %v1237_v19  ;;  %v1262_v18 = vmul.f32 %v1237_v19, %v1237_v19  ;;  %v1387_v15 = vand.u32 4294901760, %v1237_v19  ;;  %v1140_v21 = vadd.f32 %v1132_v9, %v1106_v35  ;;  %1300 = vxpose.xlu0.b32.cont [2/8] (short) %v1236_v53, 128  ;;  %6013 = vmatprep.subr.bf16.mxu0 %v7016_v14 }
 0x168   : > { %v7023_v16 = vadd.f32 %v1218_v61, %v1141_v32  ;;  %6015 = vmatpush3.bf16.msra.mxu0 %v7016_v14  ;;  %v1616_v25 = vand.u32 4294901760, %v7018_v23  ;;  %v1624_v17 = vsub.f32 %v7014_v12, %v1623_v37  ;;  %v7030_v26 = vsub.f32 %v1238_v8, %v1390_v31 }
 0x169   : > { %v1269_v27 = vadd.f32 %v1268_v13, %v1262_v18  ;;  %v7032_v28 = vpack.c.bf16 %v1390_v31, %v1387_v15  ;;  %v1239_v29 = vadd.f32 %v1214_v2, %v1140_v21  ;;  %v1246_v30 = vadd.f32 %v1245_v41, %v1238_v8  ;;  %v5393_v33 = vpop.f32.mrb[6].mxu0 }
 0x16a   : > { %v1265_v36 = vmul.f32 %v7023_v16, %v7023_v16  ;;  %v1396_v38 = vand.u32 4294901760, %v7023_v16  ;;  %v1143_v39 = vadd.f32 %v5393_v33, %v1135_v22  ;;  %v1118_v40 = vpop.f32.mrb[7].mxu0  ;;  %v1617_v42 = vsub.f32 %v7018_v23, %v1616_v25 }
 0x16b   : > { %v1247_v43 = vadd.f32 %v1246_v30, %v1239_v29  ;;  %v1264_v44 = vmul.f32 %v1239_v29, %v1239_v29  ;;  %v1270_v45 = vadd.f32 %v1269_v27, %v1263_v24  ;;  %v1393_v46 = vand.u32 4294901760, %v1239_v29  ;;  %1301 = vxpose.xlu0.b32.cont [3/8] (short) %v1237_v19, 128  ;;  %6017 = vmatprep.subr.bf16.mxu0 %v7032_v28 }
 0x16c   : > { %v7042_v47 = vadd.f32 %v1226_v10, %v1143_v39  ;;  %v1142_v48 = vadd.f32 %v1134_v34, %v1118_v40  ;;  %6019 = vmatpush3.bf16.msra.mxu0 %v7032_v28  ;;  %v1618_v49 = vand.u32 4294901760, %v1617_v42  ;;  %v1625_v50 = vand.u32 4294901760, %v1624_v17 }
 0x16d   : > { %v1271_v51 = vadd.f32 %v1270_v45, %v1264_v44  ;;  %v7045_v52 = vpack.c.bf16 %v1396_v38, %v1393_v46  ;;  %v1248_v53 = vadd.f32 %v1247_v43, %v7023_v16  ;;  %v1629_v54 = vsub.f32 %v1237_v19, %v1387_v15 }
 0x16e   : > { %v1267_v55 = vmul.f32 %v7042_v47, %v7042_v47  ;;  %v1402_v56 = vand.u32 4294901760, %v7042_v47  ;;  %v1241_v57 = vadd.f32 %v1222_v11, %v1142_v48  ;;  %v6028_v58 = vpack.c.bf16 %v1625_v50, %v1618_v49 }
 0x16f   : > { %v1272_v59 = vadd.f32 %v1271_v51, %v1265_v36  ;;  %1302 = vxpose.xlu0.b32.cont [4/8] (short) %v1238_v8, 128  ;;  %6021 = vmatprep.subr.bf16.mxu0 %v7045_v52  ;;  %v1630_v60 = vand.u32 4294901760, %v1629_v54  ;;  %v1637_v61 = vand.u32 4294901760, %v7030_v26  ;;  %v1643_v62 = vsub.f32 %v1239_v29, %v1393_v46 }
 0x170   : > { %v1249_v63 = vadd.f32 %v1248_v53, %v1241_v57  ;;  %v1266_v0 = vmul.f32 %v1241_v57, %v1241_v57  ;;  %v1399_v1 = vand.u32 4294901760, %v1241_v57  ;;  %6029 = vmatprep.subr.bf16.mxu1 %v6028_v58  ;;  %6023 = vmatpush3.bf16.msra.mxu0 %v7045_v52  ;;  %v1650_v2 = vsub.f32 %v7023_v16, %v1396_v38  ;;  %v1243_v53 = vld [vmem:[#allocation2] sm:$0x1] }
 0x171   : > { %6031 = vmatpush3.bf16.msra.mxu1 %v6028_v58  ;;  %v1631_v3 = vsub.f32 %v1629_v54, %v1630_v60  ;;  %v1638_v4 = vsub.f32 %v7030_v26, %v1637_v61  ;;  %v1644_v5 = vand.u32 4294901760, %v1643_v62  ;;  %v1664_v6 = vsub.f32 %v7042_v47, %v1402_v56 }
 0x172   : > { %v1250_v7 = vadd.f32 %v1249_v63, %v7042_v47  ;;  %v1273_v8 = vadd.f32 %v1272_v59, %v1266_v0  ;;  %v7058_v9 = vpack.c.bf16 %v1402_v56, %v1399_v1  ;;  %v1651_v10 = vand.u32 4294901760, %v1650_v2 }
 0x173   : > { %v1632_v11 = vand.u32 4294901760, %v1631_v3  ;;  %v1639_v13 = vand.u32 4294901760, %v1638_v4  ;;  %1303 = vxpose.xlu0.b32.cont [5/8] (short) %v1239_v29, 128  ;;  %v1645_v19 = vsub.f32 %v1643_v62, %v1644_v5  ;;  %v1657_v20 = vsub.f32 %v1241_v57, %v1399_v1 }
 0x174   : > { %v1251_v24 = vrot.slane %v1250_v7, 4  ;;  %v1274_v31 = vadd.f32 %v1273_v8, %v1267_v55  ;;  %6025 = vmatprep.subr.bf16.mxu0 %v7058_v9  ;;  %v1652_v32 = vsub.f32 %v1650_v2, %v1651_v10  ;;  %v1665_v35 = vand.u32 4294901760, %v1664_v6 }
 0x175   : > { %v6032_v41 = vpack.c.bf16 %v1639_v13, %v1632_v11  ;;  %6027 = vmatpush3.bf16.msra.mxu0 %v7058_v9  ;;  %v1646_v18 = vand.u32 4294901760, %v1645_v19  ;;  %v1658_v15 = vand.u32 4294901760, %v1657_v20  ;;  %v6044_v21 = vpack.c.bf16 %v7014_v12, %v7018_v23 }
 0x176   : > { %v1252_v22 = vadd.f32 %v1251_v24, %v1250_v7  ;;  %v1275_v17 = vrot.slane %v1274_v31, 4  ;;  %6093 = vmatprep.subr.bf16.mxu0 %v7016_v14  ;;  %v1653_v27 = vand.u32 4294901760, %v1652_v32  ;;  %v1666_v29 = vsub.f32 %v1664_v6, %v1665_v35 }
 0x177   : > { %6033 = vmatprep.subr.bf16.mxu1 %v6032_v41  ;;  %1304 = vxpose.xlu0.b32.cont [6/8] (short) %v7023_v16, 128  ;;  %v1659_v30 = vsub.f32 %v1657_v20, %v1658_v15  ;;  %v6048_v33 = vpack.c.bf16 %v7030_v26, %v1629_v54  ;;  %v7067_v34 = vpack.c.bf16 %v1650_v2, %v1643_v62 }
 0x178   : > { %v1253_v36 = vrot.slane %v1252_v22, 2  ;;  %v1276_v38 = vadd.f32 %v1275_v17, %v1274_v31  ;;  %6035 = vmatpush3.bf16.msra.mxu1 %v6032_v41  ;;  %v6036_v39 = vpack.c.bf16 %v1653_v27, %v1646_v18  ;;  %v1667_v40 = vand.u32 4294901760, %v1666_v29 }
 0x179   : > { %v1660_v42 = vand.u32 4294901760, %v1659_v30  ;;  %v7069_v43 = vpack.c.bf16 %v1664_v6, %v1657_v20  ;;  %v7075_v44 = vpack.c.bf16 %v1623_v37, %v1616_v25  ;;  %v7077_v16 = vpack.c.bf16 %v1637_v61, %v1630_v60  ;;  %v1259_v37 = vld [vmem:[#allocation3] sm:$0x1] }
 0x17a   : > { %v1254_v45 = vadd.f32 %v1253_v36, %v1252_v22  ;;  %v1277_v26 = vrot.slane %v1276_v38, 2  ;;  %6037 = vmatprep.subr.bf16.mxu1 %v6036_v39  ;;  %v7079_v46 = vpack.c.bf16 %v1651_v10, %v1644_v5  ;;  %v7081_v48 = vpack.c.bf16 %v1665_v35, %v1658_v15 }
 0x17b   : > { %1305 = vxpose.xlu0.b32.cont [7/8] (short) %v1241_v57, 128  ;;  %v6040_v49 = vpack.c.bf16 %v1667_v40, %v1660_v42 }
 0x17c   : > { %v1255_v50 = vrot.slane %v1254_v45, 1  ;;  %v1278_v51 = vadd.f32 %v1277_v26, %v1276_v38  ;;  %6039 = vmatpush3.bf16.msra.mxu1 %v6036_v39 }
 0x17d   : > { %6041 = vmatprep.subr.bf16.mxu1 %v6040_v49 }
 0x17e   : > { %v1256_v23 = vadd.f32 %v1255_v50, %v1254_v45  ;;  %v1279_v12 = vrot.slane %v1278_v51, 1 }
 0x17f   : > { %1306 = vxpose.xlu0.b32.end [8/8] (short) %v7042_v47, 128 }
 0x180   : > { %v1257_v25 = vadd.f32 %v1256_v23, %v1243_v53  ;;  %v1280_v54 = vadd.f32 %v1279_v12, %v1278_v51  ;;  %6043 = vmatpush3.bf16.msra.mxu1 %v6040_v49 }
 0x181   : > { %6045 = vmatprep.subr.bf16.mxu1 %v6044_v21 }
 0x182   : > { %1258 = vst [vmem:[#allocation2] sm:$0x1] %v1257_v25  ;;  %v1281_v55 = vadd.f32 %v1280_v54, %v1259_v37 }
 0x184   : > { %1282 = vst [vmem:[#allocation3] sm:$0x1] %v1281_v55 }
 0x1e3   : > { %v1315_v56 = vpop.trf.xlu0 }
 0x1e4   : > { %v1333_v57 = vsel %vm1331_vm1, %v1315_v56, 0 }
 0x1e5   : > { %v7085_v58 = vand.u32 4294901760, %v1333_v57 }
 0x1e7   : > { %v7088_v59 = vsub.f32 %v1333_v57, %v7085_v58  ;;  %v1316_v60 = vpop.trf.xlu0  ;;  %5450 = vmatprep.mubr.f32.mxu1 %v7085_v58 }
 0x1e8   : > { %v1336_v47 = vsel %vm1331_vm1, %v1316_v60, 0 }
 0x1e9   : > { %v1455_v61 = vand.u32 4294901760, %v7088_v59  ;;  %v7093_v62 = vand.u32 4294901760, %v1336_v47 }
 0x1eb   : > { %v7096_v63 = vsub.f32 %v1336_v47, %v7093_v62  ;;  %v1317_v0 = vpop.trf.xlu0  ;;  %5451 = vmatmul.mubr.f32.vlgmr.msra.gmra.mrb[0].mxu1 %v7093_v62  ;;  %v1456_v1 = vsub.f32 %v7088_v59, %v1455_v61 }
 0x1ec   : > { %v1339_v2 = vsel %vm1331_vm1, %v1317_v0, 0  ;;  %6047 = vmatpush3.bf16.msra.mxu1 %v6044_v21 }
 0x1ed   : > { %v1465_v3 = vand.u32 4294901760, %v7096_v63  ;;  %v7104_v4 = vand.u32 4294901760, %v1339_v2  ;;  %6049 = vmatprep.subr.bf16.mxu1 %v6048_v33  ;;  %v1457_v5 = vand.u32 4294901760, %v1456_v1 }
 0x1ef   : > { %v1466_v6 = vsub.f32 %v7096_v63, %v1465_v3  ;;  %v7110_v7 = vsub.f32 %v1339_v2, %v7104_v4  ;;  %5410 = vmatprep.mubr.f32.mxu0 %v1457_v5  ;;  %v1318_v8 = vpop.trf.xlu0  ;;  %5453 = vmatprep.mubr.f32.mxu1 %v7104_v4 }
 0x1f0   : > { %v1342_v10 = vsel %vm1331_vm1, %v1318_v8, 0  ;;  %6051 = vmatpush3.bf16.msra.mxu1 %v6048_v33 }
 0x1f1   : > { %v1467_v11 = vand.u32 4294901760, %v1466_v6  ;;  %v1475_v13 = vand.u32 4294901760, %v7110_v7  ;;  %v7115_v19 = vand.u32 4294901760, %v1342_v10  ;;  %6053 = vmatprep.subr.bf16.mxu1 %v7067_v34 }
 0x1f3   : > { %v7119_v20 = vsub.f32 %v1342_v10, %v7115_v19  ;;  %v1319_v24 = vpop.trf.xlu0  ;;  %5411 = vmatmul.mubr.f32.vlgmr.msra.gmra.mrb[8].mxu0 %v1467_v11  ;;  %5454 = vmatmul.mubr.f32.gmra.mrb[2].mxu1 %v7115_v19  ;;  %v1476_v31 = vsub.f32 %v7110_v7, %v1475_v13 }
 0x1f4   : > { %v1345_v32 = vsel %vm1331_vm1, %v1319_v24, 0  ;;  %6055 = vmatpush3.bf16.msra.mxu1 %v7067_v34  ;;  %6095 = vmatpush3.bf16.msra.mxu0 %v7016_v14 }
 0x1f5   : > { %v1485_v35 = vand.u32 4294901760, %v7119_v20  ;;  %v7129_v41 = vand.u32 4294901760, %v1345_v32  ;;  %6057 = vmatprep.subr.bf16.mxu1 %v7069_v43  ;;  %6097 = vmatprep.subr.bf16.mxu0 %v7032_v28  ;;  %v1477_v18 = vand.u32 4294901760, %v1476_v31 }
 0x1f7   : > { %v7134_v15 = vsub.f32 %v1345_v32, %v7129_v41  ;;  %v1320_v21 = vpop.trf.xlu0  ;;  %5413 = vmatprep.mubr.f32.mxu0 %v1477_v18  ;;  %5456 = vmatprep.mubr.f32.mxu1 %v7129_v41  ;;  %v1486_v22 = vsub.f32 %v7119_v20, %v1485_v35 }
 0x1f8   : > { %v1348_v17 = vsel %vm1331_vm1, %v1320_v21, 0  ;;  %6059 = vmatpush3.bf16.msra.mxu1 %v7069_v43  ;;  %6099 = vmatpush3.bf16.msra.mxu0 %v7032_v28 }
 0x1f9   : > { %v1495_v27 = vand.u32 4294901760, %v7134_v15  ;;  %v7144_v29 = vand.u32 4294901760, %v1348_v17  ;;  %6061 = vmatprep.subr.bf16.mxu1 %v7016_v14  ;;  %6101 = vmatprep.subr.bf16.mxu0 %v7045_v52  ;;  %v1487_v30 = vand.u32 4294901760, %v1486_v22 }
 0x1fb   : > { %v7149_v33 = vsub.f32 %v1348_v17, %v7144_v29  ;;  %v1321_v34 = vpop.trf.xlu0  ;;  %5414 = vmatmul.mubr.f32.gmra.mrb[10].mxu0 %v1487_v30  ;;  %5457 = vmatmul.mubr.f32.gmra.mrb[4].mxu1 %v7144_v29  ;;  %v1496_v36 = vsub.f32 %v7134_v15, %v1495_v27 }
 0x1fc   : > { %v1351_v38 = vsel %vm1331_vm1, %v1321_v34, 0  ;;  %6103 = vmatpush3.bf16.msra.mxu0 %v7045_v52 }
 0x1fd   : > { %v1505_v39 = vand.u32 4294901760, %v7149_v33  ;;  %v7158_v40 = vand.u32 4294901760, %v1351_v38  ;;  %6105 = vmatprep.subr.bf16.mxu0 %v7058_v9  ;;  %v1497_v42 = vand.u32 4294901760, %v1496_v36 }
 0x1ff   : > { %v7162_v43 = vsub.f32 %v1351_v38, %v7158_v40  ;;  %v1322_v45 = vpop.trf.xlu0  ;;  %5416 = vmatprep.mubr.f32.mxu0 %v1497_v42  ;;  %5459 = vmatprep.mubr.f32.mxu1 %v7158_v40  ;;  %v1506_v26 = vsub.f32 %v7149_v33, %v1505_v39 }
 0x200   : > { %v1354_v49 = vsel %vm1331_vm1, %v1322_v45, 0  ;;  %6107 = vmatpush3.bf16.msra.mxu0 %v7058_v9 }
 0x201   : > { %v1515_v50 = vand.u32 4294901760, %v7162_v43  ;;  %v7171_v51 = vand.u32 4294901760, %v1354_v49  ;;  %v1507_v53 = vand.u32 4294901760, %v1506_v26 }
 0x203   : > { %v7174_v23 = vsub.f32 %v1354_v49, %v7171_v51  ;;  %v1323_v12 = vpop.trf.xlu0  ;;  %5417 = vmatmul.mubr.f32.gmra.mrb[12].mxu0 %v1507_v53  ;;  %5460 = vmatmul.mubr.f32.gmra.mrb[6].mxu1 %v7171_v51  ;;  %v1516_v37 = vsub.f32 %v7162_v43, %v1515_v50 }
 0x204   : > { %v1357_v25 = vsel %vm1331_vm1, %v1323_v12, 0 }
 0x205   : > { %v1525_v54 = vand.u32 4294901760, %v7174_v23  ;;  %v7182_v55 = vand.u32 4294901760, %v1357_v25  ;;  %v1517_v56 = vand.u32 4294901760, %v1516_v37 }
 0x207   : > { %v7185_v57 = vsub.f32 %v1357_v25, %v7182_v55  ;;  %v1324_v60 = vpop.trf.xlu0  ;;  %5419 = vmatprep.mubr.f32.mxu0 %v1517_v56  ;;  %5462 = vmatprep.mubr.f32.mxu1 %v7182_v55  ;;  %v1526_v47 = vsub.f32 %v7174_v23, %v1525_v54 }
 0x208   : > { %v1360_v0 = vsel %vm1331_vm1, %v1324_v60, 0 }
 0x209   : > { %v1535_v1 = vand.u32 4294901760, %v7185_v57  ;;  %v7193_v2 = vand.u32 4294901760, %v1360_v0  ;;  %v1527_v5 = vand.u32 4294901760, %v1526_v47 }
 0x20b   : > { %v7196_v6 = vsub.f32 %v1360_v0, %v7193_v2  ;;  %v1325_v8 = vpop.trf.xlu0  ;;  %5420 = vmatmul.mubr.f32.gmra.mrb[14].mxu0 %v1527_v5  ;;  %5463 = vmatmul.mubr.f32.gmra.mrb[8].mxu1 %v7193_v2  ;;  %v1536_v10 = vsub.f32 %v7185_v57, %v1535_v1 }
 0x20c   : > { %v1363_v11 = vsel %vm1331_vm1, %v1325_v8, 0 }
 0x20d   : > { %v1545_v24 = vand.u32 4294901760, %v7196_v6  ;;  %v7204_v31 = vand.u32 4294901760, %v1363_v11  ;;  %v1537_v32 = vand.u32 4294901760, %v1536_v10 }
 0x20f   : > { %v7207_v18 = vsub.f32 %v1363_v11, %v7204_v31  ;;  %v1326_v21 = vpop.trf.xlu0  ;;  %5422 = vmatprep.mubr.f32.mxu0 %v1537_v32  ;;  %5465 = vmatprep.mubr.f32.mxu1 %v7204_v31  ;;  %v1546_v22 = vsub.f32 %v7196_v6, %v1545_v24 }
 0x210   : > { %v1366_v17 = vsel %vm1331_vm1, %v1326_v21, 0 }
 0x211   : > { %v1555_v30 = vand.u32 4294901760, %v7207_v18  ;;  %v7215_v34 = vand.u32 4294901760, %v1366_v17  ;;  %v1547_v36 = vand.u32 4294901760, %v1546_v22 }
 0x213   : > { %v7218_v38 = vsub.f32 %v1366_v17, %v7215_v34  ;;  %v1327_v42 = vpop.trf.xlu0  ;;  %5423 = vmatmul.mubr.f32.gmra.mrb[16].mxu0 %v1547_v36  ;;  %5466 = vmatmul.mubr.f32.gmra.mrb[10].mxu1 %v7215_v34  ;;  %v1556_v45 = vsub.f32 %v7207_v18, %v1555_v30 }
 0x214   : > { %v1369_v26 = vsel %vm1331_vm1, %v1327_v42, 0 }
 0x215   : > { %v1565_v49 = vand.u32 4294901760, %v7218_v38  ;;  %v7226_v53 = vand.u32 4294901760, %v1369_v26  ;;  %v1557_v12 = vand.u32 4294901760, %v1556_v45 }
 0x217   : > { %v7229_v37 = vsub.f32 %v1369_v26, %v7226_v53  ;;  %v1328_v25 = vpop.trf.xlu0  ;;  %5425 = vmatprep.mubr.f32.mxu0 %v1557_v12  ;;  %5468 = vmatprep.mubr.f32.mxu1 %v7226_v53  ;;  %v1566_v56 = vsub.f32 %v7218_v38, %v1565_v49 }
 0x218   : > { %v1372_v60 = vsel %vm1331_vm1, %v1328_v25, 0 }
 0x219   : > { %v1575_v47 = vand.u32 4294901760, %v7229_v37  ;;  %v7237_v0 = vand.u32 4294901760, %v1372_v60  ;;  %v1567_v5 = vand.u32 4294901760, %v1566_v56 }
 0x21b   : > { %v7240_v8 = vsub.f32 %v1372_v60, %v7237_v0  ;;  %v1329_v10 = vpop.trf.xlu0  ;;  %5426 = vmatmul.mubr.f32.gmra.mrb[18].mxu0 %v1567_v5  ;;  %5469 = vmatmul.mubr.f32.gmra.mrb[12].mxu1 %v7237_v0  ;;  %v1576_v11 = vsub.f32 %v7229_v37, %v1575_v47 }
 0x21c   : > { %v1375_v32 = vsel %vm1331_vm1, %v1329_v10, 0 }
 0x21d   : > { %v1585_v21 = vand.u32 4294901760, %v7240_v8  ;;  %v7248_v22 = vand.u32 4294901760, %v1375_v32  ;;  %v1577_v17 = vand.u32 4294901760, %v1576_v11 }
 0x21f   : > { %v7251_v36 = vsub.f32 %v1375_v32, %v7248_v22  ;;  %v1330_v42 = vpop.trf.xlu0  ;;  %5428 = vmatprep.mubr.f32.mxu0 %v1577_v17  ;;  %5471 = vmatprep.mubr.f32.mxu1 %v7248_v22  ;;  %v1586_v45 = vsub.f32 %v7240_v8, %v1585_v21 }
 0x220   : > { %v1378_v26 = vsel %vm1331_vm1, %v1330_v42, 0  ;;  %v1287_v42 = vld [vmem:[#allocation4 + $0x20] sm:$0xff] }
 0x221   : > { %v1595_v12 = vand.u32 4294901760, %v7251_v36  ;;  %v7259_v25 = vand.u32 4294901760, %v1378_v26  ;;  %v1587_v56 = vand.u32 4294901760, %v1586_v45 }
 0x223   : > { %v7262_v60 = vsub.f32 %v1378_v26, %v7259_v25  ;;  %5429 = vmatmul.mubr.f32.gmra.mrb[20].mxu0 %v1587_v56  ;;  %5472 = vmatmul.mubr.f32.gmra.mrb[14].mxu1 %v7259_v25  ;;  %v1596_v5 = vsub.f32 %v7251_v36, %v1595_v12 }
 0x224   : > { %5490 = vmatprep.mubr.f32.mxu1 %v7088_v59 }
 0x225   : > { %v1605_v10 = vand.u32 4294901760, %v7262_v60  ;;  %v1597_v11 = vand.u32 4294901760, %v1596_v5  ;;  %v1290_v5 = vld [vmem:[#allocation4 + $0x38] sm:$0xff] }
 0x227   : > { %5431 = vmatprep.mubr.f32.mxu0 %v1597_v11  ;;  %5491 = vmatmul.mubr.f32.vlgmr.msra.gmra.mrb[0].mxu1 %v7096_v63  ;;  %v1606_v32 = vsub.f32 %v7262_v60, %v1605_v10 }
 0x228   : > { %6063 = vmatpush3.bf16.msra.mxu1 %v7016_v14  ;;  %5493 = vmatprep.mubr.f32.mxu1 %v7110_v7 }
 0x229   : > { %6065 = vmatprep.subr.bf16.mxu1 %v7032_v28  ;;  %v1607_v17 = vand.u32 4294901760, %v1606_v32  ;;  %v1289_v32 = vld [vmem:[#allocation4 + $0x30] sm:$0xff] }
 0x22b   : > { %5432 = vmatmul.mubr.f32.gmra.mrb[22].mxu0 %v1607_v17  ;;  %5494 = vmatmul.mubr.f32.gmra.mrb[2].mxu1 %v7119_v20 }
 0x22c   : > { %6067 = vmatpush3.bf16.msra.mxu1 %v7032_v28  ;;  %5496 = vmatprep.mubr.f32.mxu1 %v7134_v15 }
 0x22d   : > { %6069 = vmatprep.subr.bf16.mxu1 %v7045_v52  ;;  %5610 = vmatprep.mubr.f32.mxu0 %v7085_v58 }
 0x22f   : > { %5497 = vmatmul.mubr.f32.gmra.mrb[4].mxu1 %v7149_v33  ;;  %5611 = vmatmul.mubr.f32.vlgmr.msra.gmra.mrb[24].mxu0 %v7093_v62 }
 0x230   : > { %6071 = vmatpush3.bf16.msra.mxu1 %v7045_v52  ;;  %5499 = vmatprep.mubr.f32.mxu1 %v7162_v43 }
 0x231   : > { %6073 = vmatprep.subr.bf16.mxu1 %v7058_v9  ;;  %5613 = vmatprep.mubr.f32.mxu0 %v7104_v4 }
 0x233   : > { %5500 = vmatmul.mubr.f32.gmra.mrb[6].mxu1 %v7174_v23  ;;  %5614 = vmatmul.mubr.f32.gmra.mrb[26].mxu0 %v7115_v19 }
 0x234   : > { %6075 = vmatpush3.bf16.msra.mxu1 %v7058_v9  ;;  %5502 = vmatprep.mubr.f32.mxu1 %v7185_v57 }
 0x235   : > { %6077 = vmatprep.subr.bf16.mxu1 %v7075_v44  ;;  %5616 = vmatprep.mubr.f32.mxu0 %v7129_v41 }
 0x237   : > { %5503 = vmatmul.mubr.f32.gmra.mrb[8].mxu1 %v7196_v6  ;;  %5617 = vmatmul.mubr.f32.gmra.mrb[28].mxu0 %v7144_v29 }
 0x238   : > { %5505 = vmatprep.mubr.f32.mxu1 %v7207_v18  ;;  %5619 = vmatprep.mubr.f32.mxu0 %v7158_v40  ;;  %v1286_v18 = vld [vmem:[#allocation4 + $0x18] sm:$0xff] }
 0x23b   : > { %5506 = vmatmul.mubr.f32.gmra.mrb[10].mxu1 %v7218_v38  ;;  %5620 = vmatmul.mubr.f32.gmra.mrb[30].mxu0 %v7171_v51  ;;  %v1285_v38 = vld [vmem:[#allocation4 + $0x10] sm:$0xff] }
 0x23c   : > { %5508 = vmatprep.mubr.f32.mxu1 %v7229_v37  ;;  %5622 = vmatprep.mubr.f32.mxu0 %v7182_v55 }
 0x23f   : > { %5509 = vmatmul.mubr.f32.gmra.mrb[12].mxu1 %v7240_v8  ;;  %5623 = vmatmul.mubr.f32.gmra.mrb[32].mxu0 %v7193_v2 }
 0x240   : > { %5511 = vmatprep.mubr.f32.mxu1 %v7251_v36 }
 0x243   : > { %5512 = vmatmul.mubr.f32.gmra.mrb[14].mxu1 %v7262_v60 }
 0x244   : > { %5530 = vmatprep.mubr.f32.mxu1 %v1455_v61 }
 0x247   : > { %5531 = vmatmul.mubr.f32.vlgmr.msra.gmra.mrb[0].mxu1 %v1465_v3 }
 0x248   : > { %6079 = vmatpush3.bf16.msra.mxu1 %v7075_v44  ;;  %5533 = vmatprep.mubr.f32.mxu1 %v1475_v13 }
 0x249   : > { %6081 = vmatprep.subr.bf16.mxu1 %v7077_v16 }
 0x24b   : > { %5534 = vmatmul.mubr.f32.gmra.mrb[2].mxu1 %v1485_v35 }
 0x24c   : > { %6083 = vmatpush3.bf16.msra.mxu1 %v7077_v16  ;;  %5536 = vmatprep.mubr.f32.mxu1 %v1495_v27 }
 0x24d   : > { %6085 = vmatprep.subr.bf16.mxu1 %v7079_v46 }
 0x24f   : > { %5537 = vmatmul.mubr.f32.gmra.mrb[4].mxu1 %v1505_v39 }
 0x250   : > { %6087 = vmatpush3.bf16.msra.mxu1 %v7079_v46  ;;  %5539 = vmatprep.mubr.f32.mxu1 %v1515_v50 }
 0x251   : > { %6089 = vmatprep.subr.bf16.mxu1 %v7081_v48 }
 0x253   : > { %5540 = vmatmul.mubr.f32.gmra.mrb[6].mxu1 %v1525_v54 }
 0x254   : > { %6091 = vmatpush3.bf16.msra.mxu1 %v7081_v48  ;;  %5542 = vmatprep.mubr.f32.mxu1 %v1535_v1 }
 0x255   : > { %6300 = vmatprep.subr.bf16.mxu1 %v7016_v14 }
 0x257   : > { %5543 = vmatmul.mubr.f32.gmra.mrb[8].mxu1 %v1545_v24 }
 0x258   : > { %5545 = vmatprep.mubr.f32.mxu1 %v1555_v30 }
 0x25b   : > { %5546 = vmatmul.mubr.f32.gmra.mrb[10].mxu1 %v1565_v49 }
 0x25c   : > { %5548 = vmatprep.mubr.f32.mxu1 %v1575_v47 }
 0x25f   : > { %5549 = vmatmul.mubr.f32.gmra.mrb[12].mxu1 %v1585_v21  ;;  %v1288_v21 = vld [vmem:[#allocation4 + $0x28] sm:$0xff] }
 0x260   : > { %5551 = vmatprep.mubr.f32.mxu1 %v1595_v12 }
 0x263   : > { %5552 = vmatmul.mubr.f32.gmra.mrb[14].mxu1 %v1605_v10 }
 0x264   : > { %5570 = vmatprep.mubr.f32.mxu1 %v7085_v58 }
 0x267   : > { %5571 = vmatmul.mubr.f32.vlgmr.msra.gmra.mrb[0].mxu1 %v7093_v62 }
 0x268   : > { %6304 = vmatpush3.bf16.msra.mxu1 %v7016_v14  ;;  %5573 = vmatprep.mubr.f32.mxu1 %v7104_v4 }
 0x269   : > { %6301 = vmatprep.subr.bf16.mxu1 %v7032_v28 }
 0x26b   : > { %5574 = vmatmul.mubr.f32.gmra.mrb[2].mxu1 %v7115_v19 }
 0x26c   : > { %6305 = vmatpush3.bf16.msra.mxu1 %v7032_v28  ;;  %5576 = vmatprep.mubr.f32.mxu1 %v7129_v41 }
 0x26d   : > { %6302 = vmatprep.subr.bf16.mxu1 %v7045_v52 }
 0x26f   : > { %5577 = vmatmul.mubr.f32.gmra.mrb[4].mxu1 %v7144_v29 }
 0x270   : > { %6306 = vmatpush3.bf16.msra.mxu1 %v7045_v52  ;;  %5579 = vmatprep.mubr.f32.mxu1 %v7158_v40 }
 0x271   : > { %6303 = vmatprep.subr.bf16.mxu1 %v7058_v9 }
 0x273   : > { %5580 = vmatmul.mubr.f32.gmra.mrb[6].mxu1 %v7171_v51  ;;  %v1284_v51 = vld [vmem:[#allocation4 + $0x8] sm:$0xff] }
 0x274   : > { %6307 = vmatpush3.bf16.msra.mxu1 %v7058_v9  ;;  %5582 = vmatprep.mubr.f32.mxu1 %v7182_v55  ;;  %v1283_v55 = vld [vmem:[#allocation4] sm:$0xff] }
 0x277   : > { %5583 = vmatmul.mubr.f32.gmra.mrb[8].mxu1 %v7193_v2 }
 0x278   : > { %5585 = vmatprep.mubr.f32.mxu1 %v7204_v31 }
 0x27b   : > { %5586 = vmatmul.mubr.f32.gmra.mrb[10].mxu1 %v7215_v34 }
 0x27c   : > { %5588 = vmatprep.mubr.f32.mxu1 %v7226_v53 }
 0x27f   : > { %5589 = vmatmul.mubr.f32.gmra.mrb[12].mxu1 %v7237_v0 }
 0x280   : > { %5591 = vmatprep.mubr.f32.mxu1 %v7248_v22 }
 0x283   : > { %5592 = vmatmul.mubr.f32.gmra.mrb[14].mxu1 %v7259_v25 }
 0x284   : > { %5625 = vmatprep.mubr.f32.mxu1 %v7204_v31 }
 0x287   : > { %5626 = vmatmul.mubr.f32.vlgmr.msra.gmra.mrb[10].mxu1 %v7215_v34 }
 0x288   : > { %5628 = vmatprep.mubr.f32.mxu1 %v7226_v53 }
 0x28b   : > { %5629 = vmatmul.mubr.f32.gmra.mrb[12].mxu1 %v7237_v0 }
 0x28c   : > { %5631 = vmatprep.mubr.f32.mxu1 %v7248_v22 }
 0x28f   : > { %5632 = vmatmul.mubr.f32.gmra.mrb[14].mxu1 %v7259_v25 }
 0x2c6   : > { %v5412_v14 = vpop.f32.mrb[8].mxu0 }
 0x2c7   : > { %v1459_v28 = vpop.f32.mrb[9].mxu0 }
 0x2ce   : > { %v5415_v52 = vpop.f32.mrb[10].mxu0 }
 0x2cf   : > { %v1479_v9 = vpop.f32.mrb[11].mxu0 }
 0x2d6   : > { %v5418_v44 = vpop.f32.mrb[12].mxu0 }
 0x2d7   : > { %v1499_v16 = vpop.f32.mrb[13].mxu0 }
 0x2de   : > { %v5421_v46 = vpop.f32.mrb[14].mxu0 }
 0x2df   : > { %v1519_v48 = vpop.f32.mrb[15].mxu0 }
 0x2e6   : > { %v7371_v58 = vpop.f32.mrb[16].mxu0 }
 0x2e7   : > { %v7373_v59 = vpop.f32.mrb[17].mxu0 }
 0x2ee   : > { %v7375_v61 = vpop.f32.mrb[18].mxu0 }
 0x2ef   : > { %v7377_v62 = vpop.f32.mrb[19].mxu0 }
 0x2f6   : > { %v7379_v63 = vpop.f32.mrb[20].mxu0 }
 0x2f7   : > { %v7381_v3 = vpop.f32.mrb[21].mxu0 }
 0x2fe   : > { %v7383_v4 = vpop.f32.mrb[22].mxu0 }
 0x2ff   : > { %v7385_v7 = vpop.f32.mrb[23].mxu0 }
 0x302   : > { %v5612_v13 = vpop.f32.mrb[24].mxu0 }
 0x303   : > { %v2468_v19 = vpop.f32.mrb[25].mxu0 }
 0x306   : > { %v5615_v20 = vpop.f32.mrb[26].mxu0 }
 0x307   : > { %v2480_v35 = vpop.f32.mrb[27].mxu0 }
 0x30a   : > { %v5618_v41 = vpop.f32.mrb[28].mxu0 }
 0x30b   : > { %v2492_v15 = vpop.f32.mrb[29].mxu0 }
 0x30e   : > { %v5621_v27 = vpop.f32.mrb[30].mxu0 }
 0x30f   : > { %v2504_v29 = vpop.f32.mrb[31].mxu0 }
 0x312   : > { %v5624_v33 = vpop.f32.mrb[32].mxu0 }
 0x313   : > { %v2516_v39 = vpop.f32.mrb[33].mxu0 }
 0x33a   : > { %v5572_v40 = vpop.f32.mrb[0].mxu1 }
 0x33b   : > { %v6308_v43 = vadd.f32 %v5572_v40, %v5412_v14  ;;  %v2299_v50 = vpop.f32.mrb[1].mxu1 }
 0x33c   : > { %v6310_v23 = vadd.f32 %v2299_v50, %v1459_v28 }
 0x33d   : > { %v6309_v54 = vadd.f32 %v6308_v43, %v5612_v13 }
 0x33e   : > { %v6311_v57 = vadd.f32 %v6310_v23, %v2468_v19  ;;  %v5575_v1 = vpop.f32.mrb[2].mxu1  ;;  %v1291_v19 = vld [vmem:[#allocation4 + $0x40] sm:$0xff] }
 0x33f   : > { %v2563_v2 = vadd.f32 %v6309_v54, %v1284_v51  ;;  %v6312_v6 = vadd.f32 %v5575_v1, %v5415_v52  ;;  %v2311_v24 = vpop.f32.mrb[3].mxu1  ;;  %v1298_v1 = vld [vmem:[#allocation4 + $0x78] sm:$0xff] }
 0x340   : > { %v2562_v31 = vadd.f32 %v6311_v57, %v1283_v55  ;;  %v6314_v30 = vadd.f32 %v2311_v24, %v1479_v9 }
 0x341   : > { %2579 = vst [vmem:[#allocation4 + $0x8] sm:$0xff] %v2563_v2  ;;  %v6313_v34 = vadd.f32 %v6312_v6, %v5615_v20 }
 0x342   : > { %2578 = vst [vmem:[#allocation4] sm:$0xff] %v2562_v31  ;;  %v6315_v49 = vadd.f32 %v6314_v30, %v2480_v35  ;;  %v5578_v53 = vpop.f32.mrb[4].mxu1 }
 0x343   : > { %v2565_v37 = vadd.f32 %v6313_v34, %v1286_v18  ;;  %v6316_v47 = vadd.f32 %v5578_v53, %v5418_v44  ;;  %v2323_v0 = vpop.f32.mrb[5].mxu1  ;;  %v6686_v34 = vmov (!%p4873_p2), 0.0|0.0  }
 0x344   : > { %v2564_v8 = vadd.f32 %v6315_v49, %v1285_v38  ;;  %v6318_v22 = vadd.f32 %v2323_v0, %v1499_v16  ;;  %v1292_v16 = vld [vmem:[#allocation4 + $0x48] sm:$0xff]  ;;  %6108 = vmatprep.subr.bf16.mxu1 (!%p4873_p2), %v6686_v34  ;;  %6180 = vmatprep.subr.bf16.mxu0 (!%p4873_p2), %v6686_v34  ;;  %v6688_v0 = vmov (!%p4873_p2), 0.0  }
 0x345   : > { %2581 = vst [vmem:[#allocation4 + $0x18] sm:$0xff] %v2565_v37  ;;  %v6317_v36 = vadd.f32 %v6316_v47, %v5618_v41  ;;  %v1294_v41 = vld [vmem:[#allocation4 + $0x58] sm:$0xff]  ;;  %5666 = vmatprep.mubr.msk.f32.mxu1 (!%p4873_p2), %vm6687_vm2, %v6688_v0  ;;  %5771 = vmatprep.mubr.msk.f32.mxu0 (!%p4873_p2), %vm6687_vm2, %v6688_v0 }
 0x346   : > { %2580 = vst [vmem:[#allocation4 + $0x10] sm:$0xff] %v2564_v8  ;;  %v6319_v45 = vadd.f32 %v6318_v22, %v2492_v15  ;;  %v5581_v26 = vpop.f32.mrb[6].mxu1 }
 0x347   : > { %v2567_v12 = vadd.f32 %v6317_v36, %v1288_v21  ;;  %v6320_v25 = vadd.f32 %v5581_v26, %v5421_v46  ;;  %v2335_v56 = vpop.f32.mrb[7].mxu1  ;;  %v2598_v26 = vld [vmem:[#allocation2] sm:$0x1] (!%p4873_p2) }
 0x348   : > { %v2566_v60 = vadd.f32 %v6319_v45, %v1287_v42  ;;  %v6322_v10 = vadd.f32 %v2335_v56, %v1519_v48 }
 0x349   : > { %2583 = vst [vmem:[#allocation4 + $0x28] sm:$0xff] %v2567_v12  ;;  %v6321_v11 = vadd.f32 %v6320_v25, %v5621_v27  ;;  %v2601_v12 = vld [vmem:[#allocation3] sm:$0x1] (!%p4873_p2) }
 0x34a   : > { %2582 = vst [vmem:[#allocation4 + $0x20] sm:$0xff] %v2566_v60  ;;  %v6323_v17 = vadd.f32 %v6322_v10, %v2504_v29  ;;  %v5584_v14 = vpop.f32.mrb[8].mxu1  ;;  %v1293_v29 = vld [vmem:[#allocation4 + $0x50] sm:$0xff] }
 0x34b   : > { %v2569_v28 = vadd.f32 %v6321_v11, %v1290_v5  ;;  %v6324_v52 = vadd.f32 %v5584_v14, %v7371_v58  ;;  %v2347_v9 = vpop.f32.mrb[9].mxu1  ;;  %v7456_v11 = vmul.f32 (!%p4873_p2), 0.00390625, %v2598_v26 }
 0x34c   : > { %v2568_v44 = vadd.f32 %v6323_v17, %v1289_v32  ;;  %v6326_v13 = vadd.f32 %v2347_v9, %v7373_v59  ;;  %v1296_v59 = vld [vmem:[#allocation4 + $0x68] sm:$0xff]  ;;  %v7406_v38 = vld [vmem:[#allocation4 + $0x18] sm:$0xff] (!%p4873_p2)  ;;  %v2602_v32 = vmul.f32 (!%p4873_p2), 0.00390625, %v2601_v12 }
 0x34d   : > { %2585 = vst [vmem:[#allocation4 + $0x38] sm:$0xff] %v2569_v28  ;;  %v6325_v46 = vadd.f32 %v6324_v52, %v5624_v33  ;;  %v7400_v30 = vld [vmem:[#allocation4 + $0x10] sm:$0xff] (!%p4873_p2)  ;;  %v2652_v53 = vand.u32 (!%p4873_p2), 4294901760, %v7406_v38  ;;  %v2603_v17 = vmul.f32 (!%p4873_p2), %v7456_v11, %v7456_v11  ;;  %2608 = vst [vmem:[#allocation5] sm:$0x1] (!%p4873_p2), %v7456_v11 }
 0x34e   : > { %2584 = vst [vmem:[#allocation4 + $0x30] sm:$0xff] %v2568_v44  ;;  %v6327_v20 = vadd.f32 %v6326_v13, %v2516_v39  ;;  %v1295_v39 = vld [vmem:[#allocation4 + $0x60] sm:$0xff]  ;;  %v2649_v49 = vand.u32 (!%p4873_p2), 4294901760, %v7400_v30 }
 0x34f   : > { %v2571_v48 = vadd.f32 %v6325_v46, %v1292_v16  ;;  %v2604_v16 = vsub.f32 (!%p4873_p2), %v2602_v32, %v2603_v17 }
 0x350   : > { %v2570_v35 = vadd.f32 %v6327_v20, %v1291_v19  ;;  %v7412_v47 = vld [vmem:[#allocation4 + $0x28] sm:$0xff] (!%p4873_p2)  ;;  %v7430_v21 = vpack.c.bf16 (!%p4873_p2), %v2652_v53, %v2649_v49 }
 0x351   : > { %2587 = vst [vmem:[#allocation4 + $0x48] sm:$0xff] %v2571_v48  ;;  %v7410_v37 = vld [vmem:[#allocation4 + $0x20] sm:$0xff] (!%p4873_p2)  ;;  %v2658_v36 = vand.u32 (!%p4873_p2), 4294901760, %v7412_v47  ;;  %v2605_v13 = vmax.f32 (!%p4873_p2), %v2604_v16, 0.0 }
 0x352   : > { %2586 = vst [vmem:[#allocation4 + $0x40] sm:$0xff] %v2570_v35  ;;  %v2655_v22 = vand.u32 (!%p4873_p2), 4294901760, %v7410_v37 }
 0x354   : > { %v7438_v45 = vld [vmem:[#allocation4 + $0x38] sm:$0xff] (!%p4873_p2)  ;;  %v7446_v25 = vpack.c.bf16 (!%p4873_p2), %v2658_v36, %v2655_v22 }
 0x355   : > { %v7436_v42 = vld [vmem:[#allocation4 + $0x30] sm:$0xff] (!%p4873_p2)  ;;  %v2664_v60 = vand.u32 (!%p4873_p2), 4294901760, %v7438_v45 }
 0x356   : > { %v2661_v56 = vand.u32 (!%p4873_p2), 4294901760, %v7436_v42 }
 0x358   : > { %v7454_v10 = vld [vmem:[#allocation4 + $0x48] sm:$0xff] (!%p4873_p2)  ;;  %v7467_v14 = vpack.c.bf16 (!%p4873_p2), %v2664_v60, %v2661_v56 }
 0x359   : > { %v7452_v5 = vld [vmem:[#allocation4 + $0x40] sm:$0xff] (!%p4873_p2)  ;;  %v2670_v52 = vand.u32 (!%p4873_p2), 4294901760, %v7454_v10 }
 0x35a   : > { %v5627_v15 = vpop.f32.mrb[10].mxu1  ;;  %v2667_v28 = vand.u32 (!%p4873_p2), 4294901760, %v7452_v5 }
 0x35b   : > { %v6328_v27 = vadd.f32 %v5627_v15, %v7375_v61  ;;  %v2528_v58 = vpop.f32.mrb[11].mxu1  ;;  %v7611_v32 = vsub.f32 (!%p4873_p2), %v7454_v10, %v2670_v52 }
 0x35c   : > { %v6329_v40 = vadd.f32 %v2528_v58, %v7377_v62  ;;  %v1297_v62 = vld [vmem:[#allocation4 + $0x70] sm:$0xff]  ;;  %v7483_v46 = vpack.c.bf16 (!%p4873_p2), %v2670_v52, %v2667_v28 }
 0x35d   : > { %v2573_v43 = vadd.f32 %v6328_v27, %v1294_v41  ;;  %v2606_v41 = vadd.f32 (!%p4873_p2), 1e-05, %v2605_v13 }
 0x35e   : > { %v2572_v50 = vadd.f32 %v6329_v40, %v1293_v29  ;;  %v5630_v51 = vpop.f32.mrb[12].mxu1 }
 0x35f   : > { %2589 = vst [vmem:[#allocation4 + $0x58] sm:$0xff] %v2573_v43  ;;  %v6330_v33 = vadd.f32 %v5630_v51, %v7379_v63  ;;  %v2540_v23 = vpop.f32.mrb[13].mxu1  ;;  %v7396_v63 = vld [vmem:[#allocation4] sm:$0xff] (!%p4873_p2)  ;;  %6563 = vrsqrt.f32 (!%p4873_p2), %v2606_v41 }
 0x360   : > { %2588 = vst [vmem:[#allocation4 + $0x50] sm:$0xff] %v2572_v50  ;;  %v6331_v54 = vadd.f32 %v2540_v23, %v7381_v3  ;;  %v7398_v3 = vld [vmem:[#allocation4 + $0x8] sm:$0xff] (!%p4873_p2) }
 0x361   : > { %v2575_v55 = vadd.f32 %v6330_v33, %v1296_v59 }
 0x362   : > { %v2574_v57 = vadd.f32 %v6331_v54, %v1295_v39  ;;  %v5633_v61 = vpop.f32.mrb[14].mxu1  ;;  %2597 = sbr.rel (%p4873_p2) target bundleno = 1420 (0x58c), region = 52  ;;  %v7536_v54 = vsub.f32 (!%p4873_p2), %v7400_v30, %v2649_v49  ;;  %v7575_v30 = vsub.f32 (!%p4873_p2), %v7436_v42, %v2661_v56  ;;  %v7588_v49 = vsub.f32 (!%p4873_p2), %v7438_v45, %v2664_v60 }
 0x363   : > { %2591 = vst [vmem:[#allocation4 + $0x68] sm:$0xff] %v2575_v55  ;;  %v6332_v2 = vadd.f32 %v5633_v61, %v7383_v4  ;;  %v2552_v6 = vpop.f32.mrb[15].mxu1  ;;  %v2643_v4 = vand.u32 (!%p4873_p2), 4294901760, %v7396_v63  ;;  %v7541_v55 = vsub.f32 (!%p4873_p2), %v7406_v38, %v2652_v53 }
 0x364   : > { %2590 = vst [vmem:[#allocation4 + $0x60] sm:$0xff] %v2574_v57  ;;  %v6333_v24 = vadd.f32 %v2552_v6, %v7385_v7  ;;  %v2646_v7 = vand.u32 (!%p4873_p2), 4294901760, %v7398_v3  ;;  %v2610_v57 = vld [vmem:[%s8098_s4] sm:$0x1] (!%p4873_p2) }
 0x365   : > { %v2577_v31 = vadd.f32 %v6332_v2, %v1298_v1  ;;  %v7506_v58 = vsub.f32 (!%p4873_p2), %v7396_v63, %v2643_v4  ;;  %v7557_v2 = vsub.f32 (!%p4873_p2), %v7410_v37, %v2655_v22  ;;  %v2750_v63 = vand.u32 (!%p4873_p2), 4294901760, %v7536_v54 }
 0x366   : > { %v2576_v18 = vadd.f32 %v6333_v24, %v1297_v62  ;;  %v7422_v8 = vpack.c.bf16 (!%p4873_p2), %v2646_v7, %v2643_v4  ;;  %v7475_v44 = vld [vmem:[#allocation4 + $0x58] sm:$0xff] (!%p4873_p2)  ;;  %v7517_v50 = vsub.f32 (!%p4873_p2), %v7398_v3, %v2646_v7  ;;  %v7562_v62 = vsub.f32 (!%p4873_p2), %v7412_v47, %v2658_v36 }
 0x367   : > { %2593 = vst [vmem:[#allocation4 + $0x78] sm:$0xff] %v2577_v31  ;;  %v7473_v9 = vld [vmem:[#allocation4 + $0x50] sm:$0xff] (!%p4873_p2)  ;;  %v2676_v20 = vand.u32 (!%p4873_p2), 4294901760, %v7475_v44  ;;  %v2736_v39 = vand.u32 (!%p4873_p2), 4294901760, %v7506_v58  ;;  %v2612_v24 = vld [vmem:[#allocation2] sm:$0x1] (!%p4873_p2)  ;;  %v2751_v12 = vsub.f32 (!%p4873_p2), %v7536_v54, %v2750_v63 }
 0x368   : > { %2592 = vst [vmem:[#allocation4 + $0x70] sm:$0xff] %v2576_v18  ;;  %6110 = vmatpush3.bf16.msra.mxu1 (!%p4873_p2), %v7422_v8  ;;  %6182 = vmatpush3.bf16.msra.mxu0 (!%p4873_p2), %v7422_v8  ;;  %v2673_v19 = vand.u32 (!%p4873_p2), 4294901760, %v7473_v9  ;;  %v2743_v23 = vand.u32 (!%p4873_p2), 4294901760, %v7517_v50  ;;  %v2757_v3 = vand.u32 (!%p4873_p2), 4294901760, %v7541_v55  ;;  %v2764_v37 = vand.u32 (!%p4873_p2), 4294901760, %v7557_v2 }
 0x369   : > { %6111 = vmatprep.subr.bf16.mxu1 %v6686_v34  ;;  %6183 = vmatprep.subr.bf16.mxu0 %v6686_v34  ;;  %v6564_v61 = vpop.eup %6563  ;;  %v2737_v6 = vsub.f32 %v7506_v58, %v2736_v39  ;;  %v2771_v47 = vand.u32 4294901760, %v7562_v62 }
 0x36a   : > { %v7491_v35 = vld [vmem:[#allocation4 + $0x68] sm:$0xff]  ;;  %v7499_v15 = vpack.c.bf16 %v2676_v20, %v2673_v19  ;;  %2609 = vst [vmem:[#allocation6] sm:$0x1] %v6564_v61  ;;  %v7567_v31 = vmul.f32 %v6564_v61, %v2610_v57  ;;  %v2744_v18 = vsub.f32 %v7517_v50, %v2743_v23  ;;  %v6205_v45 = vpack.c.bf16 %v2743_v23, %v2736_v39 }
 0x36b   : > { %v7489_v48 = vld [vmem:[#allocation4 + $0x60] sm:$0xff]  ;;  %v2682_v29 = vand.u32 4294901760, %v7491_v35  ;;  %v2738_v53 = vand.u32 4294901760, %v2737_v6  ;;  %v2758_v56 = vsub.f32 %v7541_v55, %v2757_v3  ;;  %v6208_v17 = vpack.c.bf16 %v2757_v3, %v2750_v63 }
 0x36c   : > { %6113 = vmatpush3.bf16.msra.mxu1 %v7430_v21  ;;  %6185 = vmatpush3.bf16.msra.mxu0 %v7430_v21  ;;  %v2679_v27 = vand.u32 4294901760, %v7489_v48  ;;  %v7580_v4 = vand.u32 4294901760, %v7567_v31  ;;  %v2613_v7 = vmul.f32 %v2612_v24, %v7567_v31  ;;  %v3295_v38 = vmul.f32 %v7567_v31, %v7456_v11 }
 0x36d   : > { %6114 = vmatprep.subr.bf16.mxu1 %v6686_v34  ;;  %6186 = vmatprep.subr.bf16.mxu0 %v6686_v34  ;;  %v2745_v36 = vand.u32 4294901760, %v2744_v18  ;;  %v7606_v11 = vsub.f32 %v7452_v5, %v2667_v28  ;;  %v2765_v41 = vsub.f32 %v7557_v2, %v2764_v37  ;;  %v2772_v39 = vsub.f32 %v7562_v62, %v2771_v47 }
 0x36e   : > { %v7512_v43 = vld [vmem:[#allocation4 + $0x78] sm:$0xff]  ;;  %v7525_v59 = vpack.c.bf16 %v2682_v29, %v2679_v27  ;;  %v7596_v22 = vsub.f32 %v7567_v31, %v7580_v4  ;;  %v2615_v42 = vsel %vm2614_vm3, %v2613_v7, 0.0  ;;  %v3296_v26 = vsel %vm2614_vm3, %v3295_v38, 0.0 }
 0x36f   : > { %v7510_v40 = vld [vmem:[#allocation4 + $0x70] sm:$0xff]  ;;  %v2688_v33 = vand.u32 4294901760, %v7512_v43  ;;  %2616 = vadd.xlane.f32.xlu0 %v2615_v42  ;;  %3297 = vadd.xlane.f32.xlu1 %v3296_v26  ;;  %v6133_v13 = vpack.c.bf16 %v2745_v36, %v2738_v53  ;;  %v2752_v23 = vand.u32 4294901760, %v2751_v12  ;;  %v2759_v57 = vand.u32 4294901760, %v2758_v56 }
 0x370   : > { %6116 = vmatpush3.bf16.msra.mxu1 %v7446_v25  ;;  %6188 = vmatpush3.bf16.msra.mxu0 %v7446_v25  ;;  %v2685_v51 = vand.u32 4294901760, %v7510_v40  ;;  %v2725_v60 = vand.u32 4294901760, %v7596_v22  ;;  %v2778_v5 = vand.u32 4294901760, %v7575_v30  ;;  %v2785_v28 = vand.u32 4294901760, %v7588_v49 }
 0x371   : > { %6117 = vmatprep.subr.bf16.mxu1 %v6686_v34  ;;  %6189 = vmatprep.subr.bf16.mxu0 %v6686_v34  ;;  %v7624_v52 = vsub.f32 %v7473_v9, %v2673_v19  ;;  %v7629_v61 = vsub.f32 %v7475_v44, %v2676_v20  ;;  %v6211_v6 = vpack.c.bf16 %v2771_v47, %v2764_v37  ;;  %v2766_v24 = vand.u32 4294901760, %v2765_v41 }
 0x372   : > { %v7552_v1 = vpack.c.bf16 %v2688_v33, %v2685_v51  ;;  %v2726_v16 = vsub.f32 %v7596_v22, %v2725_v60  ;;  %v2773_v18 = vand.u32 4294901760, %v2772_v39  ;;  %v2792_v63 = vand.u32 4294901760, %v7606_v11 }
 0x373   : > { %v2799_v3 = vand.u32 4294901760, %v7611_v32  ;;  %v6136_v7 = vpack.c.bf16 %v2759_v57, %v2752_v23  ;;  %v2779_v38 = vsub.f32 %v7575_v30, %v2778_v5  ;;  %v2786_v9 = vsub.f32 %v7588_v49, %v2785_v28 }
 0x374   : > { %6119 = vmatpush3.bf16.msra.mxu1 %v7467_v14  ;;  %6191 = vmatpush3.bf16.msra.mxu0 %v7467_v14  ;;  %v2727_v10 = vand.u32 4294901760, %v2726_v16  ;;  %v7640_v44 = vsub.f32 %v7489_v48, %v2679_v27  ;;  %v7645_v19 = vsub.f32 %v7491_v35, %v2682_v29  ;;  %v6139_v20 = vpack.c.bf16 %v2773_v18, %v2766_v24 }
 0x375   : > { %6120 = vmatprep.subr.bf16.mxu1 %v6686_v34  ;;  %6192 = vmatprep.subr.bf16.mxu0 %v6686_v34  ;;  %v6214_v53 = vpack.c.bf16 %v2785_v28, %v2778_v5  ;;  %v2793_v37 = vsub.f32 %v7606_v11, %v2792_v63  ;;  %v2800_v47 = vsub.f32 %v7611_v32, %v2799_v3  ;;  %v2780_v36 = vand.u32 4294901760, %v2779_v38 }
 0x376   : > { %v2787_v42 = vand.u32 4294901760, %v2786_v9  ;;  %v2806_v48 = vand.u32 4294901760, %v7624_v52  ;;  %v2813_v27 = vand.u32 4294901760, %v7629_v61  ;;  %v7658_v35 = vsub.f32 %v7510_v40, %v2685_v51 }
 0x377   : > { %v7663_v29 = vsub.f32 %v7512_v43, %v2688_v33  ;;  %v2794_v26 = vand.u32 4294901760, %v2793_v37  ;;  %v6217_v12 = vpack.c.bf16 %v2799_v3, %v2792_v63  ;;  %v2820_v56 = vand.u32 4294901760, %v7640_v44 }
 0x378   : > { %6122 = vmatpush3.bf16.msra.mxu1 %v7483_v46  ;;  %6194 = vmatpush3.bf16.msra.mxu0 %v7483_v46  ;;  %v2814_v16 = vsub.f32 %v7629_v61, %v2813_v27  ;;  %v2827_v40 = vand.u32 4294901760, %v7645_v19  ;;  %v6220_v51 = vpack.c.bf16 %v2813_v27, %v2806_v48 }
 0x379   : > { %6123 = vmatprep.subr.bf16.mxu1 %v6686_v34  ;;  %6195 = vmatprep.subr.bf16.mxu0 %v6686_v34  ;;  %v2821_v33 = vsub.f32 %v7640_v44, %v2820_v56  ;;  %v2841_v57 = vand.u32 4294901760, %v7663_v29 }
 0x37a   : > { %v2815_v39 = vand.u32 4294901760, %v2814_v16  ;;  %v2828_v23 = vsub.f32 %v7645_v19, %v2827_v40  ;;  %v6223_v5 = vpack.c.bf16 %v2827_v40, %v2820_v56 }
 0x37b   : > { %v2842_v18 = vsub.f32 %v7663_v29, %v2841_v57 }
 0x37c   : > { %6125 = vmatpush3.bf16.msra.mxu1 %v7499_v15  ;;  %6197 = vmatpush3.bf16.msra.mxu0 %v7499_v15  ;;  %v2829_v24 = vand.u32 4294901760, %v2828_v23 }
 0x37d   : > { %6126 = vmatprep.subr.bf16.mxu1 %v6686_v34  ;;  %6198 = vmatprep.subr.bf16.mxu0 %v6686_v34 }
 0x380   : > { %6128 = vmatpush3.bf16.msra.mxu1 %v7525_v59  ;;  %6200 = vmatpush3.bf16.msra.mxu0 %v7525_v59 }
 0x381   : > { %6129 = vmatprep.subr.bf16.mxu1 %v6686_v34  ;;  %6201 = vmatprep.subr.bf16.mxu0 %v6686_v34 }
 0x384   : > { %6131 = vmatpush3.bf16.msra.mxu1 %v7552_v1  ;;  %6203 = vmatpush3.bf16.msra.mxu0 %v7552_v1 }
 0x385   : > { %6132 = vmatprep.subr.bf16.mxu1 %v6686_v34  ;;  %6204 = vmatprep.subr.bf16.mxu0 %v6686_v34 }
 0x387   : > { %5772 = vmatmul.mubr.f32.vlgmr.msra.gmra.mrb[0].mxu0 %v2725_v60  ;;  %5667 = vmatmul.mubr.f32.vlgmr.msra.gmra.mrb[0].mxu1 %v2727_v10  ;;  %v6142_v60 = vpack.c.bf16 %v2787_v42, %v2780_v36 }
 0x388   : > { %6206 = vmatpush3.bf16.msra.mxu0 %v6205_v45  ;;  %5806 = vmatprep.mubr.msk.f32.mxu0 %vm6687_vm2, %v6688_v0  ;;  %v2801_v45 = vand.u32 4294901760, %v2800_v47 }
 0x389   : > { %6207 = vmatprep.subr.bf16.mxu0 %v6686_v34  ;;  %6134 = vmatpush3.bf16.msra.mxu1 %v6133_v13  ;;  %v2834_v13 = vand.u32 4294901760, %v7658_v35 }
 0x38a   : > { %6135 = vmatprep.subr.bf16.mxu1 %v6686_v34  ;;  %5701 = vmatprep.mubr.msk.f32.mxu1 %vm6687_vm2, %v6688_v0  ;;  %v6145_v43 = vpack.c.bf16 %v2801_v45, %v2794_v26 }
 0x38b   : > { %v2835_v28 = vsub.f32 %v7658_v35, %v2834_v13  ;;  %v6226_v38 = vpack.c.bf16 %v2841_v57, %v2834_v13 }
 0x38c   : > { %6209 = vmatpush3.bf16.msra.mxu0 %v6208_v17  ;;  %v2807_v17 = vsub.f32 %v7624_v52, %v2806_v48 }
 0x38d   : > { %6210 = vmatprep.subr.bf16.mxu0 %v6686_v34  ;;  %6137 = vmatpush3.bf16.msra.mxu1 %v6136_v7  ;;  %v2836_v3 = vand.u32 4294901760, %v2835_v28  ;;  %v2843_v7 = vand.u32 4294901760, %v2842_v18 }
 0x38e   : > { %6138 = vmatprep.subr.bf16.mxu1 %v6686_v34  ;;  %v2808_v41 = vand.u32 4294901760, %v2807_v17 }
 0x38f   : > { %v6154_v9 = vpack.c.bf16 %v2843_v7, %v2836_v3 }
 0x390   : > { %6212 = vmatpush3.bf16.msra.mxu0 %v6211_v6  ;;  %v6148_v10 = vpack.c.bf16 %v2815_v39, %v2808_v41  ;;  %v2822_v6 = vand.u32 4294901760, %v2821_v33 }
 0x391   : > { %6213 = vmatprep.subr.bf16.mxu0 %v6686_v34  ;;  %6140 = vmatpush3.bf16.msra.mxu1 %v6139_v20  ;;  %v6157_v20 = vpack.c.bf16 %v7517_v50, %v7506_v58 }
 0x392   : > { %6141 = vmatprep.subr.bf16.mxu1 %v6686_v34  ;;  %v6151_v63 = vpack.c.bf16 %v2829_v24, %v2822_v6 }
 0x394   : > { %6215 = vmatpush3.bf16.msra.mxu0 %v6214_v53  ;;  %v6160_v53 = vpack.c.bf16 %v7541_v55, %v7536_v54 }
 0x395   : > { %6216 = vmatprep.subr.bf16.mxu0 %v6686_v34  ;;  %6143 = vmatpush3.bf16.msra.mxu1 %v6142_v60 }
 0x396   : > { %6144 = vmatprep.subr.bf16.mxu1 %v6686_v34 }
 0x398   : > { %6218 = vmatpush3.bf16.msra.mxu0 %v6217_v12 }
 0x399   : > { %6219 = vmatprep.subr.bf16.mxu0 %v6686_v34  ;;  %6146 = vmatpush3.bf16.msra.mxu1 %v6145_v43 }
 0x39a   : > { %6147 = vmatprep.subr.bf16.mxu1 %v6686_v34 }
 0x39c   : > { %6221 = vmatpush3.bf16.msra.mxu0 %v6220_v51 }
 0x39d   : > { %6222 = vmatprep.subr.bf16.mxu0 %v6686_v34  ;;  %6149 = vmatpush3.bf16.msra.mxu1 %v6148_v10 }
 0x39e   : > { %6150 = vmatprep.subr.bf16.mxu1 %v6686_v34 }
 0x3a0   : > { %6224 = vmatpush3.bf16.msra.mxu0 %v6223_v5 }
 0x3a1   : > { %6225 = vmatprep.subr.bf16.mxu0 %v6686_v34  ;;  %6152 = vmatpush3.bf16.msra.mxu1 %v6151_v63 }
 0x3a2   : > { %6153 = vmatprep.subr.bf16.mxu1 %v6686_v34 }
 0x3a4   : > { %6227 = vmatpush3.bf16.msra.mxu0 %v6226_v38 }
 0x3a5   : > { %6228 = vmatprep.subr.bf16.mxu0 %v6686_v34  ;;  %6155 = vmatpush3.bf16.msra.mxu1 %v6154_v9 }
 0x3a6   : > { %6156 = vmatprep.subr.bf16.mxu1 %v6686_v34 }
 0x3a7   : > { %5807 = vmatmul.mubr.f32.vlgmr.msra.gmra.mrb[0].mxu0 %v7580_v4 }
 0x3a8   : > { %6230 = vmatpush3.bf16.msra.mxu0 %v7422_v8  ;;  %5841 = vmatprep.mubr.msk.f32.mxu0 %vm6687_vm2, %v6688_v0  ;;  %v6163_v8 = vpack.c.bf16 %v7562_v62, %v7557_v2 }
 0x3a9   : > { %6231 = vmatprep.subr.bf16.mxu0 %v6686_v34  ;;  %5702 = vmatmul.mubr.f32.vlgmr.msra.gmra.mrb[0].mxu1 %v7580_v4 }
 0x3aa   : > { %6158 = vmatpush3.bf16.msra.mxu1 %v6157_v20  ;;  %5736 = vmatprep.mubr.msk.f32.mxu1 %vm6687_vm2, %v6688_v0  ;;  %v6169_v0 = vpack.c.bf16 %v7611_v32, %v7606_v11 }
 0x3ab   : > { %6159 = vmatprep.subr.bf16.mxu1 %v6686_v34 }
 0x3ac   : > { %6233 = vmatpush3.bf16.msra.mxu0 %v7430_v21  ;;  %v6166_v21 = vpack.c.bf16 %v7588_v49, %v7575_v30 }
 0x3ad   : > { %6234 = vmatprep.subr.bf16.mxu0 %v6686_v34 }
 0x3ae   : > { %6161 = vmatpush3.bf16.msra.mxu1 %v6160_v53 }
 0x3af   : > { %6162 = vmatprep.subr.bf16.mxu1 %v6686_v34 }
 0x3b0   : > { %6236 = vmatpush3.bf16.msra.mxu0 %v7446_v25  ;;  %v6172_v25 = vpack.c.bf16 %v7629_v61, %v7624_v52 }
 0x3b1   : > { %6237 = vmatprep.subr.bf16.mxu0 %v6686_v34 }
 0x3b2   : > { %6164 = vmatpush3.bf16.msra.mxu1 %v6163_v8 }
 0x3b3   : > { %6165 = vmatprep.subr.bf16.mxu1 %v6686_v34 }
 0x3b4   : > { %6239 = vmatpush3.bf16.msra.mxu0 %v7467_v14  ;;  %v6175_v14 = vpack.c.bf16 %v7645_v19, %v7640_v44 }
 0x3b5   : > { %6240 = vmatprep.subr.bf16.mxu0 %v6686_v34 }
 0x3b6   : > { %6167 = vmatpush3.bf16.msra.mxu1 %v6166_v21 }
 0x3b7   : > { %6168 = vmatprep.subr.bf16.mxu1 %v6686_v34 }
 0x3b8   : > { %6242 = vmatpush3.bf16.msra.mxu0 %v7483_v46  ;;  %v6178_v46 = vpack.c.bf16 %v7663_v29, %v7658_v35 }
 0x3b9   : > { %6243 = vmatprep.subr.bf16.mxu0 %v6686_v34 }
 0x3ba   : > { %6170 = vmatpush3.bf16.msra.mxu1 %v6169_v0 }
 0x3bb   : > { %6171 = vmatprep.subr.bf16.mxu1 %v6686_v34 }
 0x3bc   : > { %6245 = vmatpush3.bf16.msra.mxu0 %v7499_v15 }
 0x3bd   : > { %6246 = vmatprep.subr.bf16.mxu0 %v6686_v34 }
 0x3be   : > { %6173 = vmatpush3.bf16.msra.mxu1 %v6172_v25 }
 0x3bf   : > { %6174 = vmatprep.subr.bf16.mxu1 %v6686_v34 }
 0x3c0   : > { %6248 = vmatpush3.bf16.msra.mxu0 %v7525_v59 }
 0x3c1   : > { %6249 = vmatprep.subr.bf16.mxu0 %v6686_v34 }
 0x3c2   : > { %6176 = vmatpush3.bf16.msra.mxu1 %v6175_v14 }
 0x3c3   : > { %6177 = vmatprep.subr.bf16.mxu1 %v6686_v34 }
 0x3c4   : > { %6251 = vmatpush3.bf16.msra.mxu0 %v7552_v1 }
 0x3c6   : > { %6179 = vmatpush3.bf16.msra.mxu1 %v6178_v46 }
 0x3c7   : > { %5842 = vmatmul.mubr.f32.vlgmr.msra.gmra.mrb[0].mxu0 %v7580_v4 }
 0x3c9   : > { %5737 = vmatmul.mubr.f32.vlgmr.msra.gmra.mrb[0].mxu1 %v7596_v22 }
 0x3fc   : > { %v2617_v55 = vpop.xlane.xlu0 %2616  ;;  %v3298_v32 = vpop.xlane.xlu1 %3297 }
 0x3fd   : > { %v2618_v62 = vrot.slane %v2617_v55, 4  ;;  %v3299_v22 = vrot.slane %v3298_v32, 4 }
 0x3ff   : > { %v2619_v1 = vadd.f32 %v2618_v62, %v2617_v55  ;;  %v3300_v52 = vadd.f32 %v3299_v22, %v3298_v32 }
 0x401   : > { %v2620_v49 = vrot.slane %v2619_v1, 2  ;;  %v3301_v61 = vrot.slane %v3300_v52, 2 }
 0x403   : > { %v2621_v34 = vadd.f32 %v2620_v49, %v2619_v1  ;;  %v3302_v47 = vadd.f32 %v3301_v61, %v3300_v52 }
 0x405   : > { %v2622_v11 = vrot.slane %v2621_v34, 1  ;;  %v3303_v42 = vrot.slane %v3302_v47, 1 }
 0x407   : > { %v2623_v4 = vadd.f32 %v2622_v11, %v2621_v34  ;;  %v3304_v35 = vadd.f32 %v3303_v42, %v3302_v47 }
 0x409   : > { %6477 = vpush %v2623_v4 }
 0x43a   : > { %s6478_s29 = spop %6477 }
 0x43b   : > { %v2625_v12 = vstv %s6478_s29 }
 0x49a   : > { %v3279_v15 = vpop.f32.mrb[0].mxu0 }
 0x49b   : > { %v5843_v58 = vpop.f32.mrb[1].mxu0 }
 0x49c   : > { %v2984_v50 = vpop.f32.mrb[0].mxu1 }
 0x49d   : > { %v6428_v59 = vadd.f32 %v3279_v15, %v2984_v50  ;;  %v5738_v54 = vpop.f32.mrb[1].mxu1 }
 0x49f   : > { %v3283_v2 = vmul.f32 %v6428_v59, %v7567_v31 }
 0x4a1   : > { %v3284_v30 = vsel %vm2614_vm3, %v3283_v2, 0.0 }
 0x4a2   : > { %3285 = vadd.xlane.f32.xlu0 %v3284_v30 }
 0x52f   : > { %v3286_v44 = vpop.xlane.xlu0 %3285 }
 0x530   : > { %v3287_v19 = vrot.slane %v3286_v44, 4 }
 0x532   : > { %v3288_v37 = vadd.f32 %v3287_v19, %v3286_v44 }
 0x534   : > { %v3289_v36 = vrot.slane %v3288_v37, 2 }
 0x536   : > { %v3290_v31 = vadd.f32 %v3289_v36, %v3288_v37 }
 0x538   : > { %v3291_v48 = vrot.slane %v3290_v31, 1 }
 0x53a   : > { %v3292_v27 = vadd.f32 %v3291_v48, %v3290_v31 }
 0x53c   : > { %6479 = vpush %v3292_v27 }
 0x53d   : > { %6481 = vpush %v3304_v35 }
 0x56d   : > { %s6480_s12 = spop %6479 }
 0x56e   : > { %s6482_s14 = spop %6481  ;;  %v3294_v17 = vstv %s6480_s12 }
 0x56f   : > { %v3306_v29 = vstv %s6482_s14 }
 0x570   : > { %v3307_v26 = vmul.f32 256.0, %v3306_v29  ;;  %v3309_v45 = vmul.f32 2.0, %v3306_v29 }
 0x572   : > { %v3308_v56 = vsub.f32 %v2625_v12, %v3307_v26  ;;  %v3310_v60 = vmul.f32 %v3309_v45, %v2625_v12  ;;  %v3312_v40 = vmul.f32 %v3307_v26, %v3306_v29 }
 0x574   : > { %v3311_v16 = vsub.f32 %v3294_v17, %v3310_v60  ;;  %v3314_v43 = vmul.f32 0.00390625, %v3308_v56 }
 0x576   : > { %v3313_v51 = vadd.f32 %v3312_v40, %v3311_v16  ;;  %3320 = vst.msk [vmem:[#allocation7] sm:$0x1] %vm3319_vm4, %v3314_v43  ;;  %v3316_v13 = vmul.f32 %v3314_v43, %v3314_v43 }
 0x578   : > { %v3315_v33 = vmul.f32 0.00390625, %v3313_v51 }
 0x57a   : > { %v3317_v41 = vsub.f32 %v3315_v33, %v3316_v13 }
 0x57c   : > { %v3318_v39 = vmax.f32 %v3317_v41, 0.0 }
 0x57e   : > { %v3321_v23 = vadd.f32 1e-05, %v3318_v39 }
 0x580   : > { %6565 = vrsqrt.f32 %v3321_v23 }
 0x58a   : > { %v6566_v57 = vpop.eup %6565 }
 0x58b   : > { %3323 = vst.msk [vmem:[#allocation8] sm:$0x1] %vm3319_vm4, %v6566_v57 }
 0x58c PF: > { %p4874_p3 = scmp.ne.s32.totalorder %s6670_s22, 1 }
 0x58d   : > { %v3336_v5 = vld [vmem:[%s8097_s3] sm:$0xff] (!%p4874_p3)  ;;  %v3337_v28 = vld [vmem:[%s8097_s3 + $0x8] sm:$0xff] (!%p4874_p3)  ;;  %v3338_v10 = vld [vmem:[%s8097_s3 + $0x10] sm:$0xff] (!%p4874_p3)  ;;  %vm3340_vm5 = vcmask (!%p4874_p3), 261120   ;;  %vm4429_vm9 = vcmask (!%p4874_p3), 1041409   ;;  %vm4431_vm11 = vcmask (!%p4874_p3), 1042434  }
 0x58e   : > { %3327 = sbr.rel (%p4874_p3) target bundleno = 2518 (0x9d6), region = 56  ;;  %v3366_v6 = vand.u32 (!%p4874_p3), 4294901760, %v3336_v5  ;;  %v3369_v24 = vand.u32 (!%p4874_p3), 4294901760, %v3337_v28  ;;  %v7747_v18 = vld [vmem:[%s8097_s3 + $0x18] sm:$0xff] (!%p4874_p3)  ;;  %v3372_v63 = vand.u32 (!%p4874_p3), 4294901760, %v3338_v10  ;;  %v3328_v3 = vld [vmem:[%s6814_s28] sm:$0xff] (!%p4874_p3) }
 0x58f   : > { %v3329_v7 = vld [vmem:[%s6814_s28 + $0x8] sm:$0xff] (!%p4874_p3)  ;;  %v3375_v38 = vand.u32 (!%p4874_p3), 4294901760, %v7747_v18  ;;  %v3342_v9 = vsel (!%p4874_p3), %vm3340_vm5, %v3328_v3, 0  ;;  %v3330_v53 = vld [vmem:[%s6814_s28 + $0x10] sm:$0xff] (!%p4874_p3)  ;;  %v3331_v8 = vld [vmem:[%s6814_s28 + $0x18] sm:$0xff] (!%p4874_p3)  ;;  %vm4433_vm0 = vcmask (!%p4874_p3), 1043459  }
 0x590   : > { %v3345_v20 = vsel (!%p4874_p3), %vm3340_vm5, %v3329_v7, 0  ;;  %v7756_v21 = vpack.c.bf16 (!%p4874_p3), %v3369_v24, %v3366_v6  ;;  %v7758_v0 = vand.u32 (!%p4874_p3), 4294901760, %v3342_v9  ;;  %v7762_v14 = vsub.f32 (!%p4874_p3), %v3336_v5, %v3366_v6  ;;  %v3332_v46 = vld [vmem:[%s6814_s28 + $0x20] sm:$0xff] (!%p4874_p3)  ;;  %v3333_v15 = vld [vmem:[%s6814_s28 + $0x28] sm:$0xff] (!%p4874_p3)  ;;  %v3334_v26 = vld [vmem:[%s6814_s28 + $0x30] sm:$0xff] (!%p4874_p3) }
 0x591   : > { %v7760_v25 = vand.u32 (!%p4874_p3), 4294901760, %v3345_v20  ;;  %v7768_v58 = vpack.c.bf16 (!%p4874_p3), %v3375_v38, %v3372_v63  ;;  %v7770_v50 = vsub.f32 (!%p4874_p3), %v3337_v28, %v3369_v24  ;;  %v3348_v59 = vsel (!%p4874_p3), %vm3340_vm5, %v3330_v53, 0  ;;  %v3335_v51 = vld [vmem:[%s6814_s28 + $0x38] sm:$0xff] (!%p4874_p3) }
 0x592   : > { %v3351_v54 = vsel (!%p4874_p3), %vm3340_vm5, %v3331_v8, 0  ;;  %6253 = vmatprep.subr.bf16.mxu1 (!%p4874_p3), %v7756_v21  ;;  %6277 = vmatprep.subr.bf16.mxu0 (!%p4874_p3), %v7756_v21  ;;  %v7777_v55 = vsub.f32 (!%p4874_p3), %v3342_v9, %v7758_v0  ;;  %v3517_v62 = vand.u32 (!%p4874_p3), 4294901760, %v7762_v14  ;;  %v7783_v30 = vand.u32 (!%p4874_p3), 4294901760, %v3348_v59 }
 0x593   : > { %v7780_v2 = vsub.f32 (!%p4874_p3), %v3345_v20, %v7760_v25  ;;  %6255 = vmatpush3.bf16.msra.mxu1 (!%p4874_p3), %v7756_v21  ;;  %6279 = vmatpush3.bf16.msra.mxu0 (!%p4874_p3), %v7756_v21  ;;  %v3524_v1 = vand.u32 (!%p4874_p3), 4294901760, %v7770_v50  ;;  %v7788_v49 = vand.u32 (!%p4874_p3), 4294901760, %v3351_v54  ;;  %v3354_v34 = vsel (!%p4874_p3), %vm3340_vm5, %v3332_v46, 0 }
 0x594   : > { %v3357_v11 = vsel (!%p4874_p3), %vm3340_vm5, %v3333_v15, 0  ;;  %6257 = vmatprep.subr.bf16.mxu1 (!%p4874_p3), %v7768_v58  ;;  %6281 = vmatprep.subr.bf16.mxu0 (!%p4874_p3), %v7768_v58  ;;  %v3436_v4 = vand.u32 (!%p4874_p3), 4294901760, %v7777_v55  ;;  %v3518_v22 = vsub.f32 (!%p4874_p3), %v7762_v14, %v3517_v62  ;;  %v7798_v52 = vsub.f32 (!%p4874_p3), %v3348_v59, %v7783_v30 }
 0x595   : > { %v3446_v32 = vand.u32 4294901760, %v7780_v2  ;;  %v3525_v61 = vsub.f32 %v7770_v50, %v3524_v1  ;;  %v6284_v44 = vpack.c.bf16 %v3524_v1, %v3517_v62  ;;  %v7802_v19 = vsub.f32 %v3351_v54, %v7788_v49 }
 0x596   : > { %v7804_v37 = vand.u32 4294901760, %v3354_v34  ;;  %v3437_v47 = vsub.f32 %v7777_v55, %v3436_v4  ;;  %5912 = vmatprep.mubr.f32.mxu0 %v3436_v4  ;;  %v3519_v31 = vand.u32 4294901760, %v3518_v22  ;;  %v3456_v42 = vand.u32 4294901760, %v7798_v52 }
 0x597   : > { %v3447_v36 = vsub.f32 %v7780_v2, %v3446_v32  ;;  %6259 = vmatpush3.bf16.msra.mxu1 %v7768_v58  ;;  %6283 = vmatpush3.bf16.msra.mxu0 %v7768_v58  ;;  %v3526_v48 = vand.u32 4294901760, %v3525_v61  ;;  %v3466_v27 = vand.u32 4294901760, %v7802_v19  ;;  %v7815_v29 = vand.u32 4294901760, %v3357_v11 }
 0x598   : > { %v7813_v35 = vsub.f32 %v3354_v34, %v7804_v37  ;;  %v3438_v45 = vand.u32 4294901760, %v3437_v47  ;;  %6285 = vmatprep.subr.bf16.mxu0 %v6284_v44  ;;  %v3457_v56 = vsub.f32 %v7798_v52, %v3456_v42  ;;  %v3530_v60 = vsub.f32 %v3338_v10, %v3372_v63 }
 0x599   : > { %v3448_v12 = vand.u32 4294901760, %v3447_v36  ;;  %v6260_v17 = vpack.c.bf16 %v3526_v48, %v3519_v31  ;;  %v3467_v16 = vsub.f32 %v7802_v19, %v3466_v27  ;;  %v7822_v43 = vsub.f32 %v3357_v11, %v7815_v29  ;;  %v4152_v36 = vld [vmem:[%s6809_s10 + $0x8] sm:$0xff] }
 0x59a   : > { %v3476_v40 = vand.u32 4294901760, %v7813_v35  ;;  %5852 = vmatprep.mubr.f32.mxu1 %v3438_v45  ;;  %5913 = vmatmul.mubr.f32.vlgmr.msra.gmra.mrb[0].mxu0 %v3446_v32  ;;  %v3458_v33 = vand.u32 4294901760, %v3457_v56  ;;  %v3531_v13 = vand.u32 4294901760, %v3530_v60  ;;  %v3537_v41 = vsub.f32 %v7747_v18, %v3375_v38 }
 0x59b   : > { %v3360_v39 = vsel %vm3340_vm5, %v3334_v26, 0  ;;  %5853 = vmatmul.mubr.f32.vlgmr.msra.gmra.mrb[0].mxu1 %v3448_v12  ;;  %6261 = vmatprep.subr.bf16.mxu1 %v6260_v17  ;;  %v3468_v23 = vand.u32 4294901760, %v3467_v16  ;;  %v3486_v5 = vand.u32 4294901760, %v7822_v43  ;;  %v3363_v24 = vsel %vm3340_vm5, %v3335_v51, 0 }
 0x59c   : > { %v3477_v57 = vsub.f32 %v7813_v35, %v3476_v40  ;;  %v7831_v28 = vand.u32 4294901760, %v3360_v39  ;;  %6263 = vmatpush3.bf16.msra.mxu1 %v6260_v17  ;;  %6287 = vmatpush3.bf16.msra.mxu0 %v6284_v44  ;;  %v3532_v10 = vsub.f32 %v3530_v60, %v3531_v13  ;;  %v3538_v6 = vand.u32 4294901760, %v3537_v41 }
 0x59d   : > { %5855 = vmatprep.mubr.f32.mxu1 %v3458_v33  ;;  %5915 = vmatprep.mubr.f32.mxu0 %v3456_v42  ;;  %v3487_v63 = vsub.f32 %v7822_v43, %v3486_v5  ;;  %v7838_v7 = vand.u32 4294901760, %v3363_v24  ;;  %v6268_v1 = vpack.c.bf16 %v7770_v50, %v7762_v14  ;;  %v6272_v32 = vpack.c.bf16 %v3537_v41, %v3530_v60 }
 0x59e   : > { %v3478_v18 = vand.u32 4294901760, %v3477_v57  ;;  %v7836_v3 = vsub.f32 %v3360_v39, %v7831_v28  ;;  %5916 = vmatmul.mubr.f32.gmra.mrb[2].mxu0 %v3466_v27  ;;  %v3533_v38 = vand.u32 4294901760, %v3532_v10  ;;  %v3539_v9 = vsub.f32 %v3537_v41, %v3538_v6  ;;  %v7893_v41 = vld [vmem:[#allocation5] ss:$0 sm:$0xff] }
 0x59f   : > { %v6288_v20 = vpack.c.bf16 %v3538_v6, %v3531_v13  ;;  %5856 = vmatmul.mubr.f32.gmra.mrb[2].mxu1 %v3468_v23  ;;  %5918 = vmatprep.mubr.f32.mxu0 %v3476_v40  ;;  %v3488_v53 = vand.u32 4294901760, %v3487_v63  ;;  %v3505_v46 = vsub.f32 %v3363_v24, %v7838_v7  ;;  %v4173_v14 = vlaneseq }
 0x5a0   : > { %v3496_v8 = vand.u32 4294901760, %v7836_v3  ;;  %5858 = vmatprep.mubr.f32.mxu1 %v3478_v18  ;;  %v3540_v15 = vand.u32 4294901760, %v3539_v9  ;;  %v4876_v18 = vld [vmem:[#allocation6] ss:$0 sm:$0xff]  ;;  %vm4435_vm1 = vcmask 1044484   ;;  %vm4437_vm2 = vcmask 1045509  }
 0x5a1   : > { %6289 = vmatprep.subr.bf16.mxu0 %v6288_v20  ;;  %v3506_v54 = vand.u32 4294901760, %v3505_v46  ;;  %v7881_v50 = vshrl.u32 %v4173_v14, 7  ;;  %vm4439_vm3 = vcmask 1046534   ;;  %vm4441_vm4 = vcmask 1047559  }
 0x5a2   : > { %6291 = vmatpush3.bf16.msra.mxu0 %v6288_v20  ;;  %v3497_v59 = vsub.f32 %v7836_v3, %v3496_v8  ;;  %v6264_v62 = vpack.c.bf16 %v3540_v15, %v3533_v38  ;;  %v4156_v20 = vld [vmem:[%s6809_s10 + $0x28] sm:$0xff]  ;;  %v4877_v15 = vld [vmem:[%s8098_s4] ss:$0 sm:$0xff]  ;;  %vm4444_vm5 = vcmask 64512  }
 0x5a3   : > { %5919 = vmatmul.mubr.f32.gmra.mrb[4].mxu0 %v3486_v5  ;;  %6293 = vmatprep.subr.bf16.mxu0 %v7756_v21  ;;  %v3507_v11 = vsub.f32 %v3505_v46, %v3506_v54  ;;  %v7886_v44 = vsub.s32 0, %v7881_v50 }
 0x5a4   : > { %5859 = vmatmul.mubr.f32.gmra.mrb[4].mxu1 %v3488_v53  ;;  %v3498_v34 = vand.u32 4294901760, %v3497_v59  ;;  %5921 = vmatprep.mubr.f32.mxu0 %v3496_v8 }
 0x5a5   : > { %6265 = vmatprep.subr.bf16.mxu1 %v6264_v62  ;;  %v3508_v4 = vand.u32 4294901760, %v3507_v11 }
 0x5a6   : > { %6267 = vmatpush3.bf16.msra.mxu1 %v6264_v62  ;;  %5861 = vmatprep.mubr.f32.mxu1 %v3498_v34  ;;  %v4155_v34 = vld [vmem:[%s6809_s10 + $0x20] sm:$0xff] }
 0x5a7   : > { %5922 = vmatmul.mubr.f32.gmra.mrb[6].mxu0 %v3506_v54  ;;  %6269 = vmatprep.subr.bf16.mxu1 %v6268_v1 }
 0x5a8   : > { %5862 = vmatmul.mubr.f32.gmra.mrb[6].mxu1 %v3508_v4  ;;  %5932 = vmatprep.mubr.f32.mxu0 %v7758_v0 }
 0x5a9   : > { %5872 = vmatprep.mubr.f32.mxu1 %v7758_v0 }
 0x5ab   : > { %5933 = vmatmul.mubr.f32.vlgmr.msra.gmra.mrb[0].mxu0 %v7760_v25 }
 0x5ac   : > { %5873 = vmatmul.mubr.f32.vlgmr.msra.gmra.mrb[0].mxu1 %v7760_v25  ;;  %6295 = vmatpush3.bf16.msra.mxu0 %v7756_v21  ;;  %v6689_v21 = vmov 0  }
 0x5ad   : > { %6271 = vmatpush3.bf16.msra.mxu1 %v6268_v1  ;;  %5875 = vmatprep.mubr.f32.mxu1 %v7783_v30 }
 0x5ae   : > { %5935 = vmatprep.mubr.f32.mxu0 %v7783_v30  ;;  %6273 = vmatprep.subr.bf16.mxu1 %v6272_v32 }
 0x5af   : > { %5936 = vmatmul.mubr.f32.gmra.mrb[2].mxu0 %v7788_v49  ;;  %6297 = vmatprep.subr.bf16.mxu0 %v7768_v58 }
 0x5b0   : > { %5876 = vmatmul.mubr.f32.gmra.mrb[2].mxu1 %v7788_v49  ;;  %5938 = vmatprep.mubr.f32.mxu0 %v7804_v37 }
 0x5b1   : > { %5878 = vmatprep.mubr.f32.mxu1 %v7804_v37  ;;  %6275 = vmatpush3.bf16.msra.mxu1 %v6272_v32 }
 0x5b2   : > { %6299 = vmatpush3.bf16.msra.mxu0 %v7768_v58  ;;  %6567 = vset.pattern.permute.xlu0 %v6689_v21 }
 0x5b3   : > { %5939 = vmatmul.mubr.f32.gmra.mrb[4].mxu0 %v7815_v29  ;;  %6568 = vset.pattern.permute.xlu1 %v6689_v21 }
 0x5b4   : > { %5879 = vmatmul.mubr.f32.gmra.mrb[4].mxu1 %v7815_v29  ;;  %5941 = vmatprep.mubr.f32.mxu0 %v7831_v28 }
 0x5b5   : > { %5881 = vmatprep.mubr.f32.mxu1 %v7831_v28 }
 0x5b7   : > { %5942 = vmatmul.mubr.f32.gmra.mrb[6].mxu0 %v7838_v7 }
 0x5b8   : > { %5882 = vmatmul.mubr.f32.gmra.mrb[6].mxu1 %v7838_v7  ;;  %5952 = vmatprep.mubr.f32.mxu0 %v7758_v0  ;;  %v6690_v0 = vmov 1966171168  }
 0x5b9   : > { %5892 = vmatprep.mubr.f32.mxu1 %v7777_v55 }
 0x5bb   : > { %5953 = vmatmul.mubr.f32.vlgmr.msra.gmra.mrb[0].mxu0 %v7760_v25  ;;  %v4171_v25 = vunpack.c.l.s4 %v6690_v0 }
 0x5bc   : > { %5893 = vmatmul.mubr.f32.vlgmr.msra.gmra.mrb[0].mxu1 %v7780_v2  ;;  %5955 = vmatprep.mubr.f32.mxu0 %v7783_v30  ;;  %v4167_v2 = vld [vmem:[%s6804_s27] sm:$0xff] }
 0x5bd   : > { %5895 = vmatprep.mubr.f32.mxu1 %v7798_v52  ;;  %v4172_v58 = vunpack.c.0.s8 %v4171_v25 }
 0x5bf   : > { %5956 = vmatmul.mubr.f32.gmra.mrb[2].mxu0 %v7788_v49  ;;  %v4175_v55 = vsub.s32 %v4172_v58, %v7881_v50  ;;  %v4169_v49 = vcombine.high %v4167_v2, %v4167_v2 }
 0x5c0   : > { %5896 = vmatmul.mubr.f32.gmra.mrb[2].mxu1 %v7802_v19  ;;  %5958 = vmatprep.mubr.f32.mxu0 %v7804_v37 }
 0x5c1   : > { %5898 = vmatprep.mubr.f32.mxu1 %v7813_v35  ;;  %v4176_v30 = vrot.slane %v4167_v2, %v4175_v55  ;;  %v4183_v52 = vrot.slane %v4169_v49, %v4175_v55 }
 0x5c3   : > { %5959 = vmatmul.mubr.f32.gmra.mrb[4].mxu0 %v7815_v29  ;;  %v4184_v22 = vcombine.high %v4176_v30, %v4176_v30  ;;  %v4192_v19 = vrot.slane %v4176_v30, %v4175_v55  ;;  %v4185_v42 = vcombine.high %v4183_v52, %v4183_v52  ;;  %v4151_v29 = vld [vmem:[%s6809_s10] sm:$0xff]  ;;  %v4199_v13 = vrot.slane %v4183_v52, %v4175_v55  ;;  %v4158_v52 = vld [vmem:[%s6809_s10 + $0x38] sm:$0xff] }
 0x5c4   : > { %5899 = vmatmul.mubr.f32.gmra.mrb[4].mxu1 %v7822_v43  ;;  %5961 = vmatprep.mubr.f32.mxu0 %v7831_v28  ;;  %v4154_v43 = vld [vmem:[%s6809_s10 + $0x18] sm:$0xff]  ;;  %v4153_v28 = vld [vmem:[%s6809_s10 + $0x10] sm:$0xff] }
 0x5c5   : > { %5901 = vmatprep.mubr.f32.mxu1 %v7836_v3  ;;  %v4206_v61 = vrot.slane %v4184_v22, %v4175_v55  ;;  %v4221_v12 = vrot.slane %v4192_v19, %v7886_v44  ;;  %v4214_v56 = vcombine.high %v4192_v19, %v4192_v19  ;;  %v4213_v33 = vrot.slane %v4185_v42, %v4175_v55  ;;  %v4157_v42 = vld [vmem:[%s6809_s10 + $0x30] sm:$0xff] }
 0x5c6   : > { %v4215_v0 = vcombine.high %v4199_v13, %v4199_v13 }
 0x5c7   : > { %5962 = vmatmul.mubr.f32.gmra.mrb[6].mxu0 %v7838_v7  ;;  %v4225_v27 = vrot.slane %v4206_v61, %v7886_v44  ;;  %v4216_v26 = vcombine.high %v4206_v61, %v4206_v61  ;;  %v4229_v24 = vrot.slane %v4214_v56, %v7886_v44  ;;  %v4241_v53 = vrot.slane %v4213_v33, %v7886_v44 }
 0x5c8   : > { %5902 = vmatmul.mubr.f32.gmra.mrb[6].mxu1 %v3505_v46  ;;  %v4237_v46 = vrot.slane %v4199_v13, %v7886_v44  ;;  %v4217_v11 = vcombine.high %v4213_v33, %v4213_v33 }
 0x5c9   : > { %v4233_v57 = vrot.slane %v4216_v26, %v7886_v44 }
 0x68e   : > { %v5954_v37 = vpop.f32.mrb[0].mxu0 }
 0x68f   : > { %v5894_v47 = vpop.f32.mrb[0].mxu1  ;;  %v4105_v31 = vpop.f32.mrb[1].mxu0 }
 0x690   : > { %v6437_v48 = vadd.f32 %v5954_v37, %v5894_v47  ;;  %v3723_v35 = vpop.f32.mrb[1].mxu1 }
 0x691   : > { %v6438_v45 = vadd.f32 %v4105_v31, %v3723_v35 }
 0x692   : > { %v4160_v60 = vadd.f32 %v6437_v48, %v4152_v36  ;;  %v5957_v17 = vpop.f32.mrb[2].mxu0  ;;  %v4249_v36 = vrot.slane %v4217_v11, %v7886_v44 }
 0x693   : > { %v4159_v16 = vadd.f32 %v6438_v45, %v4151_v29  ;;  %v5897_v40 = vpop.f32.mrb[2].mxu1  ;;  %v4117_v51 = vpop.f32.mrb[3].mxu0  ;;  %v4245_v29 = vrot.slane %v4215_v0, %v7886_v44 }
 0x694   : > { %v4259_v39 = vadd.f32 %v4225_v27, %v4160_v60  ;;  %v6439_v23 = vadd.f32 %v5957_v17, %v5897_v40  ;;  %v3737_v5 = vpop.f32.mrb[3].mxu1 }
 0x695   : > { %v4258_v10 = vadd.f32 %v4221_v12, %v4159_v16  ;;  %v6440_v6 = vadd.f32 %v4117_v51, %v3737_v5 }
 0x696   : > { %v4162_v63 = vadd.f32 %v6439_v23, %v4154_v43  ;;  %v5960_v3 = vpop.f32.mrb[4].mxu0  ;;  %v4274_v7 = vsub.f32 %v4259_v39, %v7893_v41 }
 0x697   : > { %v4161_v38 = vadd.f32 %v6440_v6, %v4153_v28  ;;  %v5900_v9 = vpop.f32.mrb[4].mxu1  ;;  %v4129_v8 = vpop.f32.mrb[5].mxu0  ;;  %v4273_v59 = vsub.f32 %v4258_v10, %v7893_v41 }
 0x698   : > { %v4261_v54 = vadd.f32 %v4233_v57, %v4162_v63  ;;  %v6441_v62 = vadd.f32 %v5960_v3, %v5900_v9  ;;  %v3751_v1 = vpop.f32.mrb[5].mxu1  ;;  %v7907_v4 = vmul.f32 %v4876_v18, %v4274_v7  ;;  %v4879_v63 = vld [vmem:[#allocation8] ss:$0 sm:$0xff]  ;;  %v4878_v3 = vld [vmem:[#allocation7] ss:$0 sm:$0xff] }
 0x699   : > { %v4260_v32 = vadd.f32 %v4229_v24, %v4161_v38  ;;  %v6442_v21 = vadd.f32 %v4129_v8, %v3751_v1  ;;  %v7909_v25 = vmul.f32 %v4876_v18, %v4273_v59 }
 0x69a   : > { %v4164_v58 = vadd.f32 %v6441_v62, %v4156_v20  ;;  %v5963_v55 = vpop.f32.mrb[6].mxu0  ;;  %v4304_v2 = vmul.f32 %v4877_v15, %v7907_v4  ;;  %v4276_v30 = vsub.f32 %v4261_v54, %v7893_v41 }
 0x69b   : > { %v4163_v49 = vadd.f32 %v6442_v21, %v4155_v34  ;;  %v5903_v22 = vpop.f32.mrb[6].mxu1  ;;  %v4141_v61 = vpop.f32.mrb[7].mxu0  ;;  %v4275_v19 = vsub.f32 %v4260_v32, %v7893_v41  ;;  %v4303_v26 = vmul.f32 %v4877_v15, %v7909_v25 }
 0x69c   : > { %v4263_v37 = vadd.f32 %v4241_v53, %v4164_v58  ;;  %v6443_v47 = vadd.f32 %v5963_v55, %v5903_v22  ;;  %4313 = vadd.xlane.f32.xlu0 %v4304_v2  ;;  %v3765_v31 = vpop.f32.mrb[7].mxu1  ;;  %v7917_v48 = vmul.f32 %v4876_v18, %v4276_v30 }
 0x69d   : > { %v4262_v27 = vadd.f32 %v4237_v46, %v4163_v49  ;;  %v6444_v35 = vadd.f32 %v4141_v61, %v3765_v31  ;;  %v7922_v56 = vmul.f32 %v4876_v18, %v4275_v19  ;;  %v4396_v46 = vand.u32 127, %v4173_v14 }
 0x69e   : > { %v4166_v45 = vadd.f32 %v6443_v47, %v4158_v52  ;;  %v4306_v12 = vmul.f32 %v4877_v15, %v7917_v48  ;;  %v4278_v60 = vsub.f32 %v4263_v37, %v7893_v41 }
 0x69f   : > { %v4165_v17 = vadd.f32 %v6444_v35, %v4157_v42  ;;  %v4277_v16 = vsub.f32 %v4262_v27, %v7893_v41  ;;  %v4305_v33 = vmul.f32 %v4877_v15, %v7922_v56  ;;  %v7943_v49 = vsub.s32 %v4396_v46, %v7881_v50 }
 0x6a0   : > { %v4265_v40 = vadd.f32 %v4249_v36, %v4166_v45  ;;  %4311 = vadd.xlane.f32.xlu0 %v4303_v26  ;;  %4317 = vadd.xlane.f32.xlu1 %v4306_v12  ;;  %v7929_v13 = vmul.f32 %v4876_v18, %v4278_v60  ;;  %v4459_v46 = vsub.s32 2, %v7881_v50 }
 0x6a1   : > { %v4264_v43 = vadd.f32 %v4245_v29, %v4165_v17  ;;  %v7926_v51 = vmul.f32 %v4876_v18, %v4277_v16 }
 0x6a2   : > { %v4280_v39 = vsub.f32 %v4265_v40, %v7893_v41  ;;  %v4308_v28 = vmul.f32 %v4877_v15, %v7929_v13 }
 0x6a3   : > { %v4307_v23 = vmul.f32 %v4877_v15, %v7926_v51  ;;  %v4279_v57 = vsub.f32 %v4264_v43, %v7893_v41 }
 0x6a4   : > { %4315 = vadd.xlane.f32.xlu1 %v4305_v33  ;;  %v7937_v10 = vmul.f32 %v4876_v18, %v4280_v39 }
 0x6a5   : > { %4319 = vadd.xlane.f32.xlu0 %v4307_v23  ;;  %v7934_v5 = vmul.f32 %v4876_v18, %v4279_v57 }
 0x6a6   : > { %v4310_v24 = vmul.f32 %v4877_v15, %v7937_v10 }
 0x6a7   : > { %v4309_v6 = vmul.f32 %v4877_v15, %v7934_v5 }
 0x6a8   : > { %4321 = vadd.xlane.f32.xlu1 %v4308_v28 }
 0x6a9   : > { %4323 = vadd.xlane.f32.xlu0 %v4309_v6 }
 0x6ac   : > { %4325 = vadd.xlane.f32.xlu1 %v4310_v24 }
 0x6bd   : > { %4352 = vperm.xlu1 %6568, %v4879_v63  }
 0x6bf   : > { %4334 = vperm.xlu0 %6567, %v4878_v3  }
 0x729   : > { %v4314_v41 = vpop.xlane.xlu0 %4313 }
 0x72d   : > { %v4318_v7 = vpop.xlane.xlu1 %4317  ;;  %v4312_v38 = vpop.xlane.xlu0 %4311 }
 0x731   : > { %v4316_v9 = vpop.xlane.xlu1 %4315 }
 0x732   : > { %v4320_v20 = vpop.xlane.xlu0 %4319 }
 0x735   : > { %v4322_v53 = vpop.xlane.xlu1 %4321 }
 0x736   : > { %v4324_v8 = vpop.xlane.xlu0 %4323 }
 0x739   : > { %v4326_v18 = vpop.xlane.xlu1 %4325 }
 0x73d   : > { %v4353_v54 = vpop.permute.xlu1 %4352 }
 0x73e   : > { %v4335_v59 = vpop.permute.xlu0 %4334 }
 0x73f   : > { %v4337_v62 = vsub.f32 %v4312_v38, %v4335_v59  ;;  %v4338_v1 = vsub.f32 %v4314_v41, %v4335_v59  ;;  %v4339_v15 = vsub.f32 %v4316_v9, %v4335_v59  ;;  %v4340_v34 = vsub.f32 %v4318_v7, %v4335_v59 }
 0x740   : > { %v4341_v11 = vsub.f32 %v4320_v20, %v4335_v59  ;;  %v4342_v32 = vsub.f32 %v4322_v53, %v4335_v59  ;;  %v4343_v21 = vsub.f32 %v4324_v8, %v4335_v59  ;;  %v4344_v0 = vsub.f32 %v4326_v18, %v4335_v59 }
 0x741   : > { %v4355_v58 = vmul.f32 %v4353_v54, %v4337_v62  ;;  %v4356_v55 = vmul.f32 %v4353_v54, %v4338_v1  ;;  %v4357_v2 = vmul.f32 %v4353_v54, %v4339_v15  ;;  %v4358_v30 = vmul.f32 %v4353_v54, %v4340_v34 }
 0x742   : > { %v4359_v22 = vmul.f32 %v4353_v54, %v4341_v11  ;;  %v4360_v52 = vmul.f32 %v4353_v54, %v4342_v32  ;;  %v4361_v19 = vmul.f32 %v4353_v54, %v4343_v21  ;;  %v4362_v37 = vmul.f32 %v4353_v54, %v4344_v0 }
 0x743   : > { %v4371_v14 = vmul.f32 0.01, %v4355_v58  ;;  %v4372_v61 = vmul.f32 0.01, %v4356_v55  ;;  %vm4363_vm6 = vcmp.gt.f32.partialorder %v4355_v58, 0.0  ;;  %vm4364_vm7 = vcmp.gt.f32.partialorder %v4356_v55, 0.0 }
 0x744   : > { %vm4365_vm8 = vcmp.gt.f32.partialorder %v4357_v2, 0.0  ;;  %vm4366_vm10 = vcmp.gt.f32.partialorder %v4358_v30, 0.0  ;;  %v4373_v47 = vmul.f32 0.01, %v4357_v2  ;;  %v4374_v36 = vmul.f32 0.01, %v4358_v30 }
 0x745   : > { %vm4367_vm12 = vcmp.gt.f32.partialorder %v4359_v22, 0.0  ;;  %v4375_v31 = vmul.f32 0.01, %v4359_v22  ;;  %v4376_v42 = vmul.f32 0.01, %v4360_v52  ;;  %v4379_v27 = vsel %vm4363_vm6, %v4355_v58, %v4371_v14 }
 0x746   : > { %vm4368_vm13 = vcmp.gt.f32.partialorder %v4360_v52, 0.0  ;;  %v4377_v35 = vmul.f32 0.01, %v4361_v19  ;;  %v4380_v29 = vsel %vm4364_vm7, %v4356_v55, %v4372_v61  ;;  %v4381_v26 = vsel %vm4365_vm8, %v4357_v2, %v4373_v47 }
 0x747   : > { %vm4369_vm14 = vcmp.gt.f32.partialorder %v4361_v19, 0.0  ;;  %v4378_v45 = vmul.f32 0.01, %v4362_v37  ;;  %v4382_v12 = vsel %vm4366_vm10, %v4358_v30, %v4374_v36  ;;  %v4400_v60 = vrot.slane %v4379_v27, %v7943_v49 }
 0x748   : > { %vm4370_vm15 = vcmp.gt.f32.partialorder %v4362_v37, 0.0  ;;  %v4383_v17 = vsel %vm4367_vm12, %v4359_v22, %v4375_v31  ;;  %v4404_v16 = vrot.slane %v4380_v29, %v7943_v49  ;;  %v4408_v40 = vrot.slane %v4381_v26, %v7943_v49 }
 0x749   : > { %v4384_v43 = vsel %vm4368_vm13, %v4360_v52, %v4376_v42  ;;  %v7948_v33 = vsel %vm4369_vm14, %v4361_v19, %v4377_v35  ;;  %v4412_v39 = vrot.slane %v4382_v12, %v7943_v49  ;;  %v7952_v57 = vsel %vm4370_vm15, %v4362_v37, %v4378_v45 }
 0x74a   : > { %v4430_v23 = vsel %vm4429_vm9, %v4404_v16, %v4400_v60  ;;  %v4416_v28 = vrot.slane %v4383_v17, %v7943_v49  ;;  %v4420_v24 = vrot.slane %v4384_v43, %v7943_v49  ;;  %v4424_v3 = vrot.slane %v7948_v33, %v7943_v49 }
 0x74b   : > { %v4432_v6 = vsel %vm4431_vm11, %v4408_v40, %v4430_v23  ;;  %v4428_v7 = vrot.slane %v7952_v57, %v7943_v49  ;;  %v4455_v8 = vsub.s32 1, %v7881_v50  ;;  %v4463_v18 = vsub.s32 3, %v7881_v50 }
 0x74c   : > { %v4434_v63 = vsel %vm4433_vm0, %v4412_v39, %v4432_v6  ;;  %v4467_v15 = vsub.s32 4, %v7881_v50  ;;  %v4471_v58 = vsub.s32 5, %v7881_v50  ;;  %v4475_v52 = vsub.s32 6, %v7881_v50 }
 0x74d   : > { %v4436_v41 = vsel %vm4435_vm1, %v4416_v28, %v4434_v63  ;;  %v4479_v37 = vsub.s32 7, %v7881_v50 }
 0x74e   : > { %v4438_v38 = vsel %vm4437_vm2, %v4420_v24, %v4436_v41 }
 0x74f   : > { %v4440_v9 = vsel %vm4439_vm3, %v4424_v3, %v4438_v38 }
 0x750   : > { %v4442_v20 = vsel %vm4441_vm4, %v4428_v7, %v4440_v9 }
 0x751   : > { %v4445_v53 = vsel %vm4444_vm5, %v4442_v20, -inf }
 0x752   : > { %4446 = vmax.xlane.f32.xlu1 %v4445_v53 }
 0x7df   : > { %v4447_v59 = vpop.xlane.xlu1 %4446 }
 0x7e0   : > { %v4452_v54 = vrot.slane %v4447_v59, %v7886_v44  ;;  %v4456_v62 = vrot.slane %v4447_v59, %v4455_v8  ;;  %v4464_v1 = vrot.slane %v4447_v59, %v4463_v18  ;;  %v4460_v34 = vrot.slane %v4447_v59, %v4459_v46 }
 0x7e1   : > { %v4468_v2 = vrot.slane %v4447_v59, %v4467_v15  ;;  %v4472_v14 = vrot.slane %v4447_v59, %v4471_v58  ;;  %v4476_v47 = vrot.slane %v4447_v59, %v4475_v52 }
 0x7e2   : > { %v4489_v11 = vsub.f32 %v4379_v27, %v4452_v54  ;;  %v4490_v32 = vsub.f32 %v4380_v29, %v4456_v62  ;;  %v4492_v21 = vsub.f32 %v4382_v12, %v4464_v1  ;;  %v4491_v30 = vsub.f32 %v4381_v26, %v4460_v34 }
 0x7e3   : > { %v4493_v61 = vsub.f32 %v4383_v17, %v4468_v2  ;;  %v4494_v36 = vsub.f32 %v4384_v43, %v4472_v14  ;;  %v4480_v27 = vrot.slane %v4447_v59, %v4479_v37  ;;  %v4495_v35 = vsub.f32 %v7948_v33, %v4476_v47 }
 0x7e4   : > { %v4497_v0 = vmul.f32 1.442695, %v4489_v11  ;;  %v4503_v55 = vmul.f32 1.442695, %v4492_v21  ;;  %v4499_v22 = vmul.f32 1.442695, %v4490_v32 }
 0x7e5   : > { %v4501_v19 = vmul.f32 1.442695, %v4491_v30  ;;  %v4505_v31 = vmul.f32 1.442695, %v4493_v61  ;;  %v4507_v29 = vmul.f32 1.442695, %v4494_v36  ;;  %v4496_v12 = vsub.f32 %v7952_v57, %v4480_v27 }
 0x7e6   : > { %6570 = vpow2.f32 %v4497_v0  ;;  %v4509_v60 = vmul.f32 1.442695, %v4495_v35 }
 0x7e7   : > { %6572 = vpow2.f32 %v4503_v55  ;;  %v4511_v16 = vmul.f32 1.442695, %v4496_v12 }
 0x7e8   : > { %6574 = vpow2.f32 %v4499_v22 }
 0x7e9   : > { %6576 = vpow2.f32 %v4501_v19 }
 0x7ea   : > { %6578 = vpow2.f32 %v4505_v31 }
 0x7eb   : > { %6580 = vpow2.f32 %v4507_v29 }
 0x7ec   : > { %6582 = vpow2.f32 %v4509_v60 }
 0x7ed   : > { %6584 = vpow2.f32 %v4511_v16 }
 0x7f0   : > { %v6571_v42 = vpop.eup %6570 }
 0x7f1   : > { %4522 = vperm.xlu0 %6567, %v6571_v42   ;;  %v6573_v26 = vpop.eup %6572 }
 0x7f2   : > { %v6575_v45 = vpop.eup %6574  ;;  %4531 = vperm.xlu1 %6568, %v6573_v26  }
 0x7f3   : > { %v6577_v17 = vpop.eup %6576 }
 0x7f4   : > { %v6579_v40 = vpop.eup %6578 }
 0x7f5   : > { %4525 = vperm.xlu0 %6567, %v6575_v45   ;;  %v6581_v43 = vpop.eup %6580 }
 0x7f6   : > { %v6583_v33 = vpop.eup %6582 }
 0x7f7   : > { %v6585_v39 = vpop.eup %6584 }
 0x7f9   : > { %4528 = vperm.xlu0 %6567, %v6577_v17  }
 0x7fd   : > { %4534 = vperm.xlu0 %6567, %v6579_v40  }
 0x801   : > { %4537 = vperm.xlu0 %6567, %v6581_v43  }
 0x805   : > { %4540 = vperm.xlu0 %6567, %v6583_v33  }
 0x809   : > { %4543 = vperm.xlu0 %6567, %v6585_v39  }
 0x870   : > { %v4523_v23 = vpop.permute.xlu0 %4522 }
 0x871   : > { %v4548_v41 = vrot.slane %v4523_v23, %v7943_v49  ;;  %v4532_v7 = vpop.permute.xlu1 %4531 }
 0x872   : > { %v4560_v59 = vrot.slane %v4532_v7, %v7943_v49 }
 0x874   : > { %v4526_v28 = vpop.permute.xlu0 %4525 }
 0x875   : > { %v4552_v57 = vrot.slane %v4526_v28, %v7943_v49 }
 0x877   : > { %v4577_v38 = vsel %vm4429_vm9, %v4552_v57, %v4548_v41 }
 0x878   : > { %v4529_v6 = vpop.permute.xlu0 %4528 }
 0x879   : > { %v4556_v63 = vrot.slane %v4529_v6, %v7943_v49 }
 0x87b   : > { %v4578_v9 = vsel %vm4431_vm11, %v4556_v63, %v4577_v38 }
 0x87c   : > { %v4535_v24 = vpop.permute.xlu0 %4534  ;;  %v4579_v1 = vsel %vm4433_vm0, %v4560_v59, %v4578_v9 }
 0x87d   : > { %v4564_v20 = vrot.slane %v4535_v24, %v7943_v49 }
 0x87f   : > { %v4580_v34 = vsel %vm4435_vm1, %v4564_v20, %v4579_v1 }
 0x880   : > { %v4538_v3 = vpop.permute.xlu0 %4537 }
 0x881   : > { %v4568_v54 = vrot.slane %v4538_v3, %v7943_v49 }
 0x883   : > { %v4581_v32 = vsel %vm4437_vm2, %v4568_v54, %v4580_v34 }
 0x884   : > { %v4541_v53 = vpop.permute.xlu0 %4540 }
 0x885   : > { %v4572_v62 = vrot.slane %v4541_v53, %v7943_v49 }
 0x887   : > { %v4582_v0 = vsel %vm4439_vm3, %v4572_v62, %v4581_v32 }
 0x888   : > { %v4544_v11 = vpop.permute.xlu0 %4543 }
 0x889   : > { %v4576_v21 = vrot.slane %v4544_v11, %v7943_v49 }
 0x88b   : > { %v4583_v55 = vsel %vm4441_vm4, %v4576_v21, %v4582_v0 }
 0x88c   : > { %v4585_v2 = vsel %vm4444_vm5, %v4583_v55, 0.0 }
 0x88d   : > { %4586 = vadd.xlane.f32.xlu1 %v4585_v2 }
 0x91a   : > { %v4587_v30 = vpop.xlane.xlu1 %4586 }
 0x91b   : > { %6586 = vrcp.f32 %v4587_v30 }
 0x925   : > { %v6587_v22 = vpop.eup %6586 }
 0x926   : > { %v4593_v14 = vrot.slane %v6587_v22, %v7886_v44  ;;  %v4597_v19 = vrot.slane %v6587_v22, %v4455_v8  ;;  %v4601_v49 = vrot.slane %v6587_v22, %v4459_v46  ;;  %v4605_v31 = vrot.slane %v6587_v22, %v4463_v18 }
 0x927   : > { %v4609_v35 = vrot.slane %v6587_v22, %v4467_v15  ;;  %v4613_v8 = vrot.slane %v6587_v22, %v4471_v58  ;;  %v4617_v46 = vrot.slane %v6587_v22, %v4475_v52  ;;  %v4621_v18 = vrot.slane %v6587_v22, %v4479_v37 }
 0x928   : > { %v4630_v61 = vmul.f32 %v6571_v42, %v4593_v14  ;;  %v4631_v47 = vmul.f32 %v6575_v45, %v4597_v19  ;;  %v4632_v36 = vmul.f32 %v6577_v17, %v4601_v49  ;;  %v4633_v27 = vmul.f32 %v6573_v26, %v4605_v31 }
 0x929   : > { %v4634_v44 = vmul.f32 %v6579_v40, %v4609_v35  ;;  %v4635_v42 = vmul.f32 %v6581_v43, %v4613_v8  ;;  %v4636_v29 = vmul.f32 %v6583_v33, %v4617_v46  ;;  %v4637_v26 = vmul.f32 %v6585_v39, %v4621_v18 }
 0x92a   : > { %4640 = vperm.xlu0 %6567, %v4630_v61  }
 0x92e   : > { %4645 = vperm.xlu0 %6567, %v4631_v47  }
 0x932   : > { %4650 = vperm.xlu0 %6567, %v4632_v36  }
 0x936   : > { %4655 = vperm.xlu0 %6567, %v4633_v27  }
 0x93a   : > { %4660 = vperm.xlu0 %6567, %v4634_v44  }
 0x93e   : > { %4665 = vperm.xlu0 %6567, %v4635_v42  }
 0x942   : > { %4670 = vperm.xlu0 %6567, %v4636_v29  }
 0x946   : > { %4675 = vperm.xlu0 %6567, %v4637_v26  }
 0x9a9   : > { %v4641_v45 = vpop.permute.xlu0 %4640 }
 0x9aa   : > { %v4678_v17 = vmul.f32 %v4641_v45, %v7909_v25 }
 0x9ac   : > { %v4686_v33 = vrot.slane %v4678_v17, 4 }
 0x9ad   : > { %v4646_v15 = vpop.permute.xlu0 %4645 }
 0x9ae   : > { %v4679_v60 = vmul.f32 %v4646_v15, %v7907_v4  ;;  %v4687_v6 = vadd.f32 %v4686_v33, %v4678_v17 }
 0x9b0   : > { %v4692_v40 = vrot.slane %v4679_v60, 4  ;;  %v4688_v41 = vrot.slane %v4687_v6, 2 }
 0x9b1   : > { %v4651_v12 = vpop.permute.xlu0 %4650 }
 0x9b2   : > { %v4680_v58 = vmul.f32 %v4651_v12, %v7922_v56  ;;  %v4693_v23 = vadd.f32 %v4692_v40, %v4679_v60  ;;  %v4689_v54 = vadd.f32 %v4688_v41, %v4687_v6 }
 0x9b4   : > { %v4698_v43 = vrot.slane %v4680_v58, 4  ;;  %v4694_v63 = vrot.slane %v4693_v23, 2  ;;  %v4690_v30 = vrot.slane %v4689_v54, 1 }
 0x9b5   : > { %v4656_v16 = vpop.permute.xlu0 %4655 }
 0x9b6   : > { %v4681_v52 = vmul.f32 %v4656_v16, %v7917_v48  ;;  %v4699_v28 = vadd.f32 %v4698_v43, %v4680_v58  ;;  %v4695_v20 = vadd.f32 %v4694_v63, %v4693_v23  ;;  %v4691_v27 = vadd.f32 %v4690_v30, %v4689_v54 }
 0x9b8   : > { %v4704_v50 = vrot.slane %v4681_v52, 4  ;;  %v4700_v3 = vrot.slane %v4699_v28, 2  ;;  %v4696_v21 = vrot.slane %v4695_v20, 1 }
 0x9b9   : > { %v4661_v37 = vpop.permute.xlu0 %4660 }
 0x9ba   : > { %v4682_v39 = vmul.f32 %v4661_v37, %v7926_v51  ;;  %v4705_v24 = vadd.f32 %v4704_v50, %v4681_v52  ;;  %v4701_v51 = vadd.f32 %v4700_v3, %v4699_v28  ;;  %v4697_v47 = vadd.f32 %v4696_v21, %v4695_v20 }
 0x9bc   : > { %v4710_v57 = vrot.slane %v4682_v39, 4  ;;  %v4706_v7 = vrot.slane %v4705_v24, 2  ;;  %v4702_v2 = vrot.slane %v4701_v51, 1  ;;  %v4742_v46 = vsel %vm4429_vm9, %v4697_v47, %v4691_v27 }
 0x9bd   : > { %v4666_v4 = vpop.permute.xlu0 %4665 }
 0x9be   : > { %v4711_v56 = vadd.f32 %v4710_v57, %v4682_v39  ;;  %v4683_v25 = vmul.f32 %v4666_v4, %v7929_v13  ;;  %v4707_v62 = vadd.f32 %v4706_v7, %v4705_v24  ;;  %v4703_v31 = vadd.f32 %v4702_v2, %v4701_v51 }
 0x9c0   : > { %v4716_v48 = vrot.slane %v4683_v25, 4  ;;  %v4712_v38 = vrot.slane %v4711_v56, 2  ;;  %v4708_v22 = vrot.slane %v4707_v62, 1  ;;  %v4743_v18 = vsel %vm4431_vm11, %v4703_v31, %v4742_v46 }
 0x9c1   : > { %v4671_v9 = vpop.permute.xlu0 %4670 }
 0x9c2   : > { %v4717_v53 = vadd.f32 %v4716_v48, %v4683_v25  ;;  %v4684_v59 = vmul.f32 %v4671_v9, %v7934_v5  ;;  %v4713_v11 = vadd.f32 %v4712_v38, %v4711_v56  ;;  %v4709_v35 = vadd.f32 %v4708_v22, %v4707_v62 }
 0x9c4   : > { %v4718_v1 = vrot.slane %v4717_v53, 2  ;;  %v4722_v34 = vrot.slane %v4684_v59, 4  ;;  %v4714_v19 = vrot.slane %v4713_v11, 1  ;;  %v4744_v45 = vsel %vm4433_vm0, %v4709_v35, %v4743_v18 }
 0x9c5   : > { %v4676_v32 = vpop.permute.xlu0 %4675 }
 0x9c6   : > { %v4719_v0 = vadd.f32 %v4718_v1, %v4717_v53  ;;  %v4723_v13 = vadd.f32 %v4722_v34, %v4684_v59  ;;  %v4685_v55 = vmul.f32 %v4676_v32, %v7937_v10  ;;  %v4715_v42 = vadd.f32 %v4714_v19, %v4713_v11 }
 0x9c8   : > { %v4724_v14 = vrot.slane %v4723_v13, 2  ;;  %v4728_v61 = vrot.slane %v4685_v55, 4  ;;  %v4720_v5 = vrot.slane %v4719_v0, 1  ;;  %v4745_v12 = vsel %vm4435_vm1, %v4715_v42, %v4744_v45 }
 0x9ca   : > { %v4725_v49 = vadd.f32 %v4724_v14, %v4723_v13  ;;  %v4729_v36 = vadd.f32 %v4728_v61, %v4685_v55  ;;  %v4721_v10 = vadd.f32 %v4720_v5, %v4719_v0 }
 0x9cc   : > { %v4726_v44 = vrot.slane %v4725_v49, 1  ;;  %v4730_v8 = vrot.slane %v4729_v36, 2  ;;  %v4746_v60 = vsel %vm4437_vm2, %v4721_v10, %v4745_v12 }
 0x9ce   : > { %v4731_v29 = vadd.f32 %v4730_v8, %v4729_v36  ;;  %v4727_v26 = vadd.f32 %v4726_v44, %v4725_v49 }
 0x9d0   : > { %v4732_v15 = vrot.slane %v4731_v29, 1  ;;  %v4747_v17 = vsel %vm4439_vm3, %v4727_v26, %v4746_v60 }
 0x9d2   : > { %v4733_v58 = vadd.f32 %v4732_v15, %v4731_v29 }
 0x9d4   : > { %v4748_v16 = vsel %vm4441_vm4, %v4733_v58, %v4747_v17 }
 0x9d5   : > { %4750 = vst [vmem:[%s261_s24] sm:$0xff] %v4748_v16 }
 0x9d6 PF: > { %s4759_s10 = smul.u32 %s6666_s21, %s6670_s22  ;;  %s4766_s12 = sshll.u32 %s261_s24, 4  ;;  %s8043_s12 = int_to_ptr.vmem [resolvable:$true] %s4766_s12 }
 0x9d7   : > { %s8109_s26 = sand.u32 1, %s6658_s19   ;;  %s6588_s8 = scalar_lea.vmem %s8043_s12, 128 }
 0x9d8   : > { %s4881_s14 = sshll.u32 %s4759_s10, 7  ;;  %s4752_s30 = scalar_lea.sflag [#allocation10], %s8109_s26 }
 0x9d9   : > { %s4764_s17 = scalar_lea.hbm %s8099_s5, %s4881_s14  ;;  %p6589_p4 = scmp.ne.s32.totalorder %s8043_s12, %s6588_s8 }
 0x9da   : > { %s6691_s21 = smov [#allocation9]  }
 0x9db   : > { %p6590_p5 = pnand %p6589_p4, %p6775_p6  ;;  %s6592_s22 = sshll.u32 %s6691_s21, 4  ;;  %s6593_s22 = int_to_ptr.vmem [resolvable:$false] %s6592_s22 }
 0x9dc   : > { %s6594_s24 = scalar_lea.vmem %s6593_s22, 256  ;;  %p6595_p9 = scmp.lt.s32.totalorder %s8043_s12, %s6593_s22 }
 0x9dd   : > { %p6591_p7 = pneg %p6590_p5  ;;  %p6596_p10 = scmp.lt.s32.totalorder %s6594_s24, %s6588_s8 }
 0x9df   : > { %p6597_p11 = por %p6596_p10, %p6595_p9 }
 0x9e1   : > { %p6598_p12 = pnand %p6597_p11, %p6591_p7 }
 0x9e3   : > { %6601 = shalt.err (!%p6598_p12)
}
 0x9e4   : > { %s6602_s13 = scalar_lea.hbm %s4764_s17, 128  ;;  %s6606_s28 = scalar_lea.hbm %s8099_s5, 512 }
 0x9e5   : > { %p6603_p13 = scmp.ne.s32.totalorder %s4764_s17, %s6602_s13  ;;  %p6607_p2 = scmp.lt.u32.totalorder %s4764_s17, %s8099_s5 }
 0x9e6   : > { %p6608_p3 = scmp.lt.u32.totalorder %s6606_s28, %s6602_s13  ;;  %p6610_p5 = scmp.lt.u32.totalorder %s6602_s13, %s4764_s17 }
 0x9e7   : > { %p6604_p0 = pnand %p6603_p13, %p6775_p6 }
 0x9e8   : > { %p6609_p4 = por %p6608_p3, %p6607_p2 }
 0x9e9   : > { %p6605_p1 = pneg %p6604_p0 }
 0x9ea   : > { %p6611_p9 = por %p6610_p5, %p6609_p4 }
 0x9ec   : > { %p6612_p7 = pnand %p6611_p9, %p6605_p1 }
 0x9ee   : > { %6615 = shalt.err (!%p6612_p7)
}
 0x9ef   : > { %6483 = dma.vmem_to_hbm [thread:$0]  (%p6775_p6), %s8043_s12, 128, %s4764_s17, %s4752_s30  }
 0x9f0 PF: > { %p6489_p10 = scmp.ge.s32.totalorder %s6682_s25, 2  ;;  %s4778_s14 = sand.u32 1, %s6654_s18  }
 0x9f1   : > { %s4779_s15 = scalar_lea.sflag [#allocation10], %s4778_s14 }
 0x9f2   : > { %p6486_p11 = pnand %p6489_p10, %p6782_p8 }
 0x9f4   : > { %6649 = dma.done.wait (!%p6486_p11), %s4779_s15, 128  }
 0x9f5   : > { %6651 = vsyncadd (!%p6486_p11), %s4779_s15, 4294967168  ;;  %s18_s25 = sadd.s32 1, %s6682_s25   ;;  %s8110_s22 = sld [smem:[#allocation12_spill]] }
 0x9f6   : > { %p15_p12 = scmp.ge.s32.totalorder %s18_s25, 10   ;;  %s8111_s6 = sld [smem:[#allocation13_spill]] }
 0x9f7   : > { %s8112_s24 = sld [smem:[#allocation14_spill]]  ;;  %s8113_s18 = smov %s6658_s19 }
 0x9f8   : > { %s8114_s19 = smov %s6662_s20  ;;  %s8115_s20 = smov %s6791_s11 }
 0x9f9   : > { %s8116_s21 = smov %s6674_s23  ;;  %17 = sbr.rel (!%p15_p12) target bundleno = 5 (0x5), region = 97 }
 0x9fc   : > { %s8117_s23 = smov %s8111_s6 }
 0xa00   :  { %4784 = vsyncpa [#allocation10], 1 }
 0xa01   :  { %4786 = vsyncpa [#allocation10 + $0x1], 1 }

</bundles_post_ra>
